<compile_context>
chip_gen: v7x
topology: tpu7x:2x2x1
jax: 0.10.0
libtpu: 0.0.40
codegen_flags: <defaults>
</compile_context>

<pallas_src>
import jax
import jax.numpy as jnp
from jax.experimental import pallas as pl
from jax.experimental.pallas import tpu as pltpu


# (h_in, w_in, h_out, w_out, k) for the six layers: 28->24->20->16->12->10->10.
# Kernel size per layer is inferred from the in/out spatial sizes (valid conv).
_LAYERS = (
    (28, 28, 24, 24, 5),
    (24, 24, 20, 20, 5),
    (20, 20, 16, 16, 5),
    (16, 16, 12, 12, 5),
    (12, 12, 10, 10, 3),
    (10, 10, 10, 10, 1),
)
_IN_FEATS = _LAYERS[0][0] * _LAYERS[0][1]      # 784
_OUT_FEATS = _LAYERS[-1][2] * _LAYERS[-1][3]   # 100
_N_LAYERS = len(_LAYERS)


def _fused_kernel(x_ref, w1_ref, w2_ref, w3_ref, w4_ref, w5_ref, w6_ref, o_ref):
    """All six conv(+inhibit+ReLU) layers for one (tb, 784) batch tile.

    x_ref  : (tb, 784) f32 VMEM  -- batch on sublanes, features on lanes.
    wN_ref : (n_in, n_out) bf16 VMEM block-Toeplitz weights (constant block
             index -> DMA'd once, reused across grid steps).
    o_ref  : (tb, 100) f32 VMEM.
    """
    w_refs = (w1_ref, w2_ref, w3_ref, w4_ref, w5_ref, w6_ref)

    # Cast the input tile to bf16 once for the MXU; accumulation stays f32.
    a = x_ref[...].astype(jnp.bfloat16)                       # (tb, 784)

    for idx, ((_, _, h_out, w_out, _), w_ref) in enumerate(zip(_LAYERS, w_refs)):
        n_out = h_out * w_out
        # Valid cross-correlation as a dense Toeplitz matmul on the MXU.
        y = jnp.dot(a, w_ref[...],
                    preferred_element_type=jnp.float32)        # (tb, n_out) f32
        # Lateral inhibition: subtract the per-sample mean of the pre-activation
        # feature map (one cross-lane reduce; XLU has slack), then ReLU (VPU).
        mean = jnp.sum(y, axis=1, keepdims=True) * (1.0 / n_out)  # (tb, 1)
        y = jnp.maximum(y - mean, 0.0)

        if idx == _N_LAYERS - 1:
            o_ref[...] = y                                     # (tb, 100) f32
        else:
            a = y.astype(jnp.bfloat16)                         # next layer input


def _round_up(x, m):
    return (x + m - 1) // m * m


def _pick_batch_tile(b):
    # Keep tb=128 until b >= 512 so the grid has >= 2 steps (both v7x
    # TensorCores busy with dimension_semantics=("parallel",)); 256 for very
    # large batches to amortize per-grid-step overhead.  VMEM footprint
    # (weights ~1.7 MB + tiles) stays far below the 32 MiB scoped default.
    return 256 if b >= 512 else 128


def _toeplitz_T(w, h_in, w_in, h_out, w_out, k):
    """(h_in*w_in, h_out*w_out) f32 matrix T with  y_flat = x_flat @ T  ==
    valid 2D cross-correlation of x (h_in, w_in) with kernel w (k, k)."""
    oi = jnp.arange(h_out).reshape(h_out, 1, 1, 1)
    oj = jnp.arange(w_out).reshape(1, w_out, 1, 1)
    ki = jnp.arange(k).reshape(1, 1, k, 1)
    kj = jnp.arange(k).reshape(1, 1, 1, k)
    cols = jnp.broadcast_to(oi * w_out + oj, (h_out, w_out, k, k)).reshape(-1)
    rows = ((oi + ki) * w_in + (oj + kj)).reshape(-1)
    vals = jnp.broadcast_to(w[jnp.newaxis, jnp.newaxis, :, :],
                            (h_out, w_out, k, k)).reshape(-1)
    t = jnp.zeros((h_in * w_in, h_out * w_out), jnp.float32)
    return t.at[rows, cols].set(vals)


def simple_conv_inhibit_forward(x_nchw, toeplitz_bf16):
    """x_nchw: (B, 1, 28, 28) f32, toeplitz_bf16: 6 bf16 matrices -> (B, 100)."""
    b = x_nchw.shape[0]
    tb = _pick_batch_tile(b)
    b_pad = _round_up(b, tb)

    # Free reshape (contiguous) -- no HBM relayout, unlike the old transpose.
    x = x_nchw.reshape(b, _IN_FEATS).astype(jnp.float32)
    if b_pad != b:
        x = jnp.pad(x, ((0, b_pad - b), (0, 0)))

    in_specs = [pl.BlockSpec((tb, _IN_FEATS), lambda bi: (bi, 0))]
    for w in toeplitz_bf16:
        # Full-extent block, constant index map: one DMA, reused every step.
        in_specs.append(pl.BlockSpec(w.shape, lambda bi: (0, 0)))

    out = pl.pallas_call(
        _fused_kernel,
        out_shape=jax.ShapeDtypeStruct((b_pad, _OUT_FEATS), jnp.float32),
        grid_spec=pltpu.PrefetchScalarGridSpec(
            num_scalar_prefetch=0,
            grid=(b_pad // tb,),
            in_specs=in_specs,
            out_specs=pl.BlockSpec((tb, _OUT_FEATS), lambda bi: (bi, 0)),
        ),
        compiler_params=pltpu.CompilerParams(
            dimension_semantics=("parallel",),
        ),
    )(x, *toeplitz_bf16)

    return out[:b]   # (B, 100) == layer_6_out.flatten(1)


def _reference_forward(x_nchw, kernels_f32):
    """Pure-JAX f32 reference of the same stand-in forward semantics."""
    a = x_nchw.astype(jnp.float32)                              # (B, 1, H, W)
    for w, (_, _, _, _, k) in zip(kernels_f32, _LAYERS):
        y = jax.lax.conv_general_dilated(
            a, w.reshape(1, 1, k, k), window_strides=(1, 1), padding="VALID",
            dimension_numbers=("NCHW", "OIHW", "NCHW"))
        mean = jnp.mean(y, axis=(1, 2, 3), keepdims=True)
        a = jnp.maximum(y - mean, 0.0)
    return a.reshape(a.shape[0], -1)


class SimpleConvInhibitPallas:
    """Pallas forward-pass port of SimpleConvInhibit (inference, train=False)."""

    def __init__(self, batch_size, key):
        self.batch_size = batch_size
        self.kernels = []          # per-layer (k, k) f32 conv kernels
        toeplitz = []
        for (h_in, w_in, h_out, w_out, k) in _LAYERS:
            key, sub = jax.random.split(key)
            # Deterministic synthetic init (no checkpoint to load).
            w = (jax.random.normal(sub, (k, k), jnp.float32) * 0.1
                 + 1.0 / (k * k))
            self.kernels.append(w)
            toeplitz.append(
                _toeplitz_T(w, h_in, w_in, h_out, w_out, k).astype(jnp.bfloat16))
        self.toeplitz_bf16 = tuple(toeplitz)   # ~1.7 MB total, VMEM-resident

    def __call__(self, x, labels=None, train=False):
        # x: (B, 1, 28, 28) NCHW -> (B, 100).  `labels` / `train` unused by the
        # inference forward pass (STDP updates are training side effects).
        return simple_conv_inhibit_forward(x, self.toeplitz_bf16)


if __name__ == "__main__":
    key = jax.random.PRNGKey(0)
    k_model, k_x, k_lbl = jax.random.split(key, 3)

    batch = 2
    model = SimpleConvInhibitPallas(batch, k_model)

    x = jax.random.uniform(k_x, (batch, 1, 28, 28), jnp.float32)
    labels = jax.random.randint(k_lbl, (batch,), 0, 10)  # unused by forward

    out = model(x, labels, train=False)
    out = jax.block_until_ready(out)

    assert out.shape == (batch, 100), out.shape
    assert bool(jnp.all(jnp.isfinite(out)))

    # Validate the bf16-MXU kernel against the pure-JAX f32 reference with an
    # explicit (loose, bf16-appropriate) tolerance.
    ref = jax.block_until_ready(_reference_forward(x, model.kernels))
    max_abs = float(jnp.max(jnp.abs(ref))) + 1e-6
    err = float(jnp.max(jnp.abs(out - ref)))
    assert err <= 0.1 * max_abs + 0.03, (err, max_abs)

    print("KERNEL_OK")
</pallas_src>

<mosaic_0001>
module attributes {stable_mosaic.version = 11 : i64} {
  func.func @_fused_kernel(%arg0: i32, %arg1: memref<128x784xf32, #tpu.memory_space<vmem>>, %arg2: memref<784x576xbf16, #tpu.memory_space<vmem>>, %arg3: memref<576x400xbf16, #tpu.memory_space<vmem>>, %arg4: memref<400x256xbf16, #tpu.memory_space<vmem>>, %arg5: memref<256x144xbf16, #tpu.memory_space<vmem>>, %arg6: memref<144x100xbf16, #tpu.memory_space<vmem>>, %arg7: memref<100x100xbf16, #tpu.memory_space<vmem>>, %arg8: memref<128x100xf32, #tpu.memory_space<vmem>>) attributes {dimension_semantics = [#tpu.dimension_semantics<parallel>], iteration_bounds = array<i64: 1>, scalar_prefetch = 0 : i64, scratch_operands = 0 : i64, tpu.core_type = #tpu.core_type<tc>, window_params = [{transform_indices = @transform_0, window_bounds = array<i64: 128, 784>}, {pipeline_mode = #tpu.pipeline_mode<synchronous>, transform_indices = @transform_1, window_bounds = array<i64: 784, 576>}, {pipeline_mode = #tpu.pipeline_mode<synchronous>, transform_indices = @transform_2, window_bounds = array<i64: 576, 400>}, {pipeline_mode = #tpu.pipeline_mode<synchronous>, transform_indices = @transform_3, window_bounds = array<i64: 400, 256>}, {pipeline_mode = #tpu.pipeline_mode<synchronous>, transform_indices = @transform_4, window_bounds = array<i64: 256, 144>}, {pipeline_mode = #tpu.pipeline_mode<synchronous>, transform_indices = @transform_5, window_bounds = array<i64: 144, 100>}, {pipeline_mode = #tpu.pipeline_mode<synchronous>, transform_indices = @transform_6, window_bounds = array<i64: 100, 100>}, {transform_indices = @transform_7, window_bounds = array<i64: 128, 100>}]} {
    %c0 = arith.constant 0 : index
    %c0_0 = arith.constant 0 : index
    %0 = vector.load %arg1[%c0, %c0_0] : memref<128x784xf32, #tpu.memory_space<vmem>>, vector<128x784xf32>
    %1 = arith.truncf %0 : vector<128x784xf32> to vector<128x784xbf16>
    %c0_1 = arith.constant 0 : index
    %c0_2 = arith.constant 0 : index
    %2 = vector.load %arg2[%c0_1, %c0_2] : memref<784x576xbf16, #tpu.memory_space<vmem>>, vector<784x576xbf16>
    %cst = arith.constant dense<0.000000e+00> : vector<128x576xf32>
    %3 = tpu.matmul %1, %2, %cst {dimension_numbers = #tpu.dot_dimension_numbers<[1], [0], [0], [1], [0, 0, 1, 1], [], []>} : vector<128x784xbf16>, vector<784x576xbf16>, vector<128x576xf32> -> vector<128x576xf32>
    %cst_3 = arith.constant dense<0.000000e+00> : vector<128xf32>
    %4 = vector.multi_reduction <add>, %3, %cst_3 [1] : vector<128x576xf32> to vector<128xf32>
    %5 = vector.shape_cast %4 : vector<128xf32> to vector<128x1xf32>
    %cst_4 = arith.constant 0.00173611112 : f32
    %6 = vector.broadcast %cst_4 : f32 to vector<128x1xf32>
    %7 = arith.mulf %5, %6 : vector<128x1xf32>
    %8 = vector.broadcast %7 : vector<128x1xf32> to vector<128x576xf32>
    %9 = arith.subf %3, %8 : vector<128x576xf32>
    %cst_5 = arith.constant 0.000000e+00 : f32
    %10 = vector.broadcast %cst_5 : f32 to vector<128x576xf32>
    %11 = arith.maximumf %9, %10 : vector<128x576xf32>
    %12 = arith.truncf %11 : vector<128x576xf32> to vector<128x576xbf16>
    %c0_6 = arith.constant 0 : index
    %c0_7 = arith.constant 0 : index
    %13 = vector.load %arg3[%c0_6, %c0_7] : memref<576x400xbf16, #tpu.memory_space<vmem>>, vector<576x400xbf16>
    %cst_8 = arith.constant dense<0.000000e+00> : vector<128x400xf32>
    %14 = tpu.matmul %12, %13, %cst_8 {dimension_numbers = #tpu.dot_dimension_numbers<[1], [0], [0], [1], [0, 0, 1, 1], [], []>} : vector<128x576xbf16>, vector<576x400xbf16>, vector<128x400xf32> -> vector<128x400xf32>
    %cst_9 = arith.constant dense<0.000000e+00> : vector<128xf32>
    %15 = vector.multi_reduction <add>, %14, %cst_9 [1] : vector<128x400xf32> to vector<128xf32>
    %16 = vector.shape_cast %15 : vector<128xf32> to vector<128x1xf32>
    %cst_10 = arith.constant 2.500000e-03 : f32
    %17 = vector.broadcast %cst_10 : f32 to vector<128x1xf32>
    %18 = arith.mulf %16, %17 : vector<128x1xf32>
    %19 = vector.broadcast %18 : vector<128x1xf32> to vector<128x400xf32>
    %20 = arith.subf %14, %19 : vector<128x400xf32>
    %cst_11 = arith.constant 0.000000e+00 : f32
    %21 = vector.broadcast %cst_11 : f32 to vector<128x400xf32>
    %22 = arith.maximumf %20, %21 : vector<128x400xf32>
    %23 = arith.truncf %22 : vector<128x400xf32> to vector<128x400xbf16>
    %c0_12 = arith.constant 0 : index
    %c0_13 = arith.constant 0 : index
    %24 = vector.load %arg4[%c0_12, %c0_13] : memref<400x256xbf16, #tpu.memory_space<vmem>>, vector<400x256xbf16>
    %cst_14 = arith.constant dense<0.000000e+00> : vector<128x256xf32>
    %25 = tpu.matmul %23, %24, %cst_14 {dimension_numbers = #tpu.dot_dimension_numbers<[1], [0], [0], [1], [0, 0, 1, 1], [], []>} : vector<128x400xbf16>, vector<400x256xbf16>, vector<128x256xf32> -> vector<128x256xf32>
    %cst_15 = arith.constant dense<0.000000e+00> : vector<128xf32>
    %26 = vector.multi_reduction <add>, %25, %cst_15 [1] : vector<128x256xf32> to vector<128xf32>
    %27 = vector.shape_cast %26 : vector<128xf32> to vector<128x1xf32>
    %cst_16 = arith.constant 3.906250e-03 : f32
    %28 = vector.broadcast %cst_16 : f32 to vector<128x1xf32>
    %29 = arith.mulf %27, %28 : vector<128x1xf32>
    %30 = vector.broadcast %29 : vector<128x1xf32> to vector<128x256xf32>
    %31 = arith.subf %25, %30 : vector<128x256xf32>
    %cst_17 = arith.constant 0.000000e+00 : f32
    %32 = vector.broadcast %cst_17 : f32 to vector<128x256xf32>
    %33 = arith.maximumf %31, %32 : vector<128x256xf32>
    %34 = arith.truncf %33 : vector<128x256xf32> to vector<128x256xbf16>
    %c0_18 = arith.constant 0 : index
    %c0_19 = arith.constant 0 : index
    %35 = vector.load %arg5[%c0_18, %c0_19] : memref<256x144xbf16, #tpu.memory_space<vmem>>, vector<256x144xbf16>
    %cst_20 = arith.constant dense<0.000000e+00> : vector<128x144xf32>
    %36 = tpu.matmul %34, %35, %cst_20 {dimension_numbers = #tpu.dot_dimension_numbers<[1], [0], [0], [1], [0, 0, 1, 1], [], []>} : vector<128x256xbf16>, vector<256x144xbf16>, vector<128x144xf32> -> vector<128x144xf32>
    %cst_21 = arith.constant dense<0.000000e+00> : vector<128xf32>
    %37 = vector.multi_reduction <add>, %36, %cst_21 [1] : vector<128x144xf32> to vector<128xf32>
    %38 = vector.shape_cast %37 : vector<128xf32> to vector<128x1xf32>
    %cst_22 = arith.constant 0.0069444445 : f32
    %39 = vector.broadcast %cst_22 : f32 to vector<128x1xf32>
    %40 = arith.mulf %38, %39 : vector<128x1xf32>
    %41 = vector.broadcast %40 : vector<128x1xf32> to vector<128x144xf32>
    %42 = arith.subf %36, %41 : vector<128x144xf32>
    %cst_23 = arith.constant 0.000000e+00 : f32
    %43 = vector.broadcast %cst_23 : f32 to vector<128x144xf32>
    %44 = arith.maximumf %42, %43 : vector<128x144xf32>
    %45 = arith.truncf %44 : vector<128x144xf32> to vector<128x144xbf16>
    %c0_24 = arith.constant 0 : index
    %c0_25 = arith.constant 0 : index
    %46 = vector.load %arg6[%c0_24, %c0_25] : memref<144x100xbf16, #tpu.memory_space<vmem>>, vector<144x100xbf16>
    %cst_26 = arith.constant dense<0.000000e+00> : vector<128x100xf32>
    %47 = tpu.matmul %45, %46, %cst_26 {dimension_numbers = #tpu.dot_dimension_numbers<[1], [0], [0], [1], [0, 0, 1, 1], [], []>} : vector<128x144xbf16>, vector<144x100xbf16>, vector<128x100xf32> -> vector<128x100xf32>
    %cst_27 = arith.constant dense<0.000000e+00> : vector<128xf32>
    %48 = vector.multi_reduction <add>, %47, %cst_27 [1] : vector<128x100xf32> to vector<128xf32>
    %49 = vector.shape_cast %48 : vector<128xf32> to vector<128x1xf32>
    %cst_28 = arith.constant 0.00999999977 : f32
    %50 = vector.broadcast %cst_28 : f32 to vector<128x1xf32>
    %51 = arith.mulf %49, %50 : vector<128x1xf32>
    %52 = vector.broadcast %51 : vector<128x1xf32> to vector<128x100xf32>
    %53 = arith.subf %47, %52 : vector<128x100xf32>
    %cst_29 = arith.constant 0.000000e+00 : f32
    %54 = vector.broadcast %cst_29 : f32 to vector<128x100xf32>
    %55 = arith.maximumf %53, %54 : vector<128x100xf32>
    %56 = arith.truncf %55 : vector<128x100xf32> to vector<128x100xbf16>
    %c0_30 = arith.constant 0 : index
    %c0_31 = arith.constant 0 : index
    %57 = vector.load %arg7[%c0_30, %c0_31] : memref<100x100xbf16, #tpu.memory_space<vmem>>, vector<100x100xbf16>
    %cst_32 = arith.constant dense<0.000000e+00> : vector<128x100xf32>
    %58 = tpu.matmul %56, %57, %cst_32 {dimension_numbers = #tpu.dot_dimension_numbers<[1], [0], [0], [1], [0, 0, 1, 1], [], []>} : vector<128x100xbf16>, vector<100x100xbf16>, vector<128x100xf32> -> vector<128x100xf32>
    %cst_33 = arith.constant dense<0.000000e+00> : vector<128xf32>
    %59 = vector.multi_reduction <add>, %58, %cst_33 [1] : vector<128x100xf32> to vector<128xf32>
    %60 = vector.shape_cast %59 : vector<128xf32> to vector<128x1xf32>
    %cst_34 = arith.constant 0.00999999977 : f32
    %61 = vector.broadcast %cst_34 : f32 to vector<128x1xf32>
    %62 = arith.mulf %60, %61 : vector<128x1xf32>
    %63 = vector.broadcast %62 : vector<128x1xf32> to vector<128x100xf32>
    %64 = arith.subf %58, %63 : vector<128x100xf32>
    %cst_35 = arith.constant 0.000000e+00 : f32
    %65 = vector.broadcast %cst_35 : f32 to vector<128x100xf32>
    %66 = arith.maximumf %64, %65 : vector<128x100xf32>
    %c0_36 = arith.constant 0 : index
    %c0_37 = arith.constant 0 : index
    %67 = vector.load %arg8[%c0_36, %c0_37] : memref<128x100xf32, #tpu.memory_space<vmem>>, vector<128x100xf32>
    tpu.vector_store %arg8[%c0_36, %c0_37], %66 {strides = array<i32>} : memref<128x100xf32, #tpu.memory_space<vmem>>, vector<128x100xf32>,
    return
  }
  func.func @transform_0(%arg0: i32) -> (i32, i32) {
    %c0_i32 = arith.constant 0 : i32
    %c0_i32_0 = arith.constant 0 : i32
    return %arg0, %c0_i32 : i32, i32
  }
  func.func @transform_1(%arg0: i32) -> (i32, i32) {
    %c0_i32 = arith.constant 0 : i32
    %c0_i32_0 = arith.constant 0 : i32
    %c0_i32_1 = arith.constant 0 : i32
    return %c0_i32, %c0_i32_0 : i32, i32
  }
  func.func @transform_2(%arg0: i32) -> (i32, i32) {
    %c0_i32 = arith.constant 0 : i32
    %c0_i32_0 = arith.constant 0 : i32
    %c0_i32_1 = arith.constant 0 : i32
    return %c0_i32, %c0_i32_0 : i32, i32
  }
  func.func @transform_3(%arg0: i32) -> (i32, i32) {
    %c0_i32 = arith.constant 0 : i32
    %c0_i32_0 = arith.constant 0 : i32
    %c0_i32_1 = arith.constant 0 : i32
    return %c0_i32, %c0_i32_0 : i32, i32
  }
  func.func @transform_4(%arg0: i32) -> (i32, i32) {
    %c0_i32 = arith.constant 0 : i32
    %c0_i32_0 = arith.constant 0 : i32
    %c0_i32_1 = arith.constant 0 : i32
    return %c0_i32, %c0_i32_0 : i32, i32
  }
  func.func @transform_5(%arg0: i32) -> (i32, i32) {
    %c0_i32 = arith.constant 0 : i32
    %c0_i32_0 = arith.constant 0 : i32
    %c0_i32_1 = arith.constant 0 : i32
    return %c0_i32, %c0_i32_0 : i32, i32
  }
  func.func @transform_6(%arg0: i32) -> (i32, i32) {
    %c0_i32 = arith.constant 0 : i32
    %c0_i32_0 = arith.constant 0 : i32
    %c0_i32_1 = arith.constant 0 : i32
    return %c0_i32, %c0_i32_0 : i32, i32
  }
  func.func @transform_7(%arg0: i32) -> (i32, i32) {
    %c0_i32 = arith.constant 0 : i32
    %c0_i32_0 = arith.constant 0 : i32
    return %arg0, %c0_i32 : i32, i32
  }
}

</mosaic_0001>

<bundles_post_ra>
// kernel: tpu_custom_call.1
= control target key start
LH: loop header
LB: loop body
LE: loop exit
PB: predicated region body
PF: predicated region fallthrough
CT: control target
= control target key end

     0   :  { %v12800_v1 = vmov 0   ;;  %vm1763_vm0 = vcmask 130048   ;;  %vm3083_vm1 = vcmask 523264   ;;  %vm6599_vm2 = vcmask 818176   ;;  %s12792_s1 = inlined_call_operand.vmem [shape: bf16[784,576], index: 1, kind: input, shape index: {}]   ;;  %s12793_s0 = inlined_call_operand.vmem [shape: f32[128,784], index: 0, kind: input, shape index: {}]   ;;  %s12794_s2 = inlined_call_operand.vmem [shape: bf16[576,400], index: 2, kind: input, shape index: {}]   ;;  %s12795_s3 = inlined_call_operand.vmem [shape: bf16[400,256], index: 3, kind: input, shape index: {}]   ;;  %s12796_s4 = inlined_call_operand.vmem [shape: bf16[256,144], index: 4, kind: input, shape index: {}]   ;;  %s12797_s5 = inlined_call_operand.vmem [shape: bf16[144,100], index: 5, kind: input, shape index: {}]   ;;  %s12798_s6 = inlined_call_operand.vmem [shape: bf16[100,100], index: 6, kind: input, shape index: {}]   ;;  %s12799_s7 = inlined_call_operand.vmem [shape: f32[128,100], index: 7, kind: output, shape index: {}]  }
   0x1   :  { %v8213_v0 = vld [vmem:[%s12792_s1 + $0x4] ss:$20 sps:$4 sm:$0xff]   ;;  %2159 = vmatprep.mubr.bf16.mxu1 %v12800_v1  ;;  %v8217_v3 = vld [vmem:[%s12792_s1] ss:$20 sps:$4 sm:$0xff]   ;;  %v40_v7 = vld [vmem:[%s12793_s0 + $0x68] sm:$0xff]  ;;  %vm6780_vm3 = vcmask 1041408  }
   0x2   :  { %v8215_v2 = vld [vmem:[%s12792_s1 + $0x784] ss:$20 sps:$4 sm:$0xff]   ;;  %1788 = vmatprep.subr.bf16.mxu0 %v8213_v0  ;;  %v8218_v4 = vld [vmem:[%s12792_s1 + $0x780] ss:$20 sps:$4 sm:$0xff]   ;;  %v8221_v9 = vld [vmem:[%s12792_s1 + $0x8] ss:$20 sps:$4 sm:$0xff]  }
   0x3   :  { %2127 = vmatprep.subr.bf16.mxu1 %v8215_v2  ;;  %v8219_v5 = vld [vmem:[%s12792_s1 + $0x2c] ss:$20 sps:$4 sm:$0xff]   ;;  %v33_v6 = vld [vmem:[%s12793_s0 + $0x30] sm:$0xff]  ;;  %1789 = vmatpush1.bf16.msra.mxu0 %v8217_v3  ;;  %v8224_v11 = vld [vmem:[%s12792_s1 + $0x28] ss:$20 sps:$4 sm:$0xff]  }
   0x4   :  { %2128 = vmatpush1.bf16.msra.mxu1 %v8218_v4  ;;  %1790 = vmatprep.subr.bf16.mxu0 %v8219_v5  ;;  %v8974_v8 = vpack.c.bf16 %v40_v7, %v33_v6  ;;  %v8223_v10 = vld [vmem:[%s12792_s1 + $0xc] ss:$20 sps:$4 sm:$0xff]   ;;  %v8225_v12 = vld [vmem:[%s12792_s1 + $0x54] ss:$20 sps:$4 sm:$0xff]   ;;  %v8227_v13 = vld [vmem:[%s12792_s1 + $0x30] ss:$20 sps:$4 sm:$0xff]  }
   0x5   :  { %2240 = vmatprep.subr.bf16.mxu1 %v8223_v10  ;;  %v8229_v14 = vld [vmem:[%s12792_s1 + $0x34] ss:$20 sps:$4 sm:$0xff]   ;;  %v8230_v15 = vld [vmem:[%s12792_s1 + $0x50] ss:$20 sps:$4 sm:$0xff]   ;;  %v54_v18 = vld [vmem:[%s12793_s0 + $0xd8] sm:$0xff] }
   0x6   :  { %v8231_v16 = vld [vmem:[%s12792_s1 + $0x7c] ss:$20 sps:$4 sm:$0xff]   ;;  %v47_v17 = vld [vmem:[%s12793_s0 + $0xa0] sm:$0xff]  ;;  %v8233_v20 = vld [vmem:[%s12792_s1 + $0x58] ss:$20 sps:$4 sm:$0xff]  }
   0x7   :  { %7242 = vmatmul.mubr.msk.bf16.vlgmr.msra.gmra.mrb[0].mxu1 %vm1763_vm0, %v8974_v8  ;;  %1791 = vmatpush1.bf16.msra.mxu0 %v8224_v11  ;;  %v9009_v19 = vpack.c.bf16 %v54_v18, %v47_v17  ;;  %v8235_v21 = vld [vmem:[%s12792_s1 + $0x5c] ss:$20 sps:$4 sm:$0xff]   ;;  %v8236_v22 = vld [vmem:[%s12792_s1 + $0x78] ss:$20 sps:$4 sm:$0xff]   ;;  %v8239_v24 = vld [vmem:[%s12792_s1 + $0x80] ss:$20 sps:$4 sm:$0xff]  }
   0x8   :  { %2241 = vmatpush1.bf16.msra.mxu1 %v8221_v9  ;;  %1792 = vmatprep.subr.bf16.mxu0 %v8225_v12  ;;  %v8237_v23 = vld [vmem:[%s12792_s1 + $0xa4] ss:$20 sps:$4 sm:$0xff]   ;;  %v8242_v26 = vld [vmem:[%s12792_s1 + $0xa0] ss:$20 sps:$4 sm:$0xff]   ;;  %v68_v28 = vld [vmem:[%s12793_s0 + $0x148] sm:$0xff] }
   0x9   :  { %2169 = vmatprep.mubr.bf16.mxu1 %v12800_v1  ;;  %2242 = vmatprep.subr.bf16.mxu1 %v8229_v14  ;;  %v8241_v25 = vld [vmem:[%s12792_s1 + $0x84] ss:$20 sps:$4 sm:$0xff]   ;;  %v61_v27 = vld [vmem:[%s12793_s0 + $0x110] sm:$0xff]  ;;  %v8243_v29 = vld [vmem:[%s12792_s1 + $0xcc] ss:$20 sps:$4 sm:$0xff]  }
   0xa   :  { %v8247_v30 = vld [vmem:[%s12792_s1 + $0xac] ss:$20 sps:$4 sm:$0xff]   ;;  %v9047_v31 = vpack.c.bf16 %v68_v28, %v61_v27  ;;  %v8245_v32 = vld [vmem:[%s12792_s1 + $0xa8] ss:$20 sps:$4 sm:$0xff]   ;;  %v8251_v36 = vld [vmem:[%s12792_s1 + $0xd0] ss:$20 sps:$4 sm:$0xff]  }
   0xb   :  { %1793 = vmatpush1.bf16.msra.mxu0 %v8230_v15  ;;  %v8248_v33 = vld [vmem:[%s12792_s1 + $0xc8] ss:$20 sps:$4 sm:$0xff]   ;;  %v8254_v37 = vld [vmem:[%s12792_s1 + $0xf0] ss:$20 sps:$4 sm:$0xff]   ;;  %v8257_v43 = vld [vmem:[%s12792_s1 + $0xf8] ss:$20 sps:$4 sm:$0xff]  }
   0xc   :  { %2243 = vmatpush1.bf16.msra.mxu1 %v8227_v13  ;;  %1794 = vmatprep.subr.bf16.mxu0 %v8231_v16  ;;  %v8249_v34 = vld [vmem:[%s12792_s1 + $0xf4] ss:$20 sps:$4 sm:$0xff]   ;;  %v8255_v38 = vld [vmem:[%s12792_s1 + $0x11c] ss:$20 sps:$4 sm:$0xff]   ;;  %v75_v39 = vld [vmem:[%s12793_s0 + $0x180] sm:$0xff] }
   0xd   :  { %2244 = vmatprep.subr.bf16.mxu1 %v8235_v21  ;;  %v8253_v35 = vld [vmem:[%s12792_s1 + $0xd4] ss:$20 sps:$4 sm:$0xff]   ;;  %v82_v40 = vld [vmem:[%s12793_s0 + $0x1b8] sm:$0xff]  ;;  %v8267_v51 = vld [vmem:[%s12792_s1 + $0x16c] ss:$20 sps:$4 sm:$0xff]  }
   0xe   :  { %v8259_v41 = vld [vmem:[%s12792_s1 + $0xfc] ss:$20 sps:$4 sm:$0xff]   ;;  %v9082_v42 = vpack.c.bf16 %v82_v40, %v75_v39  ;;  %v8260_v44 = vld [vmem:[%s12792_s1 + $0x118] ss:$20 sps:$4 sm:$0xff]   ;;  %v8263_v47 = vld [vmem:[%s12792_s1 + $0x120] ss:$20 sps:$4 sm:$0xff]  }
   0xf   :  { %7243 = vmatmul.mubr.msk.bf16.gmra.mrb[4].mxu1 %vm1763_vm0, %v9009_v19  ;;  %1795 = vmatpush1.bf16.msra.mxu0 %v8236_v22  ;;  %v8261_v45 = vld [vmem:[%s12792_s1 + $0x144] ss:$20 sps:$4 sm:$0xff]   ;;  %v8266_v48 = vld [vmem:[%s12792_s1 + $0x140] ss:$20 sps:$4 sm:$0xff]   ;;  %v96_v50 = vld [vmem:[%s12793_s0 + $0x228] sm:$0xff] }
  0x10   :  { %2245 = vmatpush1.bf16.msra.mxu1 %v8233_v20  ;;  %1796 = vmatprep.subr.bf16.mxu0 %v8237_v23  ;;  %v8265_v46 = vld [vmem:[%s12792_s1 + $0x124] ss:$20 sps:$4 sm:$0xff]   ;;  %v89_v49 = vld [vmem:[%s12793_s0 + $0x1f0] sm:$0xff]  ;;  %v8271_v52 = vld [vmem:[%s12792_s1 + $0x14c] ss:$20 sps:$4 sm:$0xff]  }
  0x11   :  { %2246 = vmatprep.subr.bf16.mxu1 %v8241_v25  ;;  %2179 = vmatprep.mubr.bf16.mxu1 %v12800_v1  ;;  %v9117_v53 = vpack.c.bf16 %v96_v50, %v89_v49  ;;  %v8269_v54 = vld [vmem:[%s12792_s1 + $0x148] ss:$20 sps:$4 sm:$0xff]   ;;  %v8275_v58 = vld [vmem:[%s12792_s1 + $0x170] ss:$20 sps:$4 sm:$0xff]   ;;  %v8281_v2 = vld [vmem:[%s12792_s1 + $0x198] ss:$20 sps:$4 sm:$0xff]  }
  0x12   :  { %v8272_v55 = vld [vmem:[%s12792_s1 + $0x168] ss:$20 sps:$4 sm:$0xff]   ;;  %v8278_v59 = vld [vmem:[%s12792_s1 + $0x190] ss:$20 sps:$4 sm:$0xff]   ;;  %v8284_v3 = vld [vmem:[%s12792_s1 + $0x1b8] ss:$20 sps:$4 sm:$0xff]  }
  0x13   :  { %1797 = vmatpush1.bf16.msra.mxu0 %v8242_v26  ;;  %v8273_v56 = vld [vmem:[%s12792_s1 + $0x194] ss:$20 sps:$4 sm:$0xff]   ;;  %v103_v60 = vld [vmem:[%s12793_s0 + $0x260] sm:$0xff]  ;;  %v110_v61 = vld [vmem:[%s12793_s0 + $0x298] sm:$0xff] }
  0x14   :  { %2247 = vmatpush1.bf16.msra.mxu1 %v8239_v24  ;;  %1798 = vmatprep.subr.bf16.mxu0 %v8243_v29  ;;  %v8277_v57 = vld [vmem:[%s12792_s1 + $0x174] ss:$20 sps:$4 sm:$0xff]   ;;  %v8279_v62 = vld [vmem:[%s12792_s1 + $0x1bc] ss:$20 sps:$4 sm:$0xff]   ;;  %v9152_v0 = vpack.c.bf16 %v110_v61, %v103_v60  ;;  %v8285_v4 = vld [vmem:[%s12792_s1 + $0x1e4] ss:$20 sps:$4 sm:$0xff]  }
  0x15   :  { %2248 = vmatprep.subr.bf16.mxu1 %v8247_v30  ;;  %v8283_v63 = vld [vmem:[%s12792_s1 + $0x19c] ss:$20 sps:$4 sm:$0xff]   ;;  %v8289_v5 = vld [vmem:[%s12792_s1 + $0x1c4] ss:$20 sps:$4 sm:$0xff]   ;;  %v8287_v6 = vld [vmem:[%s12792_s1 + $0x1c0] ss:$20 sps:$4 sm:$0xff]  }
  0x16   :  { %v8290_v7 = vld [vmem:[%s12792_s1 + $0x1e0] ss:$20 sps:$4 sm:$0xff]   ;;  %v124_v11 = vld [vmem:[%s12793_s0 + $0x308] sm:$0xff]  ;;  %v8299_v22 = vld [vmem:[%s12792_s1 + $0x210] ss:$20 sps:$4 sm:$0xff]  }
  0x17   :  { %7244 = vmatmul.mubr.msk.bf16.gmra.mrb[8].mxu1 %vm1763_vm0, %v9047_v31  ;;  %1799 = vmatpush1.bf16.msra.mxu0 %v8248_v33  ;;  %v8291_v9 = vld [vmem:[%s12792_s1 + $0x20c] ss:$20 sps:$4 sm:$0xff]   ;;  %v117_v10 = vld [vmem:[%s12793_s0 + $0x2d0] sm:$0xff]  ;;  %v8293_v17 = vld [vmem:[%s12792_s1 + $0x1e8] ss:$20 sps:$4 sm:$0xff]  }
  0x18   :  { %2249 = vmatpush1.bf16.msra.mxu1 %v8245_v32  ;;  %1800 = vmatprep.subr.bf16.mxu0 %v8249_v34  ;;  %v28_v12 = vld [vmem:[%s12793_s0 + $0x8] sm:$0xff]  ;;  %v35_v13 = vld [vmem:[%s12793_s0 + $0x40] sm:$0xff]  ;;  %v9195_v16 = vpack.c.bf16 %v124_v11, %v117_v10  ;;  %v8303_v24 = vld [vmem:[%s12792_s1 + $0x25c] ss:$20 sps:$4 sm:$0xff]  }
  0x19   :  { %2250 = vmatprep.subr.bf16.mxu1 %v8253_v35  ;;  %2189 = vmatprep.mubr.bf16.mxu1 %v12800_v1  ;;  %v8295_v14 = vld [vmem:[%s12792_s1 + $0x1ec] ss:$20 sps:$4 sm:$0xff]   ;;  %v9192_v15 = vpack.c.bf16 %v35_v13, %v28_v12  ;;  %v8296_v18 = vld [vmem:[%s12792_s1 + $0x208] ss:$20 sps:$4 sm:$0xff]   ;;  %v8302_v23 = vld [vmem:[%s12792_s1 + $0x230] ss:$20 sps:$4 sm:$0xff]  }
  0x1a   :  { %v8297_v20 = vld [vmem:[%s12792_s1 + $0x234] ss:$20 sps:$4 sm:$0xff]   ;;  %v131_v25 = vld [vmem:[%s12793_s0 + $0x340] sm:$0xff]  ;;  %v138_v26 = vld [vmem:[%s12793_s0 + $0x378] sm:$0xff] }
  0x1b   :  { %1801 = vmatpush1.bf16.msra.mxu0 %v8254_v37  ;;  %1820 = vmatprep.mubr.bf16.mxu0 %v9192_v15  ;;  %v8301_v21 = vld [vmem:[%s12792_s1 + $0x214] ss:$20 sps:$4 sm:$0xff]   ;;  %v8307_v27 = vld [vmem:[%s12792_s1 + $0x23c] ss:$20 sps:$4 sm:$0xff]   ;;  %v8305_v28 = vld [vmem:[%s12792_s1 + $0x238] ss:$20 sps:$4 sm:$0xff]   ;;  %v9234_v29 = vpack.c.bf16 %v138_v26, %v131_v25 }
  0x1c   :  { %2251 = vmatpush1.bf16.msra.mxu1 %v8251_v36  ;;  %1802 = vmatprep.subr.bf16.mxu0 %v8255_v38  ;;  %v8308_v30 = vld [vmem:[%s12792_s1 + $0x258] ss:$20 sps:$4 sm:$0xff]   ;;  %v27_v32 = vld [vmem:[%s12793_s0] sm:$0xff]  ;;  %v49_v40 = vld [vmem:[%s12793_s0 + $0xb0] sm:$0xff] }
  0x1d   :  { %2252 = vmatprep.subr.bf16.mxu1 %v8259_v41  ;;  %v34_v33 = vld [vmem:[%s12793_s0 + $0x38] sm:$0xff]  ;;  %v8309_v36 = vld [vmem:[%s12792_s1 + $0x280] ss:$20 sps:$4 sm:$0xff]   ;;  %v8345_v25 = vld [vmem:[%s12792_s1 + $0x370] ss:$20 sps:$4 sm:$0xff]  }
  0x1e   :  { %v8311_v34 = vld [vmem:[%s12792_s1 + $0x284] ss:$20 sps:$4 sm:$0xff]   ;;  %v8312_v37 = vld [vmem:[%s12792_s1 + $0x260] ss:$20 sps:$4 sm:$0xff]   ;;  %v9259_v38 = vpack.c.bf16 %v34_v33, %v27_v32  ;;  %v8339_v12 = vld [vmem:[%s12792_s1 + $0x348] ss:$20 sps:$4 sm:$0xff]  }
  0x1f   :  { %7245 = vmatmul.mubr.msk.bf16.gmra.mrb[12].mxu1 %vm1763_vm0, %v9082_v42  ;;  %1803 = vmatpush1.bf16.msra.mxu0 %v8260_v44  ;;  %v8314_v35 = vld [vmem:[%s12792_s1 + $0x264] ss:$20 sps:$4 sm:$0xff]   ;;  %v8317_v41 = vld [vmem:[%s12792_s1 + $0x2ac] ss:$20 sps:$4 sm:$0xff]   ;;  %v8323_v49 = vld [vmem:[%s12792_s1 + $0x2d4] ss:$20 sps:$4 sm:$0xff]  }
  0x20   :  { %2253 = vmatpush1.bf16.msra.mxu1 %v8257_v43  ;;  %1804 = vmatprep.subr.bf16.mxu0 %v8261_v45  ;;  %v42_v39 = vld [vmem:[%s12793_s0 + $0x78] sm:$0xff]  ;;  %v8320_v43 = vld [vmem:[%s12792_s1 + $0x28c] ss:$20 sps:$4 sm:$0xff]   ;;  %v8326_v50 = vld [vmem:[%s12792_s1 + $0x2b4] ss:$20 sps:$4 sm:$0xff]  }
  0x21   :  { %2254 = vmatprep.subr.bf16.mxu1 %v8265_v46  ;;  %2199 = vmatprep.mubr.bf16.mxu1 %v12800_v1  ;;  %v9274_v44 = vpack.c.bf16 %v49_v40, %v42_v39  ;;  %v8315_v45 = vld [vmem:[%s12792_s1 + $0x2a8] ss:$20 sps:$4 sm:$0xff]   ;;  %v8330_v61 = vld [vmem:[%s12792_s1 + $0x2d8] ss:$20 sps:$4 sm:$0xff]   ;;  %v8348_v26 = vld [vmem:[%s12792_s1 + $0x350] ss:$20 sps:$4 sm:$0xff]  }
  0x22   :  { %v8318_v46 = vld [vmem:[%s12792_s1 + $0x288] ss:$20 sps:$4 sm:$0xff]   ;;  %v8341_v10 = vld [vmem:[%s12792_s1 + $0x34c] ss:$20 sps:$4 sm:$0xff]  }
  0x23   :  { %1805 = vmatpush1.bf16.msra.mxu0 %v8266_v48  ;;  %v48_v48 = vld [vmem:[%s12793_s0 + $0xa8] sm:$0xff]  ;;  %v8357_v39 = vld [vmem:[%s12792_s1 + $0x3c0] ss:$20 sps:$4 sm:$0xff]  }
  0x24   :  { %2255 = vmatpush1.bf16.msra.mxu1 %v8263_v47  ;;  %1806 = vmatprep.subr.bf16.mxu0 %v8267_v51  ;;  %v41_v47 = vld [vmem:[%s12793_s0 + $0x70] sm:$0xff]  ;;  %v8344_v11 = vld [vmem:[%s12792_s1 + $0x32c] ss:$20 sps:$4 sm:$0xff]   ;;  %v8342_v13 = vld [vmem:[%s12792_s1 + $0x328] ss:$20 sps:$4 sm:$0xff]  }
  0x25   :  { %2256 = vmatprep.subr.bf16.mxu1 %v8271_v52  ;;  %v8321_v51 = vld [vmem:[%s12792_s1 + $0x2d0] ss:$20 sps:$4 sm:$0xff]   ;;  %v8354_v32 = vld [vmem:[%s12792_s1 + $0x378] ss:$20 sps:$4 sm:$0xff]  }
  0x26   :  { %v8324_v52 = vld [vmem:[%s12792_s1 + $0x2b0] ss:$20 sps:$4 sm:$0xff]  }
  0x27   :  { %7246 = vmatmul.mubr.msk.bf16.gmra.mrb[16].mxu1 %vm1763_vm0, %v9117_v53  ;;  %1807 = vmatpush1.bf16.msra.mxu0 %v8272_v55  ;;  %v56_v55 = vld [vmem:[%s12793_s0 + $0xe8] sm:$0xff] }
  0x28   :  { %2257 = vmatpush1.bf16.msra.mxu1 %v8269_v54  ;;  %1808 = vmatprep.subr.bf16.mxu0 %v8273_v56  ;;  %v9303_v54 = vpack.c.bf16 %v48_v48, %v41_v47  ;;  %v63_v56 = vld [vmem:[%s12793_s0 + $0x120] sm:$0xff]  ;;  %v8363_v48 = vld [vmem:[%s12792_s1 + $0x3e8] ss:$20 sps:$4 sm:$0xff]  }
  0x29   :  { %2258 = vmatprep.subr.bf16.mxu1 %v8277_v57  ;;  %2209 = vmatprep.mubr.bf16.mxu1 %v12800_v1  ;;  %v8329_v57 = vld [vmem:[%s12792_s1 + $0x2fc] ss:$20 sps:$4 sm:$0xff]   ;;  %v9321_v60 = vpack.c.bf16 %v63_v56, %v56_v55  ;;  %v8368_v47 = vld [vmem:[%s12792_s1 + $0x3cc] ss:$20 sps:$4 sm:$0xff]   ;;  %v8371_v55 = vld [vmem:[%s12792_s1 + $0x414] ss:$20 sps:$4 sm:$0xff]  }
  0x2a   :  { %v8374_v56 = vld [vmem:[%s12792_s1 + $0x3f4] ss:$20 sps:$4 sm:$0xff]  }
  0x2b   :  { %1809 = vmatpush1.bf16.msra.mxu0 %v8278_v59  ;;  %v8327_v59 = vld [vmem:[%s12792_s1 + $0x2f8] ss:$20 sps:$4 sm:$0xff]  }
  0x2c   :  { %2259 = vmatpush1.bf16.msra.mxu1 %v8275_v58  ;;  %1810 = vmatprep.subr.bf16.mxu0 %v8279_v62  ;;  %v8332_v58 = vld [vmem:[%s12792_s1 + $0x2dc] ss:$20 sps:$4 sm:$0xff]   ;;  %v55_v62 = vld [vmem:[%s12793_s0 + $0xe0] sm:$0xff] }
  0x2d   :  { %2260 = vmatprep.subr.bf16.mxu1 %v8283_v63  ;;  %v62_v63 = vld [vmem:[%s12793_s0 + $0x118] sm:$0xff] }
  0x2f   :  { %7247 = vmatmul.mubr.msk.bf16.gmra.mrb[20].mxu1 %vm1763_vm0, %v9152_v0  ;;  %1811 = vmatpush1.bf16.msra.mxu0 %v8284_v3  ;;  %v8338_v3 = vld [vmem:[%s12792_s1 + $0x304] ss:$20 sps:$4 sm:$0xff]  }
  0x30   :  { %2261 = vmatpush1.bf16.msra.mxu1 %v8281_v2  ;;  %1812 = vmatprep.subr.bf16.mxu0 %v8285_v4  ;;  %v8335_v2 = vld [vmem:[%s12792_s1 + $0x324] ss:$20 sps:$4 sm:$0xff]   ;;  %v8333_v4 = vld [vmem:[%s12792_s1 + $0x320] ss:$20 sps:$4 sm:$0xff]  }
  0x31   :  { %2262 = vmatprep.subr.bf16.mxu1 %v8289_v5  ;;  %2219 = vmatprep.mubr.bf16.mxu1 %v12800_v1  ;;  %v9344_v5 = vpack.c.bf16 %v62_v63, %v55_v62  ;;  %v119_v62 = vld [vmem:[%s12793_s0 + $0x2e0] sm:$0xff]  ;;  %v8377_v63 = vld [vmem:[%s12792_s1 + $0x43c] ss:$20 sps:$4 sm:$0xff]  }
  0x33   :  { %1813 = vmatpush1.bf16.msra.mxu0 %v8290_v7  ;;  %v77_v7 = vld [vmem:[%s12793_s0 + $0x190] sm:$0xff] }
  0x34   :  { %2263 = vmatpush1.bf16.msra.mxu1 %v8287_v6  ;;  %1814 = vmatprep.subr.bf16.mxu0 %v8291_v9  ;;  %v70_v6 = vld [vmem:[%s12793_s0 + $0x158] sm:$0xff]  ;;  %v8336_v9 = vld [vmem:[%s12792_s1 + $0x300] ss:$20 sps:$4 sm:$0xff]  }
  0x35   :  { %2264 = vmatprep.subr.bf16.mxu1 %v8295_v14  ;;  %v9368_v14 = vpack.c.bf16 %v77_v7, %v70_v6  ;;  %v8378_v6 = vld [vmem:[%s12792_s1 + $0x418] ss:$20 sps:$4 sm:$0xff]   ;;  %v111_v7 = vld [vmem:[%s12793_s0 + $0x2a0] sm:$0xff] }
  0x37   :  { %7248 = vmatmul.mubr.msk.bf16.gmra.mrb[24].mxu1 %vm1763_vm0, %v9195_v16  ;;  %1815 = vmatpush1.bf16.msra.mxu0 %v8296_v18  ;;  %v76_v18 = vld [vmem:[%s12793_s0 + $0x188] sm:$0xff] }
  0x38   :  { %2265 = vmatpush1.bf16.msra.mxu1 %v8293_v17  ;;  %1816 = vmatprep.subr.bf16.mxu0 %v8297_v20  ;;  %v69_v17 = vld [vmem:[%s12793_s0 + $0x150] sm:$0xff] }
  0x39   :  { %2266 = vmatprep.subr.bf16.mxu1 %v8301_v21  ;;  %2229 = vmatprep.mubr.bf16.mxu1 %v12800_v1  ;;  %v8347_v20 = vld [vmem:[%s12792_s1 + $0x374] ss:$20 sps:$4 sm:$0xff]  }
  0x3a   :  { %v8350_v21 = vld [vmem:[%s12792_s1 + $0x354] ss:$20 sps:$4 sm:$0xff]  }
  0x3b   :  { %1817 = vmatpush1.bf16.msra.mxu0 %v8302_v23  ;;  %v84_v23 = vld [vmem:[%s12793_s0 + $0x1c8] sm:$0xff] }
  0x3c   :  { %2267 = vmatpush1.bf16.msra.mxu1 %v8299_v22  ;;  %1818 = vmatprep.subr.bf16.mxu0 %v8303_v24  ;;  %v9385_v22 = vpack.c.bf16 %v76_v18, %v69_v17  ;;  %v91_v24 = vld [vmem:[%s12793_s0 + $0x200] sm:$0xff]  ;;  %v126_v18 = vld [vmem:[%s12793_s0 + $0x318] sm:$0xff] }
  0x3d   :  { %2268 = vmatprep.subr.bf16.mxu1 %v8307_v27  ;;  %v8353_v27 = vld [vmem:[%s12792_s1 + $0x39c] ss:$20 sps:$4 sm:$0xff]   ;;  %v9412_v33 = vpack.c.bf16 %v91_v24, %v84_v23  ;;  %v8392_v23 = vld [vmem:[%s12792_s1 + $0x46c] ss:$20 sps:$4 sm:$0xff]  }
  0x3e   :  { %v8387_v24 = vld [vmem:[%s12792_s1 + $0x488] ss:$20 sps:$4 sm:$0xff]  }
  0x3f   :  { %7249 = vmatmul.mubr.msk.bf16.gmra.mrb[28].mxu1 %vm1763_vm0, %v9234_v29  ;;  %1819 = vmatpush1.bf16.msra.mxu0 %v8308_v30  ;;  %v8351_v30 = vld [vmem:[%s12792_s1 + $0x398] ss:$20 sps:$4 sm:$0xff]  }
  0x40   :  { %2269 = vmatpush1.bf16.msra.mxu1 %v8305_v28  ;;  %1901 = vmatprep.subr.bf16.mxu0 %v8311_v34  ;;  %v8356_v28 = vld [vmem:[%s12792_s1 + $0x37c] ss:$20 sps:$4 sm:$0xff]   ;;  %v83_v34 = vld [vmem:[%s12793_s0 + $0x1c0] sm:$0xff] }
  0x41   :  { %2270 = vmatprep.subr.bf16.mxu1 %v8314_v35  ;;  %2272 = vmatprep.mubr.bf16.mxu1 %v9192_v15  ;;  %v90_v35 = vld [vmem:[%s12793_s0 + $0x1f8] sm:$0xff] }
  0x42   :  { %1821 = vmatmul.mubr.bf16.vlgmr.msra.gmra.mrb[0].mxu0 %v9259_v38  ;;  %v9432_v40 = vpack.c.bf16 %v90_v35, %v83_v34  ;;  %v8393_v34 = vld [vmem:[%s12792_s1 + $0x4b0] ss:$20 sps:$4 sm:$0xff]  }
  0x43   :  { %1902 = vmatpush1.bf16.msra.mxu0 %v8309_v36  ;;  %1830 = vmatprep.mubr.bf16.mxu0 %v9274_v44  ;;  %v8359_v36 = vld [vmem:[%s12792_s1 + $0x3c4] ss:$20 sps:$4 sm:$0xff]  }
  0x44   :  { %2271 = vmatpush1.bf16.msra.mxu1 %v8312_v37  ;;  %1903 = vmatprep.subr.bf16.mxu0 %v8317_v41  ;;  %v8362_v37 = vld [vmem:[%s12792_s1 + $0x3a4] ss:$20 sps:$4 sm:$0xff]   ;;  %v8360_v41 = vld [vmem:[%s12792_s1 + $0x3a0] ss:$20 sps:$4 sm:$0xff]  }
  0x45   :  { %2353 = vmatprep.subr.bf16.mxu1 %v8320_v43  ;;  %v98_v43 = vld [vmem:[%s12793_s0 + $0x238] sm:$0xff] }
  0x47   :  { %2273 = vmatmul.mubr.bf16.vlgmr.msra.gmra.mrb[32].mxu1 %v9259_v38  ;;  %1904 = vmatpush1.bf16.msra.mxu0 %v8315_v45  ;;  %v105_v45 = vld [vmem:[%s12793_s0 + $0x270] sm:$0xff] }
  0x48   :  { %2354 = vmatpush1.bf16.msra.mxu1 %v8318_v46  ;;  %1905 = vmatprep.subr.bf16.mxu0 %v8323_v49  ;;  %v8365_v46 = vld [vmem:[%s12792_s1 + $0x3ec] ss:$20 sps:$4 sm:$0xff]   ;;  %v9453_v49 = vpack.c.bf16 %v105_v45, %v98_v43  ;;  %v8404_v43 = vld [vmem:[%s12792_s1 + $0x4bc] ss:$20 sps:$4 sm:$0xff]  }
  0x49   :  { %2355 = vmatprep.subr.bf16.mxu1 %v8326_v50  ;;  %2282 = vmatprep.mubr.bf16.mxu1 %v9274_v44  ;;  %v8366_v50 = vld [vmem:[%s12792_s1 + $0x3c8] ss:$20 sps:$4 sm:$0xff]   ;;  %v8399_v45 = vld [vmem:[%s12792_s1 + $0x4d8] ss:$20 sps:$4 sm:$0xff]  }
  0x4a   :  { %1831 = vmatmul.mubr.bf16.gmra.mrb[4].mxu0 %v9303_v54 }
  0x4b   :  { %1906 = vmatpush1.bf16.msra.mxu0 %v8321_v51  ;;  %1840 = vmatprep.mubr.bf16.mxu0 %v9321_v60  ;;  %v97_v51 = vld [vmem:[%s12793_s0 + $0x230] sm:$0xff] }
  0x4c   :  { %2356 = vmatpush1.bf16.msra.mxu1 %v8324_v52  ;;  %1907 = vmatprep.subr.bf16.mxu0 %v8329_v57  ;;  %v104_v52 = vld [vmem:[%s12793_s0 + $0x268] sm:$0xff]  ;;  %v8369_v57 = vld [vmem:[%s12792_s1 + $0x410] ss:$20 sps:$4 sm:$0xff]  }
  0x4d   :  { %2357 = vmatprep.subr.bf16.mxu1 %v8332_v58  ;;  %v8372_v58 = vld [vmem:[%s12792_s1 + $0x3f0] ss:$20 sps:$4 sm:$0xff]  }
  0x4f   :  { %2283 = vmatmul.mubr.bf16.gmra.mrb[36].mxu1 %v9303_v54  ;;  %1908 = vmatpush1.bf16.msra.mxu0 %v8327_v59  ;;  %v9479_v59 = vpack.c.bf16 %v104_v52, %v97_v51  ;;  %v8407_v51 = vld [vmem:[%s12792_s1 + $0x504] ss:$20 sps:$4 sm:$0xff]  }
  0x50   :  { %2358 = vmatpush1.bf16.msra.mxu1 %v8330_v61  ;;  %1909 = vmatprep.subr.bf16.mxu0 %v8335_v2  ;;  %v112_v61 = vld [vmem:[%s12793_s0 + $0x2a8] sm:$0xff]  ;;  %v8380_v2 = vld [vmem:[%s12792_s1 + $0x41c] ss:$20 sps:$4 sm:$0xff]   ;;  %v8410_v52 = vld [vmem:[%s12792_s1 + $0x4e4] ss:$20 sps:$4 sm:$0xff]  }
  0x51   :  { %2359 = vmatprep.subr.bf16.mxu1 %v8338_v3  ;;  %2292 = vmatprep.mubr.bf16.mxu1 %v9321_v60  ;;  %v9494_v3 = vpack.c.bf16 %v119_v62, %v112_v61  ;;  %v8408_v61 = vld [vmem:[%s12792_s1 + $0x4e0] ss:$20 sps:$4 sm:$0xff]  }
  0x52   :  { %1841 = vmatmul.mubr.bf16.gmra.mrb[8].mxu0 %v9344_v5  ;;  %v8413_v62 = vld [vmem:[%s12792_s1 + $0x52c] ss:$20 sps:$4 sm:$0xff]  }
  0x53   :  { %1910 = vmatpush1.bf16.msra.mxu0 %v8333_v4  ;;  %1850 = vmatprep.mubr.bf16.mxu0 %v9368_v14  ;;  %v8375_v4 = vld [vmem:[%s12792_s1 + $0x438] ss:$20 sps:$4 sm:$0xff]  }
  0x54   :  { %2360 = vmatpush1.bf16.msra.mxu1 %v8336_v9  ;;  %1911 = vmatprep.subr.bf16.mxu0 %v8341_v10  ;;  %v118_v9 = vld [vmem:[%s12793_s0 + $0x2d8] sm:$0xff] }
  0x55   :  { %2361 = vmatprep.subr.bf16.mxu1 %v8344_v11  ;;  %v8383_v10 = vld [vmem:[%s12792_s1 + $0x464] ss:$20 sps:$4 sm:$0xff]   ;;  %v9523_v17 = vpack.c.bf16 %v118_v9, %v111_v7 }
  0x56   :  { %v8386_v11 = vld [vmem:[%s12792_s1 + $0x444] ss:$20 sps:$4 sm:$0xff]  }
  0x57   :  { %2293 = vmatmul.mubr.bf16.gmra.mrb[40].mxu1 %v9344_v5  ;;  %1912 = vmatpush1.bf16.msra.mxu0 %v8339_v12  ;;  %v8381_v12 = vld [vmem:[%s12792_s1 + $0x460] ss:$20 sps:$4 sm:$0xff]   ;;  %v50_v9 = vld [vmem:[%s12793_s0 + $0xb8] sm:$0xff] }
  0x58   :  { %2362 = vmatpush1.bf16.msra.mxu1 %v8342_v13  ;;  %1913 = vmatprep.subr.bf16.mxu0 %v8347_v20  ;;  %v8384_v13 = vld [vmem:[%s12792_s1 + $0x440] ss:$20 sps:$4 sm:$0xff]  }
  0x59   :  { %2363 = vmatprep.subr.bf16.mxu1 %v8350_v21  ;;  %2302 = vmatprep.mubr.bf16.mxu1 %v9368_v14  ;;  %v133_v20 = vld [vmem:[%s12793_s0 + $0x350] sm:$0xff]  ;;  %v8389_v21 = vld [vmem:[%s12792_s1 + $0x48c] ss:$20 sps:$4 sm:$0xff]  }
  0x5a   :  { %1851 = vmatmul.mubr.bf16.gmra.mrb[12].mxu0 %v9385_v22  ;;  %v43_v7 = vld [vmem:[%s12793_s0 + $0x80] sm:$0xff] }
  0x5b   :  { %1914 = vmatpush1.bf16.msra.mxu0 %v8345_v25  ;;  %1860 = vmatprep.mubr.bf16.mxu0 %v9412_v33  ;;  %v9541_v25 = vpack.c.bf16 %v133_v20, %v126_v18  ;;  %v8420_v18 = vld [vmem:[%s12792_s1 + $0x530] ss:$20 sps:$4 sm:$0xff]   ;;  %v58_v20 = vld [vmem:[%s12793_s0 + $0xf8] sm:$0xff] }
  0x5c   :  { %2364 = vmatpush1.bf16.msra.mxu1 %v8348_v26  ;;  %1915 = vmatprep.subr.bf16.mxu0 %v8353_v27  ;;  %v8390_v26 = vld [vmem:[%s12792_s1 + $0x468] ss:$20 sps:$4 sm:$0xff]   ;;  %v125_v27 = vld [vmem:[%s12793_s0 + $0x310] sm:$0xff] }
  0x5d   :  { %2365 = vmatprep.subr.bf16.mxu1 %v8356_v28  ;;  %v132_v28 = vld [vmem:[%s12793_s0 + $0x348] sm:$0xff] }
  0x5e   :  { %v9564_v35 = vpack.c.bf16 %v132_v28, %v125_v27  ;;  %v8426_v28 = vld [vmem:[%s12792_s1 + $0x558] ss:$20 sps:$4 sm:$0xff]  }
  0x5f   :  { %2303 = vmatmul.mubr.bf16.gmra.mrb[44].mxu1 %v9385_v22  ;;  %1916 = vmatpush1.bf16.msra.mxu0 %v8351_v30  ;;  %v8395_v30 = vld [vmem:[%s12792_s1 + $0x4b4] ss:$20 sps:$4 sm:$0xff]  }
  0x60   :  { %2366 = vmatpush1.bf16.msra.mxu1 %v8354_v32  ;;  %1917 = vmatprep.subr.bf16.mxu0 %v8359_v36  ;;  %v8398_v32 = vld [vmem:[%s12792_s1 + $0x494] ss:$20 sps:$4 sm:$0xff]   ;;  %v30_v36 = vld [vmem:[%s12793_s0 + $0x18] sm:$0xff] }
  0x61   :  { %2367 = vmatprep.subr.bf16.mxu1 %v8362_v37  ;;  %2312 = vmatprep.mubr.bf16.mxu1 %v9412_v33  ;;  %v37_v37 = vld [vmem:[%s12793_s0 + $0x50] sm:$0xff] }
  0x62   :  { %1861 = vmatmul.mubr.bf16.gmra.mrb[16].mxu0 %v9432_v40 }
  0x63   :  { %1918 = vmatpush1.bf16.msra.mxu0 %v8357_v39  ;;  %1870 = vmatprep.mubr.bf16.mxu0 %v9453_v49  ;;  %v8396_v39 = vld [vmem:[%s12792_s1 + $0x490] ss:$20 sps:$4 sm:$0xff]  }
  0x64   :  { %2368 = vmatpush1.bf16.msra.mxu1 %v8360_v41  ;;  %1919 = vmatprep.subr.bf16.mxu0 %v8365_v46  ;;  %v8401_v41 = vld [vmem:[%s12792_s1 + $0x4dc] ss:$20 sps:$4 sm:$0xff]   ;;  %v8402_v46 = vld [vmem:[%s12792_s1 + $0x4b8] ss:$20 sps:$4 sm:$0xff]  }
  0x65   :  { %2369 = vmatprep.subr.bf16.mxu1 %v8368_v47  ;;  %v9588_v47 = vpack.c.bf16 %v37_v37, %v30_v36  ;;  %v8434_v36 = vld [vmem:[%s12792_s1 + $0x584] ss:$20 sps:$4 sm:$0xff]   ;;  %v8429_v37 = vld [vmem:[%s12792_s1 + $0x5a0] ss:$20 sps:$4 sm:$0xff]  }
  0x67   :  { %2313 = vmatmul.mubr.bf16.gmra.mrb[48].mxu1 %v9432_v40  ;;  %1920 = vmatpush1.bf16.msra.mxu0 %v8363_v48  ;;  %v29_v48 = vld [vmem:[%s12793_s0 + $0x10] sm:$0xff] }
  0x68   :  { %2370 = vmatpush1.bf16.msra.mxu1 %v8366_v50  ;;  %1921 = vmatprep.subr.bf16.mxu0 %v8371_v55  ;;  %v36_v50 = vld [vmem:[%s12793_s0 + $0x48] sm:$0xff] }
  0x69   :  { %2371 = vmatprep.subr.bf16.mxu1 %v8374_v56  ;;  %2322 = vmatprep.mubr.bf16.mxu1 %v9453_v49  ;;  %v9605_v55 = vpack.c.bf16 %v36_v50, %v29_v48  ;;  %v44_v56 = vld [vmem:[%s12793_s0 + $0x88] sm:$0xff] }
  0x6a   :  { %1871 = vmatmul.mubr.bf16.gmra.mrb[20].mxu0 %v9479_v59  ;;  %v8440_v48 = vld [vmem:[%s12792_s1 + $0x5ac] ss:$20 sps:$4 sm:$0xff]  }
  0x6b   :  { %1922 = vmatpush1.bf16.msra.mxu0 %v8369_v57  ;;  %1880 = vmatprep.mubr.bf16.mxu0 %v9494_v3  ;;  %v51_v57 = vld [vmem:[%s12793_s0 + $0xc0] sm:$0xff] }
  0x6c   :  { %2372 = vmatpush1.bf16.msra.mxu1 %v8372_v58  ;;  %1923 = vmatprep.subr.bf16.mxu0 %v8377_v63  ;;  %v8405_v58 = vld [vmem:[%s12792_s1 + $0x500] ss:$20 sps:$4 sm:$0xff]  }
  0x6d   :  { %2373 = vmatprep.subr.bf16.mxu1 %v8380_v2  ;;  %v8416_v63 = vld [vmem:[%s12792_s1 + $0x50c] ss:$20 sps:$4 sm:$0xff]   ;;  %v8411_v2 = vld [vmem:[%s12792_s1 + $0x528] ss:$20 sps:$4 sm:$0xff]  }
  0x6f   :  { %2323 = vmatmul.mubr.bf16.gmra.mrb[52].mxu1 %v9479_v59  ;;  %1924 = vmatpush1.bf16.msra.mxu0 %v8375_v4  ;;  %v8414_v4 = vld [vmem:[%s12792_s1 + $0x508] ss:$20 sps:$4 sm:$0xff]  }
  0x70   :  { %2374 = vmatpush1.bf16.msra.mxu1 %v8378_v6  ;;  %1925 = vmatprep.subr.bf16.mxu0 %v8383_v10  ;;  %v9632_v6 = vpack.c.bf16 %v51_v57, %v44_v56  ;;  %v8419_v10 = vld [vmem:[%s12792_s1 + $0x554] ss:$20 sps:$4 sm:$0xff]   ;;  %v71_v56 = vld [vmem:[%s12793_s0 + $0x160] sm:$0xff]  ;;  %v78_v57 = vld [vmem:[%s12793_s0 + $0x198] sm:$0xff] }
  0x71   :  { %2375 = vmatprep.subr.bf16.mxu1 %v8386_v11  ;;  %2332 = vmatprep.mubr.bf16.mxu1 %v9494_v3  ;;  %v8422_v11 = vld [vmem:[%s12792_s1 + $0x534] ss:$20 sps:$4 sm:$0xff]  }
  0x72   :  { %1881 = vmatmul.mubr.bf16.gmra.mrb[24].mxu0 %v9523_v17 }
  0x73   :  { %1926 = vmatpush1.bf16.msra.mxu0 %v8381_v12  ;;  %1890 = vmatprep.mubr.bf16.mxu0 %v9541_v25  ;;  %v8417_v12 = vld [vmem:[%s12792_s1 + $0x550] ss:$20 sps:$4 sm:$0xff]  }
  0x74   :  { %2376 = vmatpush1.bf16.msra.mxu1 %v8384_v13  ;;  %1927 = vmatprep.subr.bf16.mxu0 %v8389_v21  ;;  %v9652_v13 = vpack.c.bf16 %v50_v9, %v43_v7  ;;  %v65_v21 = vld [vmem:[%s12793_s0 + $0x130] sm:$0xff] }
  0x75   :  { %2377 = vmatprep.subr.bf16.mxu1 %v8392_v23  ;;  %v8425_v23 = vld [vmem:[%s12792_s1 + $0x57c] ss:$20 sps:$4 sm:$0xff]   ;;  %v9673_v27 = vpack.c.bf16 %v65_v21, %v58_v20  ;;  %v92_v21 = vld [vmem:[%s12793_s0 + $0x208] sm:$0xff] }
  0x76   :  { %v93_v7 = vld [vmem:[%s12793_s0 + $0x210] sm:$0xff] }
  0x77   :  { %2333 = vmatmul.mubr.bf16.gmra.mrb[56].mxu1 %v9523_v17  ;;  %1928 = vmatpush1.bf16.msra.mxu0 %v8387_v24  ;;  %v8428_v24 = vld [vmem:[%s12792_s1 + $0x55c] ss:$20 sps:$4 sm:$0xff]  }
  0x78   :  { %2378 = vmatpush1.bf16.msra.mxu1 %v8390_v26  ;;  %1929 = vmatprep.subr.bf16.mxu0 %v8395_v30  ;;  %v8423_v26 = vld [vmem:[%s12792_s1 + $0x578] ss:$20 sps:$4 sm:$0xff]   ;;  %v57_v30 = vld [vmem:[%s12793_s0 + $0xf0] sm:$0xff] }
  0x79   :  { %2379 = vmatprep.subr.bf16.mxu1 %v8398_v32  ;;  %2342 = vmatprep.mubr.bf16.mxu1 %v9541_v25  ;;  %v64_v32 = vld [vmem:[%s12793_s0 + $0x128] sm:$0xff]  ;;  %v8449_v9 = vld [vmem:[%s12792_s1 + $0x61c] ss:$20 sps:$4 sm:$0xff]  }
  0x7a   :  { %1891 = vmatmul.mubr.bf16.gmra.mrb[28].mxu0 %v9564_v35  ;;  %v85_v20 = vld [vmem:[%s12793_s0 + $0x1d0] sm:$0xff] }
  0x7b   :  { %1930 = vmatpush1.bf16.msra.mxu0 %v8393_v34  ;;  %1933 = vmatprep.mubr.bf16.mxu0 %v9588_v47  ;;  %v8431_v34 = vld [vmem:[%s12792_s1 + $0x5a4] ss:$20 sps:$4 sm:$0xff]  }
  0x7c   :  { %2380 = vmatpush1.bf16.msra.mxu1 %v8396_v39  ;;  %1931 = vmatprep.subr.bf16.mxu0 %v8401_v41  ;;  %v8432_v39 = vld [vmem:[%s12792_s1 + $0x580] ss:$20 sps:$4 sm:$0xff]   ;;  %v9699_v41 = vpack.c.bf16 %v64_v32, %v57_v30 }
  0x7d   :  { %2381 = vmatprep.subr.bf16.mxu1 %v8404_v43  ;;  %v72_v43 = vld [vmem:[%s12793_s0 + $0x168] sm:$0xff]  ;;  %v107_v30 = vld [vmem:[%s12793_s0 + $0x280] sm:$0xff] }
  0x7e   :  { %v8453_v32 = vld [vmem:[%s12792_s1 + $0x640] ss:$20 sps:$4 sm:$0xff]  }
  0x7f   :  { %2343 = vmatmul.mubr.bf16.gmra.mrb[60].mxu1 %v9564_v35  ;;  %1932 = vmatpush1.bf16.msra.mxu0 %v8399_v45  ;;  %v79_v45 = vld [vmem:[%s12793_s0 + $0x1a0] sm:$0xff] }
  0x80   :  { %2382 = vmatpush1.bf16.msra.mxu1 %v8402_v46  ;;  %2014 = vmatprep.subr.bf16.mxu0 %v8407_v51  ;;  %v8437_v46 = vld [vmem:[%s12792_s1 + $0x5cc] ss:$20 sps:$4 sm:$0xff]   ;;  %v9714_v50 = vpack.c.bf16 %v79_v45, %v72_v43  ;;  %v8435_v51 = vld [vmem:[%s12792_s1 + $0x5c8] ss:$20 sps:$4 sm:$0xff]  }
  0x81   :  { %2383 = vmatprep.subr.bf16.mxu1 %v8410_v52  ;;  %2385 = vmatprep.mubr.bf16.mxu1 %v9588_v47  ;;  %v8438_v52 = vld [vmem:[%s12792_s1 + $0x5a8] ss:$20 sps:$4 sm:$0xff]  }
  0x82   :  { %1934 = vmatmul.mubr.bf16.vlgmr.msra.gmra.mrb[0].mxu0 %v9605_v55  ;;  %v8459_v43 = vld [vmem:[%s12792_s1 + $0x668] ss:$20 sps:$4 sm:$0xff]  }
  0x83   :  { %2015 = vmatpush1.bf16.msra.mxu0 %v8405_v58  ;;  %1943 = vmatprep.mubr.bf16.mxu0 %v9632_v6  ;;  %v8443_v58 = vld [vmem:[%s12792_s1 + $0x5f4] ss:$20 sps:$4 sm:$0xff]  }
  0x84   :  { %2384 = vmatpush1.bf16.msra.mxu1 %v8408_v61  ;;  %2016 = vmatprep.subr.bf16.mxu0 %v8413_v62  ;;  %v8446_v61 = vld [vmem:[%s12792_s1 + $0x5d4] ss:$20 sps:$4 sm:$0xff]   ;;  %v8441_v62 = vld [vmem:[%s12792_s1 + $0x5f0] ss:$20 sps:$4 sm:$0xff]  }
  0x85   :  { %2466 = vmatprep.subr.bf16.mxu1 %v8416_v63  ;;  %v8444_v63 = vld [vmem:[%s12792_s1 + $0x5d0] ss:$20 sps:$4 sm:$0xff]   ;;  %v8462_v45 = vld [vmem:[%s12792_s1 + $0x648] ss:$20 sps:$4 sm:$0xff]  }
  0x87   :  { %2386 = vmatmul.mubr.bf16.vlgmr.msra.gmra.mrb[32].mxu1 %v9605_v55  ;;  %2017 = vmatpush1.bf16.msra.mxu0 %v8411_v2  ;;  %v9743_v2 = vpack.c.bf16 %v78_v57, %v71_v56  ;;  %v8465_v56 = vld [vmem:[%s12792_s1 + $0x690] ss:$20 sps:$4 sm:$0xff]  }
  0x88   :  { %2467 = vmatpush1.bf16.msra.mxu1 %v8414_v4  ;;  %2018 = vmatprep.subr.bf16.mxu0 %v8419_v10  ;;  %v86_v4 = vld [vmem:[%s12793_s0 + $0x1d8] sm:$0xff]  ;;  %v8468_v57 = vld [vmem:[%s12792_s1 + $0x670] ss:$20 sps:$4 sm:$0xff]  }
  0x89   :  { %2468 = vmatprep.subr.bf16.mxu1 %v8422_v11  ;;  %2395 = vmatprep.mubr.bf16.mxu1 %v9632_v6  ;;  %v8452_v10 = vld [vmem:[%s12792_s1 + $0x5fc] ss:$20 sps:$4 sm:$0xff]   ;;  %v8447_v11 = vld [vmem:[%s12792_s1 + $0x618] ss:$20 sps:$4 sm:$0xff]  }
  0x8a   :  { %1944 = vmatmul.mubr.bf16.gmra.mrb[4].mxu0 %v9652_v13 }
  0x8b   :  { %2019 = vmatpush1.bf16.msra.mxu0 %v8417_v12  ;;  %1953 = vmatprep.mubr.bf16.mxu0 %v9673_v27  ;;  %v9761_v12 = vpack.c.bf16 %v93_v7, %v86_v4  ;;  %v8476_v4 = vld [vmem:[%s12792_s1 + $0x69c] ss:$20 sps:$4 sm:$0xff]   ;;  %v8471_v7 = vld [vmem:[%s12792_s1 + $0x6b8] ss:$20 sps:$4 sm:$0xff]  }
  0x8c   :  { %2469 = vmatpush1.bf16.msra.mxu1 %v8420_v18  ;;  %2020 = vmatprep.subr.bf16.mxu0 %v8425_v23  ;;  %v8450_v18 = vld [vmem:[%s12792_s1 + $0x5f8] ss:$20 sps:$4 sm:$0xff]  }
  0x8d   :  { %2470 = vmatprep.subr.bf16.mxu1 %v8428_v24  ;;  %v8455_v23 = vld [vmem:[%s12792_s1 + $0x644] ss:$20 sps:$4 sm:$0xff]  }
  0x8e   :  { %v8458_v24 = vld [vmem:[%s12792_s1 + $0x624] ss:$20 sps:$4 sm:$0xff]  }
  0x8f   :  { %2396 = vmatmul.mubr.bf16.gmra.mrb[36].mxu1 %v9652_v13  ;;  %2021 = vmatpush1.bf16.msra.mxu0 %v8423_v26  ;;  %v9781_v26 = vpack.c.bf16 %v92_v21, %v85_v20  ;;  %v8479_v20 = vld [vmem:[%s12792_s1 + $0x6e4] ss:$20 sps:$4 sm:$0xff]  }
  0x90   :  { %2471 = vmatpush1.bf16.msra.mxu1 %v8426_v28  ;;  %2022 = vmatprep.subr.bf16.mxu0 %v8431_v34  ;;  %v100_v28 = vld [vmem:[%s12793_s0 + $0x248] sm:$0xff]  ;;  %v8456_v34 = vld [vmem:[%s12792_s1 + $0x620] ss:$20 sps:$4 sm:$0xff]   ;;  %v8482_v21 = vld [vmem:[%s12792_s1 + $0x6c4] ss:$20 sps:$4 sm:$0xff]  }
  0x91   :  { %2472 = vmatprep.subr.bf16.mxu1 %v8434_v36  ;;  %2405 = vmatprep.mubr.bf16.mxu1 %v9673_v27  ;;  %v8461_v36 = vld [vmem:[%s12792_s1 + $0x66c] ss:$20 sps:$4 sm:$0xff]  }
  0x92   :  { %1954 = vmatmul.mubr.bf16.gmra.mrb[8].mxu0 %v9699_v41 }
  0x93   :  { %2023 = vmatpush1.bf16.msra.mxu0 %v8429_v37  ;;  %1963 = vmatprep.mubr.bf16.mxu0 %v9714_v50  ;;  %v8464_v37 = vld [vmem:[%s12792_s1 + $0x64c] ss:$20 sps:$4 sm:$0xff]  }
  0x94   :  { %2473 = vmatpush1.bf16.msra.mxu1 %v8432_v39  ;;  %2024 = vmatprep.subr.bf16.mxu0 %v8437_v46  ;;  %v9802_v39 = vpack.c.bf16 %v107_v30, %v100_v28  ;;  %v99_v46 = vld [vmem:[%s12793_s0 + $0x240] sm:$0xff]  ;;  %v128_v28 = vld [vmem:[%s12793_s0 + $0x328] sm:$0xff] }
  0x95   :  { %2474 = vmatprep.subr.bf16.mxu1 %v8440_v48  ;;  %v106_v48 = vld [vmem:[%s12793_s0 + $0x278] sm:$0xff]  ;;  %v135_v30 = vld [vmem:[%s12793_s0 + $0x360] sm:$0xff] }
  0x97   :  { %2406 = vmatmul.mubr.bf16.gmra.mrb[40].mxu1 %v9699_v41  ;;  %2025 = vmatpush1.bf16.msra.mxu0 %v8435_v51  ;;  %v8467_v51 = vld [vmem:[%s12792_s1 + $0x694] ss:$20 sps:$4 sm:$0xff]  }
  0x98   :  { %2475 = vmatpush1.bf16.msra.mxu1 %v8438_v52  ;;  %2026 = vmatprep.subr.bf16.mxu0 %v8443_v58  ;;  %v8470_v52 = vld [vmem:[%s12792_s1 + $0x674] ss:$20 sps:$4 sm:$0xff]   ;;  %v114_v58 = vld [vmem:[%s12793_s0 + $0x2b8] sm:$0xff] }
  0x99   :  { %2476 = vmatprep.subr.bf16.mxu1 %v8446_v61  ;;  %2415 = vmatprep.mubr.bf16.mxu1 %v9714_v50  ;;  %v9834_v61 = vpack.c.bf16 %v106_v48, %v99_v46  ;;  %v127_v46 = vld [vmem:[%s12793_s0 + $0x320] sm:$0xff]  ;;  %v134_v48 = vld [vmem:[%s12793_s0 + $0x358] sm:$0xff] }
  0x9a   :  { %1964 = vmatmul.mubr.bf16.gmra.mrb[12].mxu0 %v9743_v2 }
  0x9b   :  { %2027 = vmatpush1.bf16.msra.mxu0 %v8441_v62  ;;  %1973 = vmatprep.mubr.bf16.mxu0 %v9761_v12  ;;  %v121_v62 = vld [vmem:[%s12793_s0 + $0x2f0] sm:$0xff] }
  0x9c   :  { %2477 = vmatpush1.bf16.msra.mxu1 %v8444_v63  ;;  %2028 = vmatprep.subr.bf16.mxu0 %v8449_v9  ;;  %v8473_v63 = vld [vmem:[%s12792_s1 + $0x6bc] ss:$20 sps:$4 sm:$0xff]   ;;  %v8474_v9 = vld [vmem:[%s12792_s1 + $0x698] ss:$20 sps:$4 sm:$0xff]  }
  0x9d   :  { %2478 = vmatprep.subr.bf16.mxu1 %v8452_v10  ;;  %v9852_v10 = vpack.c.bf16 %v121_v62, %v114_v58  ;;  %v32_v58 = vld [vmem:[%s12793_s0 + $0x28] sm:$0xff]  ;;  %v9922_v62 = vpack.c.bf16 %v134_v48, %v127_v46  ;;  %v8508_v46 = vld [vmem:[%s12792_s1 + $0x10] ss:$20 sps:$4 sm:$0xff]  }
  0x9e   :  { %v8504_v48 = vld [vmem:[%s12792_s1 + $0x788] ss:$20 sps:$4 sm:$0xff]  }
  0x9f   :  { %2416 = vmatmul.mubr.bf16.gmra.mrb[44].mxu1 %v9743_v2  ;;  %2029 = vmatpush1.bf16.msra.mxu0 %v8447_v11  ;;  %v113_v11 = vld [vmem:[%s12793_s0 + $0x2b0] sm:$0xff] }
  0xa0   :  { %2479 = vmatpush1.bf16.msra.mxu1 %v8450_v18  ;;  %2030 = vmatprep.subr.bf16.mxu0 %v8455_v23  ;;  %v120_v18 = vld [vmem:[%s12793_s0 + $0x2e8] sm:$0xff]  ;;  %v8477_v23 = vld [vmem:[%s12792_s1 + $0x6e0] ss:$20 sps:$4 sm:$0xff]  }
  0xa1   :  { %2480 = vmatprep.subr.bf16.mxu1 %v8458_v24  ;;  %2425 = vmatprep.mubr.bf16.mxu1 %v9761_v12  ;;  %v9872_v24 = vpack.c.bf16 %v120_v18, %v113_v11  ;;  %v8498_v11 = vld [vmem:[%s12792_s1 + $0x738] ss:$20 sps:$4 sm:$0xff]  }
  0xa2   :  { %1974 = vmatmul.mubr.bf16.gmra.mrb[16].mxu0 %v9781_v26 }
  0xa3   :  { %2031 = vmatpush1.bf16.msra.mxu0 %v8453_v32  ;;  %1983 = vmatprep.mubr.bf16.mxu0 %v9802_v39  ;;  %v8480_v32 = vld [vmem:[%s12792_s1 + $0x6c0] ss:$20 sps:$4 sm:$0xff]  }
  0xa4   :  { %2481 = vmatpush1.bf16.msra.mxu1 %v8456_v34  ;;  %2032 = vmatprep.subr.bf16.mxu0 %v8461_v36  ;;  %v8485_v34 = vld [vmem:[%s12792_s1 + $0x70c] ss:$20 sps:$4 sm:$0xff]  }
  0xa5   :  { %2482 = vmatprep.subr.bf16.mxu1 %v8464_v37  ;;  %v8488_v36 = vld [vmem:[%s12792_s1 + $0x6ec] ss:$20 sps:$4 sm:$0xff]   ;;  %v8483_v37 = vld [vmem:[%s12792_s1 + $0x708] ss:$20 sps:$4 sm:$0xff]  }
  0xa7   :  { %2426 = vmatmul.mubr.bf16.gmra.mrb[48].mxu1 %v9781_v26  ;;  %2033 = vmatpush1.bf16.msra.mxu0 %v8459_v43  ;;  %v8486_v43 = vld [vmem:[%s12792_s1 + $0x6e8] ss:$20 sps:$4 sm:$0xff]  }
  0xa8   :  { %2483 = vmatpush1.bf16.msra.mxu1 %v8462_v45  ;;  %2034 = vmatprep.subr.bf16.mxu0 %v8467_v51  ;;  %v9896_v45 = vpack.c.bf16 %v135_v30, %v128_v28  ;;  %v8491_v51 = vld [vmem:[%s12792_s1 + $0x734] ss:$20 sps:$4 sm:$0xff]   ;;  %v46_v28 = vld [vmem:[%s12793_s0 + $0x98] sm:$0xff] }
  0xa9   :  { %2484 = vmatprep.subr.bf16.mxu1 %v8470_v52  ;;  %2435 = vmatprep.mubr.bf16.mxu1 %v9802_v39  ;;  %v8494_v52 = vld [vmem:[%s12792_s1 + $0x714] ss:$20 sps:$4 sm:$0xff]  }
  0xaa   :  { %1984 = vmatmul.mubr.bf16.gmra.mrb[20].mxu0 %v9834_v61  ;;  %v53_v30 = vld [vmem:[%s12793_s0 + $0xd0] sm:$0xff] }
  0xab   :  { %2035 = vmatpush1.bf16.msra.mxu0 %v8465_v56  ;;  %1993 = vmatprep.mubr.bf16.mxu0 %v9852_v10  ;;  %v8489_v56 = vld [vmem:[%s12792_s1 + $0x730] ss:$20 sps:$4 sm:$0xff]  }
  0xac   :  { %2485 = vmatpush1.bf16.msra.mxu1 %v8468_v57  ;;  %2036 = vmatprep.subr.bf16.mxu0 %v8473_v63  ;;  %v8492_v57 = vld [vmem:[%s12792_s1 + $0x710] ss:$20 sps:$4 sm:$0xff]  }
  0xad   :  { %2486 = vmatprep.subr.bf16.mxu1 %v8476_v4  ;;  %v39_v63 = vld [vmem:[%s12793_s0 + $0x60] sm:$0xff]  ;;  %v8497_v4 = vld [vmem:[%s12792_s1 + $0x75c] ss:$20 sps:$4 sm:$0xff]  }
  0xae   :  { %v9940_v18 = vpack.c.bf16 %v39_v63, %v32_v58  ;;  %v67_v58 = vld [vmem:[%s12793_s0 + $0x140] sm:$0xff]  ;;  %v8510_v63 = vld [vmem:[%s12792_s1 + $0x38] ss:$20 sps:$4 sm:$0xff]  }
  0xaf   :  { %2436 = vmatmul.mubr.bf16.gmra.mrb[52].mxu1 %v9834_v61  ;;  %2037 = vmatpush1.bf16.msra.mxu0 %v8471_v7  ;;  %v8500_v7 = vld [vmem:[%s12792_s1 + $0x73c] ss:$20 sps:$4 sm:$0xff]  }
  0xb0   :  { %2487 = vmatpush1.bf16.msra.mxu1 %v8474_v9  ;;  %2038 = vmatprep.subr.bf16.mxu0 %v8479_v20  ;;  %v8495_v9 = vld [vmem:[%s12792_s1 + $0x758] ss:$20 sps:$4 sm:$0xff]   ;;  %v31_v20 = vld [vmem:[%s12793_s0 + $0x20] sm:$0xff] }
  0xb1   :  { %2488 = vmatprep.subr.bf16.mxu1 %v8482_v21  ;;  %2445 = vmatprep.mubr.bf16.mxu1 %v9852_v10  ;;  %v38_v21 = vld [vmem:[%s12793_s0 + $0x58] sm:$0xff] }
  0xb2   :  { %1994 = vmatmul.mubr.bf16.gmra.mrb[24].mxu0 %v9872_v24 }
  0xb3   :  { %2039 = vmatpush1.bf16.msra.mxu0 %v8477_v23  ;;  %2003 = vmatprep.mubr.bf16.mxu0 %v9896_v45  ;;  %v8503_v23 = vld [vmem:[%s12792_s1 + $0x764] ss:$20 sps:$4 sm:$0xff]  }
  0xb4   :  { %2489 = vmatpush1.bf16.msra.mxu1 %v8480_v32  ;;  %2040 = vmatprep.subr.bf16.mxu0 %v8485_v34  ;;  %v8507_v32 = vld [vmem:[%s12792_s1 + $0x150] ss:$20 sps:$4 sm:$0xff]   ;;  %v9963_v34 = vpack.c.bf16 %v38_v21, %v31_v20  ;;  %v8512_v20 = vld [vmem:[%s12792_s1 + $0x60] ss:$20 sps:$4 sm:$0xff]  }
  0xb5   :  { %2490 = vmatprep.subr.bf16.mxu1 %v8488_v36  ;;  %v8501_v36 = vld [vmem:[%s12792_s1 + $0x760] ss:$20 sps:$4 sm:$0xff]  }
  0xb6   :  { %v59_v21 = vld [vmem:[%s12793_s0 + $0x100] sm:$0xff] }
  0xb7   :  { %2446 = vmatmul.mubr.bf16.gmra.mrb[56].mxu1 %v9872_v24  ;;  %2041 = vmatpush1.bf16.msra.mxu0 %v8483_v37  ;;  %v8506_v37 = vld [vmem:[%s12792_s1 + $0x78c] ss:$20 sps:$4 sm:$0xff]  }
  0xb8   :  { %2491 = vmatpush1.bf16.msra.mxu1 %v8486_v43  ;;  %2042 = vmatprep.subr.bf16.mxu0 %v8491_v51  ;;  %v9971_v43 = vpack.c.bf16 %v53_v30, %v46_v28  ;;  %v45_v51 = vld [vmem:[%s12793_s0 + $0x90] sm:$0xff]  ;;  %v8513_v28 = vld [vmem:[%s12792_s1 + $0x1c8] ss:$20 sps:$4 sm:$0xff]  }
  0xb9   :  { %2492 = vmatprep.subr.bf16.mxu1 %v8494_v52  ;;  %2455 = vmatprep.mubr.bf16.mxu1 %v9896_v45  ;;  %v52_v52 = vld [vmem:[%s12793_s0 + $0xc8] sm:$0xff]  ;;  %v74_v30 = vld [vmem:[%s12793_s0 + $0x178] sm:$0xff] }
  0xba   :  { %2004 = vmatmul.mubr.bf16.gmra.mrb[28].mxu0 %v9922_v62 }
  0xbb   :  { %2043 = vmatpush1.bf16.msra.mxu0 %v8489_v56  ;;  %2046 = vmatprep.mubr.bf16.mxu0 %v9940_v18  ;;  %v8509_v56 = vld [vmem:[%s12792_s1 + $0x178] ss:$20 sps:$4 sm:$0xff]  }
  0xbc   :  { %2493 = vmatpush1.bf16.msra.mxu1 %v8492_v57  ;;  %2044 = vmatprep.subr.bf16.mxu0 %v8497_v4  ;;  %v60_v57 = vld [vmem:[%s12793_s0 + $0x108] sm:$0xff]  ;;  %v8523_v4 = vld [vmem:[%s12792_s1 + $0x3d0] ss:$20 sps:$4 sm:$0xff]  }
  0xbd   :  { %2494 = vmatprep.subr.bf16.mxu1 %v8500_v7  ;;  %v8511_v7 = vld [vmem:[%s12792_s1 + $0x1a0] ss:$20 sps:$4 sm:$0xff]  }
  0xbf   :  { %2456 = vmatmul.mubr.bf16.gmra.mrb[60].mxu1 %v9922_v62  ;;  %2045 = vmatpush1.bf16.msra.mxu0 %v8495_v9  ;;  %v10007_v9 = vpack.c.bf16 %v52_v52, %v45_v51  ;;  %v8516_v51 = vld [vmem:[%s12792_s1 + $0xb0] ss:$20 sps:$4 sm:$0xff]  }
  0xc0   :  { %2495 = vmatpush1.bf16.msra.mxu1 %v8498_v11  ;;  %2498 = vmatprep.mubr.bf16.mxu1 %v9940_v18  ;;  %v10010_v11 = vpack.c.bf16 %v67_v58, %v60_v57  ;;  %v73_v52 = vld [vmem:[%s12793_s0 + $0x170] sm:$0xff]  ;;  %v8517_v57 = vld [vmem:[%s12792_s1 + $0x218] ss:$20 sps:$4 sm:$0xff]  }
  0xc1   :  { %2496 = vmatprep.subr.bf16.mxu1 %v8503_v23  ;;  %7548 = vmatprep.subr.bf16.mxu0 %v8507_v32  ;;  %v66_v23 = vld [vmem:[%s12793_s0 + $0x138] sm:$0xff]  ;;  %v81_v32 = vld [vmem:[%s12793_s0 + $0x1b0] sm:$0xff]  ;;  %v88_v58 = vld [vmem:[%s12793_s0 + $0x1e8] sm:$0xff] }
  0xc2   :  { %2047 = vmatmul.mubr.bf16.vlgmr.msra.gmra.mrb[0].mxu0 %v9963_v34 }
  0xc3   :  { %2056 = vmatprep.mubr.bf16.mxu0 %v9971_v43  ;;  %7549 = vmatpush3.bf16.msra.mxu0 %v8508_v46  ;;  %v10039_v46 = vpack.c.bf16 %v66_v23, %v59_v21  ;;  %v8520_v23 = vld [vmem:[%s12792_s1 + $0x100] ss:$20 sps:$4 sm:$0xff]  }
  0xc4   :  { %2497 = vmatpush1.bf16.msra.mxu1 %v8501_v36  ;;  %7550 = vmatprep.subr.bf16.mxu0 %v8509_v56  ;;  %v8514_v36 = vld [vmem:[%s12792_s1 + $0x88] ss:$20 sps:$4 sm:$0xff]  }
  0xc5   :  { %2579 = vmatprep.subr.bf16.mxu1 %v8506_v37  ;;  %v8515_v37 = vld [vmem:[%s12792_s1 + $0x1f0] ss:$20 sps:$4 sm:$0xff]   ;;  %v80_v56 = vld [vmem:[%s12793_s0 + $0x1a8] sm:$0xff] }
  0xc7   :  { %2499 = vmatmul.mubr.bf16.vlgmr.msra.gmra.mrb[32].mxu1 %v9963_v34  ;;  %7551 = vmatpush3.bf16.msra.mxu0 %v8510_v63  ;;  %v95_v63 = vld [vmem:[%s12793_s0 + $0x220] sm:$0xff] }
  0xc8   :  { %2580 = vmatpush1.bf16.msra.mxu1 %v8504_v48  ;;  %2508 = vmatprep.mubr.bf16.mxu1 %v9971_v43  ;;  %v10042_v48 = vpack.c.bf16 %v81_v32, %v74_v30  ;;  %v10074_v21 = vpack.c.bf16 %v95_v63, %v88_v58  ;;  %v8521_v30 = vld [vmem:[%s12792_s1 + $0x268] ss:$20 sps:$4 sm:$0xff]   ;;  %v8533_v63 = vld [vmem:[%s12792_s1 + $0x650] ss:$20 sps:$4 sm:$0xff]  }
  0xc9   :  { %7612 = vmatprep.subr.bf16.mxu1 %v8523_v4  ;;  %7552 = vmatprep.subr.bf16.mxu0 %v8511_v7  ;;  %v8518_v4 = vld [vmem:[%s12792_s1 + $0xd8] ss:$20 sps:$4 sm:$0xff]   ;;  %v8519_v7 = vld [vmem:[%s12792_s1 + $0x240] ss:$20 sps:$4 sm:$0xff]   ;;  %v8522_v58 = vld [vmem:[%s12792_s1 + $0x128] ss:$20 sps:$4 sm:$0xff]  }
  0xca   :  { %2057 = vmatmul.mubr.bf16.gmra.mrb[4].mxu0 %v10007_v9 }
  0xcb   :  { %2066 = vmatprep.mubr.bf16.mxu0 %v10010_v11  ;;  %7553 = vmatpush3.bf16.msra.mxu0 %v8512_v20  ;;  %v10071_v20 = vpack.c.bf16 %v80_v56, %v73_v52  ;;  %v102_v56 = vld [vmem:[%s12793_s0 + $0x258] sm:$0xff] }
  0xcc   :  { %7554 = vmatprep.subr.bf16.mxu0 %v8513_v28 }
  0xcf   :  { %2509 = vmatmul.mubr.bf16.gmra.mrb[36].mxu1 %v10007_v9  ;;  %7555 = vmatpush3.bf16.msra.mxu0 %v8514_v36 }
  0xd0   :  { %2518 = vmatprep.mubr.bf16.mxu1 %v10010_v11  ;;  %7556 = vmatprep.subr.bf16.mxu0 %v8515_v37  ;;  %v87_v37 = vld [vmem:[%s12793_s0 + $0x1e0] sm:$0xff] }
  0xd2   :  { %2067 = vmatmul.mubr.bf16.gmra.mrb[8].mxu0 %v10039_v46 }
  0xd3   :  { %2076 = vmatprep.mubr.bf16.mxu0 %v10042_v48  ;;  %7557 = vmatpush3.bf16.msra.mxu0 %v8516_v51  ;;  %v94_v51 = vld [vmem:[%s12793_s0 + $0x218] sm:$0xff] }
  0xd4   :  { %7558 = vmatprep.subr.bf16.mxu0 %v8517_v57  ;;  %v109_v57 = vld [vmem:[%s12793_s0 + $0x290] sm:$0xff] }
  0xd7   :  { %2519 = vmatmul.mubr.bf16.gmra.mrb[40].mxu1 %v10039_v46  ;;  %7559 = vmatpush3.bf16.msra.mxu0 %v8518_v4  ;;  %v10111_v4 = vpack.c.bf16 %v94_v51, %v87_v37  ;;  %v101_v37 = vld [vmem:[%s12793_s0 + $0x250] sm:$0xff]  ;;  %v108_v51 = vld [vmem:[%s12793_s0 + $0x288] sm:$0xff] }
  0xd8   :  { %2528 = vmatprep.mubr.bf16.mxu1 %v10042_v48  ;;  %7560 = vmatprep.subr.bf16.mxu0 %v8519_v7  ;;  %v10114_v7 = vpack.c.bf16 %v109_v57, %v102_v56  ;;  %v116_v57 = vld [vmem:[%s12793_s0 + $0x2c8] sm:$0xff] }
  0xda   :  { %v10079_v28 = vpop.f32.mrb[0].mxu1  ;;  %2077 = vmatmul.mubr.bf16.gmra.mrb[12].mxu0 %v10071_v20 }
  0xdb   :  { %12881 = vst [vmem:[#allocation2_spill] sm:$0xff] %v10079_v28  ;;  %v10085_v32 = vpop.f32.mrb[1].mxu1  ;;  %2086 = vmatprep.mubr.bf16.mxu0 %v10074_v21  ;;  %7561 = vmatpush3.bf16.msra.mxu0 %v8520_v23  ;;  %v8525_v28 = vld [vmem:[%s12792_s1 + $0x3f8] ss:$20 sps:$4 sm:$0xff]  }
  0xdc   :  { %12882 = vst [vmem:[#allocation3_spill] sm:$0xff] %v10085_v32  ;;  %v10087_v36 = vpop.f32.mrb[2].mxu1  ;;  %7562 = vmatprep.subr.bf16.mxu0 %v8521_v30  ;;  %v129_v32 = vld [vmem:[%s12793_s0 + $0x330] sm:$0xff] }
  0xdd   :  { %12883 = vst [vmem:[#allocation4_spill] sm:$0xff] %v10087_v36  ;;  %v10096_v52 = vpop.f32.mrb[3].mxu1 }
  0xde   :  { %12884 = vst [vmem:[#allocation5_spill] sm:$0xff] %v10096_v52  ;;  %v115_v52 = vld [vmem:[%s12793_s0 + $0x2c0] sm:$0xff] }
  0xdf   :  { %2529 = vmatmul.mubr.bf16.gmra.mrb[44].mxu1 %v10071_v20  ;;  %7563 = vmatpush3.bf16.msra.mxu0 %v8522_v58  ;;  %v123_v58 = vld [vmem:[%s12793_s0 + $0x300] sm:$0xff] }
  0xe0   :  { %2538 = vmatprep.mubr.bf16.mxu1 %v10074_v21  ;;  %7676 = vmatprep.subr.bf16.mxu0 %v8533_v63  ;;  %v10139_v63 = vpack.c.bf16 %v108_v51, %v101_v37  ;;  %v122_v37 = vld [vmem:[%s12793_s0 + $0x2f8] sm:$0xff] }
  0xe2   :  { %v10116_v1 = vpop.f32.mrb[4].mxu1  ;;  %2087 = vmatmul.mubr.bf16.gmra.mrb[16].mxu0 %v10111_v4 }
  0xe3   :  { %12885 = vst [vmem:[#allocation6_spill] sm:$0xff] %v10116_v1  ;;  %v10119_v23 = vpop.f32.mrb[5].mxu1  ;;  %2096 = vmatprep.mubr.bf16.mxu0 %v10114_v7 }
  0xe4   :  { %12886 = vst [vmem:[#allocation7_spill] sm:$0xff] %v10119_v23  ;;  %v10121_v30 = vpop.f32.mrb[6].mxu1 }
  0xe5   :  { %12887 = vst [vmem:[#allocation8_spill] sm:$0xff] %v10121_v30  ;;  %v10130_v56 = vpop.f32.mrb[7].mxu1  ;;  %v10142_v30 = vpack.c.bf16 %v123_v58, %v116_v57  ;;  %v130_v57 = vld [vmem:[%s12793_s0 + $0x338] sm:$0xff]  ;;  %v137_v58 = vld [vmem:[%s12793_s0 + $0x370] sm:$0xff] }
  0xe6   :  { %12888 = vst [vmem:[#allocation9_spill] sm:$0xff] %v10130_v56 }
  0xe7   :  { %2539 = vmatmul.mubr.bf16.gmra.mrb[48].mxu1 %v10111_v4 }
  0xe8   :  { %2548 = vmatprep.mubr.bf16.mxu1 %v10114_v7 }
  0xea   :  { %v10144_v23 = vpop.f32.mrb[8].mxu1  ;;  %2097 = vmatmul.mubr.bf16.gmra.mrb[20].mxu0 %v10139_v63 }
  0xeb   :  { %12889 = vst [vmem:[#allocation10_spill] sm:$0xff] %v10144_v23  ;;  %v10147_v56 = vpop.f32.mrb[9].mxu1  ;;  %2106 = vmatprep.mubr.bf16.mxu0 %v10142_v30 }
  0xec   :  { %12890 = vst [vmem:[#allocation11_spill] sm:$0xff] %v10147_v56  ;;  %v10149_v1 = vpop.f32.mrb[10].mxu1  ;;  %v10170_v56 = vpack.c.bf16 %v137_v58, %v130_v57 }
  0xed   :  { %12891 = vst [vmem:[#allocation12_spill] sm:$0xff] %v10149_v1  ;;  %v10158_v51 = vpop.f32.mrb[11].mxu1  ;;  %v10167_v1 = vpack.c.bf16 %v122_v37, %v115_v52  ;;  %v136_v52 = vld [vmem:[%s12793_s0 + $0x368] sm:$0xff] }
  0xee   :  { %12892 = vst [vmem:[#allocation13_spill] sm:$0xff] %v10158_v51  ;;  %v10189_v57 = vpack.c.bf16 %v136_v52, %v129_v32  ;;  %v8534_v32 = vld [vmem:[%s12792_s1 + $0x510] ss:$20 sps:$4 sm:$0xff]   ;;  %v8535_v52 = vld [vmem:[%s12792_s1 + $0x678] ss:$20 sps:$4 sm:$0xff]  }
  0xef   :  { %2549 = vmatmul.mubr.bf16.gmra.mrb[52].mxu1 %v10139_v63 }
  0xf0   :  { %2558 = vmatprep.mubr.bf16.mxu1 %v10142_v30 }
  0xf2   :  { %v10172_v23 = vpop.f32.mrb[12].mxu1  ;;  %2107 = vmatmul.mubr.bf16.gmra.mrb[24].mxu0 %v10167_v1 }
  0xf3   :  { %12893 = vst [vmem:[#allocation14_spill] sm:$0xff] %v10172_v23  ;;  %v10175_v51 = vpop.f32.mrb[13].mxu1  ;;  %2116 = vmatprep.mubr.bf16.mxu0 %v10170_v56 }
  0xf4   :  { %12894 = vst [vmem:[#allocation15_spill] sm:$0xff] %v10175_v51  ;;  %v10177_v36 = vpop.f32.mrb[14].mxu1 }
  0xf5   :  { %12895 = vst [vmem:[#allocation16_spill] sm:$0xff] %v10177_v36  ;;  %v10186_v37 = vpop.f32.mrb[15].mxu1 }
  0xf6   :  { %12896 = vst [vmem:[#allocation17_spill] sm:$0xff] %v10186_v37  ;;  %v12901_v37 = vmov 0  }
  0xf7   :  { %2559 = vmatmul.mubr.bf16.gmra.mrb[56].mxu1 %v10167_v1 }
  0xf8   :  { %2568 = vmatprep.mubr.bf16.mxu1 %v10170_v56 }
  0xfa   :  { %v10192_v58 = vpop.f32.mrb[16].mxu1  ;;  %2117 = vmatmul.mubr.bf16.gmra.mrb[28].mxu0 %v10189_v57 }
  0xfb   :  { %12897 = vst [vmem:[#allocation18_spill] sm:$0xff] %v10192_v58  ;;  %v10195_v36 = vpop.f32.mrb[17].mxu1  ;;  %2724 = vmatprep.mubr.bf16.mxu0 %v9192_v15 }
  0xfc   :  { %12898 = vst [vmem:[#allocation19_spill] sm:$0xff] %v10195_v36  ;;  %v10197_v51 = vpop.f32.mrb[18].mxu1 }
  0xfd   :  { %12899 = vst [vmem:[#allocation20_spill] sm:$0xff] %v10197_v51  ;;  %v10200_v23 = vpop.f32.mrb[19].mxu1 }
  0xfe   :  { %12900 = vst [vmem:[#allocation21_spill] sm:$0xff] %v10200_v23  ;;  %v8524_v23 = vld [vmem:[%s12792_s1 + $0x290] ss:$20 sps:$4 sm:$0xff]  }
  0xff   :  { %2569 = vmatmul.mubr.bf16.gmra.mrb[60].mxu1 %v10189_v57 }
 0x100   :  { %2611 = vmatprep.mubr.bf16.mxu1 %v12901_v37 }
 0x102   :  { %v10210_v58 = vpop.f32.mrb[20].mxu1  ;;  %2725 = vmatmul.mubr.bf16.vlgmr.msra.gmra.mrb[32].mxu0 %v9259_v38  ;;  %v8536_v38 = vld [vmem:[%s12792_s1 + $0x538] ss:$20 sps:$4 sm:$0xff]  }
 0x103   :  { %12902 = vst [vmem:[#allocation22_spill] sm:$0xff] %v10210_v58  ;;  %v10212_v36 = vpop.f32.mrb[21].mxu1  ;;  %2732 = vmatprep.mubr.bf16.mxu0 %v9274_v44  ;;  %7677 = vmatpush3.bf16.msra.mxu0 %v8534_v32  ;;  %v8526_v44 = vld [vmem:[%s12792_s1 + $0x2b8] ss:$20 sps:$4 sm:$0xff]   ;;  %v8527_v32 = vld [vmem:[%s12792_s1 + $0x420] ss:$20 sps:$4 sm:$0xff]  }
 0x104   :  { %12903 = vst [vmem:[#allocation23_spill] sm:$0xff] %v10212_v36  ;;  %v10215_v15 = vpop.f32.mrb[22].mxu1  ;;  %7678 = vmatprep.subr.bf16.mxu0 %v8535_v52  ;;  %v8540_v52 = vld [vmem:[%s12792_s1 + $0x560] ss:$20 sps:$4 sm:$0xff]  }
 0x105   :  { %12904 = vst [vmem:[#allocation24_spill] sm:$0xff] %v10215_v15  ;;  %v10221_v51 = vpop.f32.mrb[23].mxu1  ;;  %v8539_v15 = vld [vmem:[%s12792_s1 + $0x6a0] ss:$20 sps:$4 sm:$0xff]  }
 0x106   :  { %12905 = vst [vmem:[#allocation25_spill] sm:$0xff] %v10221_v51 }
 0x107   :  { %7250 = vmatmul.mubr.msk.bf16.vlgmr.msra.gmra.mrb[32].mxu1 %vm1763_vm0, %v8974_v8  ;;  %7679 = vmatpush3.bf16.msra.mxu0 %v8536_v38  ;;  %v8528_v38 = vld [vmem:[%s12792_s1 + $0x2e0] ss:$20 sps:$4 sm:$0xff]  }
 0x108   :  { %7613 = vmatpush3.bf16.msra.mxu1 %v8524_v23  ;;  %2621 = vmatprep.mubr.bf16.mxu1 %v12901_v37  ;;  %v8541_v23 = vld [vmem:[%s12792_s1 + $0x6c8] ss:$20 sps:$4 sm:$0xff]  }
 0x109   :  { %7614 = vmatprep.subr.bf16.mxu1 %v8525_v28  ;;  %7680 = vmatprep.subr.bf16.mxu0 %v8539_v15  ;;  %v8529_v15 = vld [vmem:[%s12792_s1 + $0x448] ss:$20 sps:$4 sm:$0xff]  }
 0x10a   :  { %v10244_v51 = vpop.f32.mrb[24].mxu1  ;;  %2733 = vmatmul.mubr.bf16.gmra.mrb[36].mxu0 %v9303_v54  ;;  %v8542_v54 = vld [vmem:[%s12792_s1 + $0x588] ss:$20 sps:$4 sm:$0xff]  }
 0x10b   :  { %v10249_v36 = vpop.f32.mrb[25].mxu1  ;;  %2740 = vmatprep.mubr.bf16.mxu0 %v9321_v60  ;;  %7681 = vmatpush3.bf16.msra.mxu0 %v8540_v52  ;;  %v8545_v60 = vld [vmem:[%s12792_s1 + $0x6f0] ss:$20 sps:$4 sm:$0xff]  }
 0x10c   :  { %v10252_v28 = vpop.f32.mrb[26].mxu1  ;;  %7615 = vmatpush3.bf16.msra.mxu1 %v8526_v44  ;;  %7682 = vmatprep.subr.bf16.mxu0 %v8541_v23  ;;  %v8530_v44 = vld [vmem:[%s12792_s1 + $0x308] ss:$20 sps:$4 sm:$0xff]   ;;  %v8546_v52 = vld [vmem:[%s12792_s1 + $0x5b0] ss:$20 sps:$4 sm:$0xff]  }
 0x10d   :  { %12906 = vst [vmem:[#allocation26_spill] sm:$0xff] %v10252_v28  ;;  %v10258_v58 = vpop.f32.mrb[27].mxu1  ;;  %7616 = vmatprep.subr.bf16.mxu1 %v8527_v32  ;;  %v8531_v32 = vld [vmem:[%s12792_s1 + $0x470] ss:$20 sps:$4 sm:$0xff]  }
 0x10e   :  { %12907 = vst [vmem:[#allocation27_spill] sm:$0xff] %v10258_v58 }
 0x10f   :  { %7251 = vmatmul.mubr.msk.bf16.gmra.mrb[36].mxu1 %vm1763_vm0, %v9009_v19  ;;  %7683 = vmatpush3.bf16.msra.mxu0 %v8542_v54  ;;  %v8532_v54 = vld [vmem:[%s12792_s1 + $0x330] ss:$20 sps:$4 sm:$0xff]  }
 0x110   :  { %2631 = vmatprep.mubr.bf16.mxu1 %v12901_v37  ;;  %7617 = vmatpush3.bf16.msra.mxu1 %v8528_v38  ;;  %v8547_v38 = vld [vmem:[%s12792_s1 + $0x718] ss:$20 sps:$4 sm:$0xff]  }
 0x111   :  { %7618 = vmatprep.subr.bf16.mxu1 %v8529_v15  ;;  %7684 = vmatprep.subr.bf16.mxu0 %v8545_v60  ;;  %v8537_v60 = vld [vmem:[%s12792_s1 + $0x498] ss:$20 sps:$4 sm:$0xff]  }
 0x112   :  { %v10281_v23 = vpop.f32.mrb[28].mxu1  ;;  %2741 = vmatmul.mubr.bf16.gmra.mrb[40].mxu0 %v9344_v5  ;;  %v8548_v5 = vld [vmem:[%s12792_s1 + $0x5d8] ss:$20 sps:$4 sm:$0xff]  }
 0x113   :  { %v10286_v58 = vpop.f32.mrb[29].mxu1  ;;  %2748 = vmatprep.mubr.bf16.mxu0 %v9368_v14  ;;  %7685 = vmatpush3.bf16.msra.mxu0 %v8546_v52  ;;  %v8551_v14 = vld [vmem:[%s12792_s1 + $0x740] ss:$20 sps:$4 sm:$0xff]  }
 0x114   :  { %v10289_v15 = vpop.f32.mrb[30].mxu1  ;;  %7619 = vmatpush3.bf16.msra.mxu1 %v8530_v44  ;;  %7686 = vmatprep.subr.bf16.mxu0 %v8547_v38  ;;  %v8538_v44 = vld [vmem:[%s12792_s1 + $0x358] ss:$20 sps:$4 sm:$0xff]   ;;  %v8552_v52 = vld [vmem:[%s12792_s1 + $0x600] ss:$20 sps:$4 sm:$0xff]  }
 0x115   :  { %v10295_v28 = vpop.f32.mrb[31].mxu1  ;;  %7620 = vmatprep.subr.bf16.mxu1 %v8531_v32  ;;  %v8543_v32 = vld [vmem:[%s12792_s1 + $0x4c0] ss:$20 sps:$4 sm:$0xff]   ;;  %v8553_v38 = vld [vmem:[%s12792_s1 + $0x768] ss:$20 sps:$4 sm:$0xff]  }
 0x117   :  { %7252 = vmatmul.mubr.msk.bf16.gmra.mrb[40].mxu1 %vm1763_vm0, %v9047_v31  ;;  %7687 = vmatpush3.bf16.msra.mxu0 %v8548_v5  ;;  %v8554_v5 = vld [vmem:[%s12792_s1 + $0x628] ss:$20 sps:$4 sm:$0xff]  }
 0x118   :  { %2641 = vmatprep.mubr.bf16.mxu1 %v12901_v37  ;;  %7621 = vmatpush3.bf16.msra.mxu1 %v8532_v54  ;;  %v8544_v54 = vld [vmem:[%s12792_s1 + $0x380] ss:$20 sps:$4 sm:$0xff]  }
 0x119   :  { %7622 = vmatprep.subr.bf16.mxu1 %v8537_v60  ;;  %7688 = vmatprep.subr.bf16.mxu0 %v8551_v14  ;;  %v8549_v60 = vld [vmem:[%s12792_s1 + $0x4e8] ss:$20 sps:$4 sm:$0xff]  }
 0x11a   :  { %2749 = vmatmul.mubr.bf16.gmra.mrb[44].mxu0 %v9385_v22  ;;  %v8550_v22 = vld [vmem:[%s12792_s1 + $0x3a8] ss:$20 sps:$4 sm:$0xff]  }
 0x11b   :  { %2756 = vmatprep.mubr.bf16.mxu0 %v9412_v33  ;;  %7689 = vmatpush3.bf16.msra.mxu0 %v8552_v52  ;;  %v8555_v33 = vld [vmem:[%s12792_s1 + $0x790] ss:$20 sps:$4 sm:$0xff]  }
 0x11c   :  { %7623 = vmatpush3.bf16.msra.mxu1 %v8538_v44  ;;  %7690 = vmatprep.subr.bf16.mxu0 %v8553_v38 }
 0x11d   :  { %7624 = vmatprep.subr.bf16.mxu1 %v8543_v32  ;;  %v12935_v32 = vld [vmem:[#allocation18_spill] sm:$0xff] }
 0x11f   :  { %7253 = vmatmul.mubr.msk.bf16.gmra.mrb[44].mxu1 %vm1763_vm0, %v9082_v42  ;;  %7691 = vmatpush3.bf16.msra.mxu0 %v8554_v5 }
 0x120   :  { %2651 = vmatprep.mubr.bf16.mxu1 %v12901_v37  ;;  %7625 = vmatpush3.bf16.msra.mxu1 %v8544_v54  ;;  %v12937_v54 = vld [vmem:[#allocation19_spill] sm:$0xff] }
 0x121   :  { %7626 = vmatprep.subr.bf16.mxu1 %v8549_v60 }
 0x122   :  { %2757 = vmatmul.mubr.bf16.gmra.mrb[48].mxu0 %v9432_v40  ;;  %v12908_v40 = vld [vmem:[#allocation2_spill] sm:$0xff] }
 0x123   :  { %2764 = vmatprep.mubr.bf16.mxu0 %v9453_v49 }
 0x124   :  { %7627 = vmatpush3.bf16.msra.mxu1 %v8550_v22  ;;  %v12939_v22 = vld [vmem:[#allocation20_spill] sm:$0xff] }
 0x125   :  { %7764 = vmatprep.subr.bf16.mxu1 %v8555_v33 }
 0x127   :  { %7254 = vmatmul.mubr.msk.bf16.gmra.mrb[48].mxu1 %vm1763_vm0, %v9117_v53 }
 0x128   :  { %2661 = vmatprep.mubr.bf16.mxu1 %v12901_v37 }
 0x12a   :  { %2765 = vmatmul.mubr.bf16.gmra.mrb[52].mxu0 %v9479_v59 }
 0x12b   :  { %2772 = vmatprep.mubr.bf16.mxu0 %v9494_v3 }
 0x12f   :  { %7255 = vmatmul.mubr.msk.bf16.gmra.mrb[52].mxu1 %vm1763_vm0, %v9152_v0 }
 0x130   :  { %2671 = vmatprep.mubr.bf16.mxu1 %v12901_v37 }
 0x132   :  { %2773 = vmatmul.mubr.bf16.gmra.mrb[56].mxu0 %v9523_v17 }
 0x133   :  { %2780 = vmatprep.mubr.bf16.mxu0 %v9541_v25 }
 0x137   :  { %7256 = vmatmul.mubr.msk.bf16.gmra.mrb[56].mxu1 %vm1763_vm0, %v9195_v16 }
 0x138   :  { %2681 = vmatprep.mubr.bf16.mxu1 %v12901_v37 }
 0x13a   :  { %2781 = vmatmul.mubr.bf16.gmra.mrb[60].mxu0 %v9564_v35 }
 0x13b   :  { %2918 = vmatprep.mubr.bf16.mxu0 %v9940_v18 }
 0x13f   :  { %7257 = vmatmul.mubr.msk.bf16.gmra.mrb[60].mxu1 %vm1763_vm0, %v9234_v29 }
 0x140   :  { %2821 = vmatprep.mubr.bf16.mxu1 %v9588_v47  ;;  %v12913_v47 = vld [vmem:[#allocation6_spill] sm:$0xff] }
 0x142   :  { %2919 = vmatmul.mubr.bf16.vlgmr.msra.gmra.mrb[64].mxu0 %v9963_v34 }
 0x143   :  { %2926 = vmatprep.mubr.bf16.mxu0 %v9971_v43  ;;  %v12925_v43 = vld [vmem:[#allocation13_spill] sm:$0xff] }
 0x147   :  { %2822 = vmatmul.mubr.bf16.vlgmr.msra.gmra.mrb[64].mxu1 %v9605_v55 }
 0x148   :  { %7765 = vmatpush3.bf16.msra.mxu1 %v8555_v33  ;;  %2829 = vmatprep.mubr.bf16.mxu1 %v9632_v6 }
 0x14a   :  { %2927 = vmatmul.mubr.bf16.gmra.mrb[68].mxu0 %v10007_v9 }
 0x14b   :  { %2934 = vmatprep.mubr.bf16.mxu0 %v10010_v11 }
 0x14f   :  { %2830 = vmatmul.mubr.bf16.gmra.mrb[68].mxu1 %v9652_v13 }
 0x150   :  { %2837 = vmatprep.mubr.bf16.mxu1 %v9673_v27 }
 0x152   :  { %2935 = vmatmul.mubr.bf16.gmra.mrb[72].mxu0 %v10039_v46  ;;  %v12927_v46 = vld [vmem:[#allocation14_spill] sm:$0xff] }
 0x153   :  { %2942 = vmatprep.mubr.bf16.mxu0 %v10042_v48 }
 0x157   :  { %2838 = vmatmul.mubr.bf16.gmra.mrb[72].mxu1 %v9699_v41 }
 0x158   :  { %2845 = vmatprep.mubr.bf16.mxu1 %v9714_v50 }
 0x15a   :  { %2943 = vmatmul.mubr.bf16.gmra.mrb[76].mxu0 %v10071_v20 }
 0x15b   :  { %2950 = vmatprep.mubr.bf16.mxu0 %v10074_v21  ;;  %v12929_v21 = vld [vmem:[#allocation15_spill] sm:$0xff] }
 0x15f   :  { %2846 = vmatmul.mubr.bf16.gmra.mrb[76].mxu1 %v9743_v2  ;;  %v12918_v2 = vld [vmem:[#allocation9_spill] sm:$0xff] }
 0x160   :  { %2853 = vmatprep.mubr.bf16.mxu1 %v9761_v12 }
 0x162   :  { %2951 = vmatmul.mubr.bf16.gmra.mrb[80].mxu0 %v10111_v4 }
 0x163   :  { %2958 = vmatprep.mubr.bf16.mxu0 %v10114_v7 }
 0x167   :  { %2854 = vmatmul.mubr.bf16.gmra.mrb[80].mxu1 %v9781_v26 }
 0x168   :  { %2861 = vmatprep.mubr.bf16.mxu1 %v9802_v39  ;;  %v12919_v39 = vld [vmem:[#allocation10_spill] sm:$0xff] }
 0x16a   :  { %2959 = vmatmul.mubr.bf16.gmra.mrb[84].mxu0 %v10139_v63 }
 0x16b   :  { %2966 = vmatprep.mubr.bf16.mxu0 %v10142_v30  ;;  %v12931_v30 = vld [vmem:[#allocation16_spill] sm:$0xff] }
 0x16f   :  { %2862 = vmatmul.mubr.bf16.gmra.mrb[84].mxu1 %v9834_v61 }
 0x170   :  { %2869 = vmatprep.mubr.bf16.mxu1 %v9852_v10 }
 0x172   :  { %2967 = vmatmul.mubr.bf16.gmra.mrb[88].mxu0 %v10167_v1 }
 0x173   :  { %2974 = vmatprep.mubr.bf16.mxu0 %v10170_v56 }
 0x177   :  { %2870 = vmatmul.mubr.bf16.gmra.mrb[88].mxu1 %v9872_v24  ;;  %v12921_v24 = vld [vmem:[#allocation11_spill] sm:$0xff] }
 0x178   :  { %2877 = vmatprep.mubr.bf16.mxu1 %v9896_v45 }
 0x17a   :  { %2975 = vmatmul.mubr.bf16.gmra.mrb[92].mxu0 %v10189_v57  ;;  %v12933_v57 = vld [vmem:[#allocation17_spill] sm:$0xff] }
 0x17f   :  { %2878 = vmatmul.mubr.bf16.gmra.mrb[92].mxu1 %v9922_v62  ;;  %v12923_v62 = vld [vmem:[#allocation12_spill] sm:$0xff] }
 0x180   :  { %7766 = vmatprep.mubr.msk.bf16.mxu1 %vm1763_vm0, %v8974_v8  ;;  %v12909_v8 = vld [vmem:[#allocation3_spill] sm:$0xff] }
 0x187   :  { %7767 = vmatmul.mubr.msk.bf16.vlgmr.msra.gmra.mrb[96].mxu1 %vm1763_vm0, %v9009_v19 }
 0x188   :  { %7770 = vmatprep.mubr.msk.bf16.mxu1 %vm1763_vm0, %v9047_v31  ;;  %v12910_v31 = vld [vmem:[#allocation4_spill] sm:$0xff] }
 0x18f   :  { %7771 = vmatmul.mubr.msk.bf16.gmra.mrb[100].mxu1 %vm1763_vm0, %v9082_v42 }
 0x190   :  { %7774 = vmatprep.mubr.msk.bf16.mxu1 %vm1763_vm0, %v9117_v53  ;;  %v12911_v53 = vld [vmem:[#allocation5_spill] sm:$0xff] }
 0x195   :  { %v2048_v1 = vpop.f32.mrb[0].mxu0 }
 0x196   :  { %v10402_v49 = vadd.f32 %v12908_v40, %v2048_v1  ;;  %v2050_v59 = vpop.f32.mrb[1].mxu0  ;;  %v12941_v40 = vld [vmem:[#allocation21_spill] sm:$0xff] }
 0x197   :  { %7775 = vmatmul.mubr.msk.bf16.gmra.mrb[104].mxu1 %vm1763_vm0, %v9152_v0  ;;  %v10407_v3 = vadd.f32 %v12909_v8, %v2050_v59  ;;  %v2052_v19 = vpop.f32.mrb[2].mxu0  ;;  %v12915_v0 = vld [vmem:[#allocation7_spill] sm:$0xff] }
 0x198   :  { %7778 = vmatprep.mubr.msk.bf16.mxu1 %vm1763_vm0, %v9195_v16  ;;  %v10412_v42 = vadd.f32 %v12910_v31, %v2052_v19  ;;  %v2054_v17 = vpop.f32.mrb[3].mxu0  ;;  %v12916_v16 = vld [vmem:[#allocation8_spill] sm:$0xff]  ;;  %v12943_v19 = vld [vmem:[#allocation22_spill] sm:$0xff] }
 0x199   :  { %v10415_v25 = vadd.f32 %v12911_v53, %v2054_v17  ;;  %v12945_v53 = vld [vmem:[#allocation23_spill] sm:$0xff] }
 0x19b   :  { %12912 = vst [vmem:[#allocation2_spill] sm:$0xff] %v10415_v25 }
 0x19d   :  { %v2058_v35 = vpop.f32.mrb[4].mxu0 }
 0x19e   :  { %v10418_v55 = vadd.f32 %v12913_v47, %v2058_v35  ;;  %v2060_v6 = vpop.f32.mrb[5].mxu0 }
 0x19f   :  { %7779 = vmatmul.mubr.msk.bf16.gmra.mrb[108].mxu1 %vm1763_vm0, %v9234_v29  ;;  %v10423_v13 = vadd.f32 %v12915_v0, %v2060_v6  ;;  %v2062_v27 = vpop.f32.mrb[6].mxu0  ;;  %v12947_v6 = vld [vmem:[#allocation24_spill] sm:$0xff] }
 0x1a0   :  { %12914 = vst [vmem:[#allocation3_spill] sm:$0xff] %v10418_v55  ;;  %v10426_v41 = vadd.f32 %v12916_v16, %v2062_v27  ;;  %v2064_v50 = vpop.f32.mrb[7].mxu0  ;;  %v12949_v16 = vld [vmem:[#allocation25_spill] sm:$0xff] }
 0x1a1   :  { %v10429_v12 = vadd.f32 %v12918_v2, %v2064_v50 }
 0x1a2   :  { %12917 = vst [vmem:[#allocation4_spill] sm:$0xff] %v10426_v41 }
 0x1a5   :  { %v2068_v26 = vpop.f32.mrb[8].mxu0 }
 0x1a6   :  { %v10432_v61 = vadd.f32 %v12919_v39, %v2068_v26  ;;  %v2070_v10 = vpop.f32.mrb[9].mxu0 }
 0x1a7   :  { %v10435_v45 = vadd.f32 %v12921_v24, %v2070_v10  ;;  %v2072_v29 = vpop.f32.mrb[10].mxu0 }
 0x1a8   :  { %12920 = vst [vmem:[#allocation5_spill] sm:$0xff] %v10432_v61  ;;  %v10438_v18 = vadd.f32 %v12923_v62, %v2072_v29  ;;  %v2074_v34 = vpop.f32.mrb[11].mxu0  ;;  %v12953_v29 = vld [vmem:[#allocation26_spill] sm:$0xff] }
 0x1a9   :  { %12922 = vst [vmem:[#allocation6_spill] sm:$0xff] %v10435_v45  ;;  %v10441_v9 = vadd.f32 %v12925_v43, %v2074_v34  ;;  %v12955_v43 = vld [vmem:[#allocation27_spill] sm:$0xff] }
 0x1aa   :  { %12924 = vst [vmem:[#allocation7_spill] sm:$0xff] %v10438_v18 }
 0x1ab   :  { %12926 = vst [vmem:[#allocation8_spill] sm:$0xff] %v10441_v9 }
 0x1ad   :  { %v2078_v11 = vpop.f32.mrb[12].mxu0 }
 0x1ae   :  { %v10444_v48 = vadd.f32 %v12927_v46, %v2078_v11  ;;  %v2080_v20 = vpop.f32.mrb[13].mxu0 }
 0x1af   :  { %v10447_v4 = vadd.f32 %v12929_v21, %v2080_v20  ;;  %v2082_v7 = vpop.f32.mrb[14].mxu0 }
 0x1b0   :  { %12928 = vst [vmem:[#allocation9_spill] sm:$0xff] %v10444_v48  ;;  %v10450_v56 = vadd.f32 %v12931_v30, %v2082_v7  ;;  %v2084_v63 = vpop.f32.mrb[15].mxu0 }
 0x1b1   :  { %12930 = vst [vmem:[#allocation10_spill] sm:$0xff] %v10447_v4  ;;  %v10453_v14 = vadd.f32 %v12933_v57, %v2084_v63 }
 0x1b2   :  { %12932 = vst [vmem:[#allocation11_spill] sm:$0xff] %v10450_v56 }
 0x1b3   :  { %12934 = vst [vmem:[#allocation12_spill] sm:$0xff] %v10453_v14 }
 0x1b5   :  { %v2088_v44 = vpop.f32.mrb[16].mxu0 }
 0x1b6   :  { %v10456_v52 = vadd.f32 %v12935_v32, %v2088_v44  ;;  %v2090_v38 = vpop.f32.mrb[17].mxu0 }
 0x1b7   :  { %v10459_v60 = vadd.f32 %v12937_v54, %v2090_v38  ;;  %v2092_v5 = vpop.f32.mrb[18].mxu0 }
 0x1b8   :  { %12936 = vst [vmem:[#allocation13_spill] sm:$0xff] %v10456_v52  ;;  %v10462_v33 = vadd.f32 %v12939_v22, %v2092_v5  ;;  %v2094_v1 = vpop.f32.mrb[19].mxu0 }
 0x1b9   :  { %12938 = vst [vmem:[#allocation14_spill] sm:$0xff] %v10459_v60  ;;  %v10465_v59 = vadd.f32 %v12941_v40, %v2094_v1 }
 0x1ba   :  { %12940 = vst [vmem:[#allocation15_spill] sm:$0xff] %v10462_v33 }
 0x1bb   :  { %12942 = vst [vmem:[#allocation16_spill] sm:$0xff] %v10465_v59 }
 0x1bd   :  { %v2098_v8 = vpop.f32.mrb[20].mxu0 }
 0x1be   :  { %v10468_v31 = vadd.f32 %v12943_v19, %v2098_v8  ;;  %v2100_v17 = vpop.f32.mrb[21].mxu0 }
 0x1bf   :  { %v10471_v35 = vadd.f32 %v12945_v53, %v2100_v17  ;;  %v2102_v47 = vpop.f32.mrb[22].mxu0 }
 0x1c0   :  { %12944 = vst [vmem:[#allocation17_spill] sm:$0xff] %v10468_v31  ;;  %v10474_v0 = vadd.f32 %v12947_v6, %v2102_v47  ;;  %v2104_v27 = vpop.f32.mrb[23].mxu0 }
 0x1c1   :  { %12946 = vst [vmem:[#allocation18_spill] sm:$0xff] %v10471_v35  ;;  %v10477_v50 = vadd.f32 %v12949_v16, %v2104_v27  ;;  %v3095_v16 = vadd.f32 %v10423_v13, %v10418_v55 }
 0x1c2   :  { %12948 = vst [vmem:[#allocation19_spill] sm:$0xff] %v10474_v0 }
 0x1c3   :  { %12950 = vst [vmem:[#allocation20_spill] sm:$0xff] %v10477_v50 }
 0x1c5   :  { %v2108_v2 = vpop.f32.mrb[24].mxu0 }
 0x1c6   :  { %v10480_v26 = vadd.f32 %v10244_v51, %v2108_v2  ;;  %v2110_v39 = vpop.f32.mrb[25].mxu0 }
 0x1c7   :  { %v10483_v10 = vadd.f32 %v10249_v36, %v2110_v39  ;;  %v2112_v24 = vpop.f32.mrb[26].mxu0 }
 0x1c8   :  { %12951 = vst [vmem:[#allocation21_spill] sm:$0xff] %v10480_v26  ;;  %v10486_v62 = vadd.f32 %v12953_v29, %v2112_v24  ;;  %v2114_v34 = vpop.f32.mrb[27].mxu0  ;;  %v3102_v29 = vadd.f32 %v10429_v12, %v10426_v41 }
 0x1c9   :  { %12952 = vst [vmem:[#allocation22_spill] sm:$0xff] %v10483_v10  ;;  %v10489_v11 = vadd.f32 %v12955_v43, %v2114_v34 }
 0x1ca   :  { %12954 = vst [vmem:[#allocation23_spill] sm:$0xff] %v10486_v62 }
 0x1cb   :  { %12956 = vst [vmem:[#allocation24_spill] sm:$0xff] %v10489_v11 }
 0x1cd   :  { %v2118_v46 = vpop.f32.mrb[28].mxu0 }
 0x1ce   :  { %v10492_v20 = vadd.f32 %v10281_v23, %v2118_v46  ;;  %v2120_v21 = vpop.f32.mrb[29].mxu0  ;;  %v3080_v23 = vadd.f32 %v10407_v3, %v10402_v49 }
 0x1cf   :  { %v10495_v51 = vadd.f32 %v10286_v58, %v2120_v21  ;;  %v2122_v7 = vpop.f32.mrb[30].mxu0 }
 0x1d0   :  { %12957 = vst [vmem:[#allocation25_spill] sm:$0xff] %v10492_v20  ;;  %v10498_v36 = vadd.f32 %v10289_v15, %v2122_v7  ;;  %v2124_v30 = vpop.f32.mrb[31].mxu0  ;;  %v3088_v15 = vadd.f32 %v10415_v25, %v10412_v42 }
 0x1d1   :  { %12958 = vst [vmem:[#allocation26_spill] sm:$0xff] %v10495_v51  ;;  %v10501_v63 = vadd.f32 %v10295_v28, %v2124_v30 }
 0x1d2   :  { %12959 = vst [vmem:[#allocation27_spill] sm:$0xff] %v10498_v36 }
 0x1d3   :  { %12960 = vst [vmem:[#allocation28_spill] sm:$0xff] %v10501_v63 }
 0x1d5   :  { %v7564_v57 = vpop.f32.mrb[32].mxu0 }
 0x1d6   :  { %v7565_v44 = vpop.f32.mrb[33].mxu0 }
 0x1d7   :  { %v10503_v32 = vadd.f32 %v7565_v44, %v7564_v57  ;;  %v7567_v38 = vpop.f32.mrb[34].mxu0 }
 0x1d8   :  { %v7568_v54 = vpop.f32.mrb[35].mxu0 }
 0x1d9   :  { %v10509_v58 = vadd.f32 %v7568_v54, %v7567_v38 }
 0x1da   :  { %v10507_v5 = vpop.f32.mrb[32].mxu1 }
 0x1db   :  { %v3081_v22 = vadd.f32 %v3080_v23, %v10507_v5  ;;  %v10514_v28 = vpop.f32.mrb[33].mxu1 }
 0x1dc   :  { %v10516_v1 = vpop.f32.mrb[34].mxu1 }
 0x1dd   :  { %12961 = vst [vmem:[#allocation29_spill] sm:$0xff] %v10516_v1  ;;  %v10519_v40 = vadd.f32 %v3081_v22, %v10514_v28  ;;  %v3089_v8 = vadd.f32 %v3088_v15, %v10516_v1  ;;  %v10522_v19 = vpop.f32.mrb[35].mxu1  ;;  %v7570_v17 = vpop.f32.mrb[36].mxu0  ;;  %v3109_v15 = vadd.f32 %v10435_v45, %v10432_v61 }
 0x1de   :  { %12962 = vst [vmem:[#allocation30_spill] sm:$0xff] %v10522_v19  ;;  %v7571_v47 = vpop.f32.mrb[37].mxu0 }
 0x1df   :  { %v10525_v53 = vadd.f32 %v3089_v8, %v10522_v19  ;;  %v10527_v6 = vadd.f32 %v7571_v47, %v7570_v17  ;;  %v7573_v27 = vpop.f32.mrb[38].mxu0  ;;  %v3116_v47 = vadd.f32 %v10441_v9, %v10438_v18 }
 0x1e0   :  { %v7574_v2 = vpop.f32.mrb[39].mxu0 }
 0x1e1   :  { %v10533_v24 = vadd.f32 %v7574_v2, %v7573_v27 }
 0x1e2   :  { %v10531_v39 = vpop.f32.mrb[36].mxu1 }
 0x1e3   :  { %v3096_v34 = vadd.f32 %v3095_v16, %v10531_v39  ;;  %v10538_v43 = vpop.f32.mrb[37].mxu1 }
 0x1e4   :  { %v10540_v46 = vpop.f32.mrb[38].mxu1 }
 0x1e5   :  { %12963 = vst [vmem:[#allocation31_spill] sm:$0xff] %v10540_v46  ;;  %v10543_v21 = vadd.f32 %v3096_v34, %v10538_v43  ;;  %v3103_v7 = vadd.f32 %v3102_v29, %v10540_v46  ;;  %v10546_v30 = vpop.f32.mrb[39].mxu1  ;;  %v7576_v57 = vpop.f32.mrb[40].mxu0 }
 0x1e6   :  { %12964 = vst [vmem:[#allocation32_spill] sm:$0xff] %v10546_v30  ;;  %v7577_v38 = vpop.f32.mrb[41].mxu0 }
 0x1e7   :  { %v10549_v44 = vadd.f32 %v3103_v7, %v10546_v30  ;;  %v10551_v23 = vadd.f32 %v7577_v38, %v7576_v57  ;;  %v7579_v54 = vpop.f32.mrb[42].mxu0 }
 0x1e8   :  { %v7580_v22 = vpop.f32.mrb[43].mxu0 }
 0x1e9   :  { %v10557_v17 = vadd.f32 %v7580_v22, %v7579_v54 }
 0x1ea   :  { %v10555_v8 = vpop.f32.mrb[40].mxu1 }
 0x1eb   :  { %12965 = vst [vmem:[#allocation33_spill] sm:$0xff] %v10555_v8  ;;  %v3110_v27 = vadd.f32 %v3109_v15, %v10555_v8  ;;  %v10562_v16 = vpop.f32.mrb[41].mxu1  ;;  %v3123_v15 = vadd.f32 %v10447_v4, %v10444_v48 }
 0x1ec   :  { %12966 = vst [vmem:[#allocation34_spill] sm:$0xff] %v10562_v16  ;;  %v10564_v2 = vpop.f32.mrb[42].mxu1 }
 0x1ed   :  { %12967 = vst [vmem:[#allocation35_spill] sm:$0xff] %v10564_v2  ;;  %v10567_v29 = vadd.f32 %v3110_v27, %v10562_v16  ;;  %v3117_v34 = vadd.f32 %v3116_v47, %v10564_v2  ;;  %v10570_v7 = vpop.f32.mrb[43].mxu1  ;;  %v7582_v57 = vpop.f32.mrb[44].mxu0  ;;  %v3130_v47 = vadd.f32 %v10453_v14, %v10450_v56 }
 0x1ee   :  { %12968 = vst [vmem:[#allocation36_spill] sm:$0xff] %v10570_v7  ;;  %v7583_v54 = vpop.f32.mrb[45].mxu0 }
 0x1ef   :  { %v10573_v38 = vadd.f32 %v3117_v34, %v10570_v7  ;;  %v10575_v22 = vadd.f32 %v7583_v54, %v7582_v57  ;;  %v7585_v37 = vpop.f32.mrb[46].mxu0 }
 0x1f0   :  { %v7586_v8 = vpop.f32.mrb[47].mxu0 }
 0x1f1   :  { %v10581_v27 = vadd.f32 %v7586_v8, %v7585_v37 }
 0x1f2   :  { %v10579_v61 = vpop.f32.mrb[44].mxu1 }
 0x1f3   :  { %12969 = vst [vmem:[#allocation37_spill] sm:$0xff] %v10579_v61  ;;  %v3124_v2 = vadd.f32 %v3123_v15, %v10579_v61  ;;  %v10586_v16 = vpop.f32.mrb[45].mxu1  ;;  %v3137_v15 = vadd.f32 %v10459_v60, %v10456_v52 }
 0x1f4   :  { %12970 = vst [vmem:[#allocation38_spill] sm:$0xff] %v10586_v16  ;;  %v10588_v34 = vpop.f32.mrb[46].mxu1 }
 0x1f5   :  { %12971 = vst [vmem:[#allocation39_spill] sm:$0xff] %v10588_v34  ;;  %v10591_v57 = vadd.f32 %v3124_v2, %v10586_v16  ;;  %v3131_v54 = vadd.f32 %v3130_v47, %v10588_v34  ;;  %v10594_v48 = vpop.f32.mrb[47].mxu1  ;;  %v7588_v7 = vpop.f32.mrb[48].mxu0  ;;  %v3144_v47 = vadd.f32 %v10465_v59, %v10462_v33 }
 0x1f6   :  { %12972 = vst [vmem:[#allocation40_spill] sm:$0xff] %v10594_v48  ;;  %v7589_v8 = vpop.f32.mrb[49].mxu0 }
 0x1f7   :  { %v10597_v37 = vadd.f32 %v3131_v54, %v10594_v48  ;;  %v10599_v4 = vadd.f32 %v7589_v8, %v7588_v7  ;;  %v7591_v56 = vpop.f32.mrb[50].mxu0 }
 0x1f8   :  { %v7592_v61 = vpop.f32.mrb[51].mxu0 }
 0x1f9   :  { %v10605_v2 = vadd.f32 %v7592_v61, %v7591_v56 }
 0x1fa   :  { %v10603_v14 = vpop.f32.mrb[48].mxu1 }
 0x1fb   :  { %12973 = vst [vmem:[#allocation41_spill] sm:$0xff] %v10603_v14  ;;  %v3138_v34 = vadd.f32 %v3137_v15, %v10603_v14  ;;  %v10610_v16 = vpop.f32.mrb[49].mxu1  ;;  %v8556_v15 = vld [vmem:[%s12794_s2] ss:$16 sps:$4 sm:$0xff]  }
 0x1fc   :  { %12974 = vst [vmem:[#allocation42_spill] sm:$0xff] %v10610_v16  ;;  %v10612_v54 = vpop.f32.mrb[50].mxu1 }
 0x1fd   :  { %12975 = vst [vmem:[#allocation43_spill] sm:$0xff] %v10612_v54  ;;  %v10615_v7 = vadd.f32 %v3138_v34, %v10610_v16  ;;  %v3145_v8 = vadd.f32 %v3144_v47, %v10612_v54  ;;  %v10618_v48 = vpop.f32.mrb[51].mxu1  ;;  %v7594_v52 = vpop.f32.mrb[52].mxu0  ;;  %v3151_v34 = vadd.f32 %v10471_v35, %v10468_v31  ;;  %v8558_v47 = vld [vmem:[%s12794_s2 + $0x4] ss:$16 sps:$4 sm:$0xff]  }
 0x1fe   :  { %12976 = vst [vmem:[#allocation44_spill] sm:$0xff] %v10618_v48  ;;  %v7595_v56 = vpop.f32.mrb[53].mxu0  ;;  %4297 = vmatprep.subr.bf16.mxu0 %v8558_v47 }
 0x1ff   :  { %v10621_v61 = vadd.f32 %v3145_v8, %v10618_v48  ;;  %v10623_v60 = vadd.f32 %v7595_v56, %v7594_v52  ;;  %v7597_v33 = vpop.f32.mrb[54].mxu0  ;;  %v8559_v52 = vld [vmem:[%s12794_s2 + $0x8] ss:$16 sps:$4 sm:$0xff]   ;;  %v8561_v56 = vld [vmem:[%s12794_s2 + $0xc] ss:$16 sps:$4 sm:$0xff]   ;;  %v3158_v48 = vadd.f32 %v10477_v50, %v10474_v0  ;;  %4298 = vmatpush1.bf16.msra.mxu0 %v8556_v15 }
 0x200   :  { %v7598_v14 = vpop.f32.mrb[55].mxu0  ;;  %4636 = vmatprep.subr.bf16.mxu1 %v8561_v56  ;;  %v8565_v0 = vld [vmem:[%s12794_s2 + $0x28] ss:$16 sps:$4 sm:$0xff]   ;;  %v8567_v50 = vld [vmem:[%s12794_s2 + $0x2c] ss:$16 sps:$4 sm:$0xff]  }
 0x201   :  { %v10635_v8 = vadd.f32 %v7598_v14, %v7597_v33  ;;  %v8562_v14 = vld [vmem:[%s12794_s2 + $0x20] ss:$16 sps:$4 sm:$0xff]   ;;  %v8564_v33 = vld [vmem:[%s12794_s2 + $0x24] ss:$16 sps:$4 sm:$0xff]   ;;  %4637 = vmatpush1.bf16.msra.mxu1 %v8559_v52  ;;  %v8573_v52 = vld [vmem:[%s12794_s2 + $0x4c] ss:$16 sps:$4 sm:$0xff]  }
 0x202   :  { %v10633_v54 = vpop.f32.mrb[52].mxu1  ;;  %4299 = vmatprep.subr.bf16.mxu0 %v8564_v33  ;;  %v8570_v15 = vld [vmem:[%s12794_s2 + $0x44] ss:$16 sps:$4 sm:$0xff]   ;;  %4638 = vmatprep.subr.bf16.mxu1 %v8567_v50 }
 0x203   :  { %12977 = vst [vmem:[#allocation45_spill] sm:$0xff] %v10633_v54  ;;  %v3152_v16 = vadd.f32 %v3151_v34, %v10633_v54  ;;  %v10646_v31 = vpop.f32.mrb[53].mxu1  ;;  %4300 = vmatpush1.bf16.msra.mxu0 %v8562_v14  ;;  %v8579_v14 = vld [vmem:[%s12794_s2 + $0x6c] ss:$16 sps:$4 sm:$0xff]  }
 0x204   :  { %12978 = vst [vmem:[#allocation46_spill] sm:$0xff] %v10646_v31  ;;  %v10654_v35 = vpop.f32.mrb[54].mxu1  ;;  %4301 = vmatprep.subr.bf16.mxu0 %v8570_v15  ;;  %v8574_v15 = vld [vmem:[%s12794_s2 + $0x60] ss:$16 sps:$4 sm:$0xff]  }
 0x205   :  { %12979 = vst [vmem:[#allocation47_spill] sm:$0xff] %v10654_v35  ;;  %v10660_v34 = vadd.f32 %v3152_v16, %v10646_v31  ;;  %v3159_v47 = vadd.f32 %v3158_v48, %v10654_v35  ;;  %v10663_v54 = vpop.f32.mrb[55].mxu1  ;;  %v7600_v59 = vpop.f32.mrb[56].mxu0  ;;  %v8568_v48 = vld [vmem:[%s12794_s2 + $0x40] ss:$16 sps:$4 sm:$0xff]   ;;  %4639 = vmatpush1.bf16.msra.mxu1 %v8565_v0 }
 0x206   :  { %12980 = vst [vmem:[#allocation48_spill] sm:$0xff] %v10663_v54  ;;  %v7601_v16 = vpop.f32.mrb[57].mxu0  ;;  %v8571_v31 = vld [vmem:[%s12794_s2 + $0x48] ss:$16 sps:$4 sm:$0xff]   ;;  %4640 = vmatprep.subr.bf16.mxu1 %v8573_v52 }
 0x207   :  { %v10672_v56 = vadd.f32 %v3159_v47, %v10663_v54  ;;  %v10680_v33 = vadd.f32 %v7601_v16, %v7600_v59  ;;  %v7603_v35 = vpop.f32.mrb[58].mxu0  ;;  %v3165_v47 = vadd.f32 %v10483_v10, %v10480_v26  ;;  %v8576_v54 = vld [vmem:[%s12794_s2 + $0x64] ss:$16 sps:$4 sm:$0xff]   ;;  %v3172_v16 = vadd.f32 %v10489_v11, %v10486_v62  ;;  %4302 = vmatpush1.bf16.msra.mxu0 %v8568_v48  ;;  %v8585_v48 = vld [vmem:[%s12794_s2 + $0x8c] ss:$16 sps:$4 sm:$0xff]  }
 0x208   :  { %v7604_v50 = vpop.f32.mrb[59].mxu0  ;;  %4303 = vmatprep.subr.bf16.mxu0 %v8576_v54 }
 0x209   :  { %v10692_v59 = vadd.f32 %v7604_v50, %v7603_v35  ;;  %v8577_v35 = vld [vmem:[%s12794_s2 + $0x68] ss:$16 sps:$4 sm:$0xff]   ;;  %4641 = vmatpush1.bf16.msra.mxu1 %v8571_v31 }
 0x20a   :  { %v10690_v18 = vpop.f32.mrb[56].mxu1  ;;  %4642 = vmatprep.subr.bf16.mxu1 %v8579_v14  ;;  %v8583_v14 = vld [vmem:[%s12794_s2 + $0x88] ss:$16 sps:$4 sm:$0xff]  }
 0x20b   :  { %12981 = vst [vmem:[#allocation49_spill] sm:$0xff] %v10690_v18  ;;  %v3166_v26 = vadd.f32 %v3165_v47, %v10690_v18  ;;  %v10700_v0 = vpop.f32.mrb[57].mxu1  ;;  %v8582_v47 = vld [vmem:[%s12794_s2 + $0x84] ss:$16 sps:$4 sm:$0xff]   ;;  %4304 = vmatpush1.bf16.msra.mxu0 %v8574_v15  ;;  %v8591_v15 = vld [vmem:[%s12794_s2 + $0xac] ss:$16 sps:$4 sm:$0xff]  }
 0x20c   :  { %12982 = vst [vmem:[#allocation50_spill] sm:$0xff] %v10700_v0  ;;  %v10705_v10 = vpop.f32.mrb[58].mxu1  ;;  %4305 = vmatprep.subr.bf16.mxu0 %v8582_v47  ;;  %v8586_v47 = vld [vmem:[%s12794_s2 + $0xa0] ss:$16 sps:$4 sm:$0xff]  }
 0x20d   :  { %12983 = vst [vmem:[#allocation51_spill] sm:$0xff] %v10705_v10  ;;  %v10711_v52 = vadd.f32 %v3166_v26, %v10700_v0  ;;  %v3173_v50 = vadd.f32 %v3172_v16, %v10705_v10  ;;  %v10714_v62 = vpop.f32.mrb[59].mxu1  ;;  %v7606_v18 = vpop.f32.mrb[60].mxu0  ;;  %v8580_v16 = vld [vmem:[%s12794_s2 + $0x80] ss:$16 sps:$4 sm:$0xff]   ;;  %v3179_v10 = vadd.f32 %v10495_v51, %v10492_v20  ;;  %4643 = vmatpush1.bf16.msra.mxu1 %v8577_v35 }
 0x20e   :  { %12984 = vst [vmem:[#allocation52_spill] sm:$0xff] %v10714_v62  ;;  %v7607_v26 = vpop.f32.mrb[61].mxu0  ;;  %4644 = vmatprep.subr.bf16.mxu1 %v8585_v48 }
 0x20f   :  { %v10723_v11 = vadd.f32 %v3173_v50, %v10714_v62  ;;  %v10728_v31 = vadd.f32 %v7607_v26, %v7606_v18  ;;  %v7609_v54 = vpop.f32.mrb[62].mxu0  ;;  %v8588_v50 = vld [vmem:[%s12794_s2 + $0xa4] ss:$16 sps:$4 sm:$0xff]   ;;  %v3186_v26 = vadd.f32 %v10501_v63, %v10498_v36  ;;  %4306 = vmatpush1.bf16.msra.mxu0 %v8580_v16  ;;  %v8597_v16 = vld [vmem:[%s12794_s2 + $0xcc] ss:$16 sps:$4 sm:$0xff]  }
 0x210   :  { %v7610_v0 = vpop.f32.mrb[63].mxu0  ;;  %4307 = vmatprep.subr.bf16.mxu0 %v8588_v50 }
 0x211   :  { %v10740_v18 = vadd.f32 %v7610_v0, %v7609_v54  ;;  %v8589_v0 = vld [vmem:[%s12794_s2 + $0xa8] ss:$16 sps:$4 sm:$0xff]   ;;  %4645 = vmatpush1.bf16.msra.mxu1 %v8583_v14 }
 0x212   :  { %v10738_v62 = vpop.f32.mrb[60].mxu1  ;;  %4646 = vmatprep.subr.bf16.mxu1 %v8591_v15 }
 0x213   :  { %12985 = vst [vmem:[#allocation53_spill] sm:$0xff] %v10738_v62  ;;  %v3180_v20 = vadd.f32 %v3179_v10, %v10738_v62  ;;  %v10748_v35 = vpop.f32.mrb[61].mxu1  ;;  %v8594_v10 = vld [vmem:[%s12794_s2 + $0xc4] ss:$16 sps:$4 sm:$0xff]   ;;  %4308 = vmatpush1.bf16.msra.mxu0 %v8586_v47  ;;  %v8598_v47 = vld [vmem:[%s12794_s2 + $0xe0] ss:$16 sps:$4 sm:$0xff]  }
 0x214   :  { %12986 = vst [vmem:[#allocation54_spill] sm:$0xff] %v10748_v35  ;;  %v10753_v51 = vpop.f32.mrb[62].mxu1  ;;  %4309 = vmatprep.subr.bf16.mxu0 %v8594_v10 }
 0x215   :  { %12987 = vst [vmem:[#allocation55_spill] sm:$0xff] %v10753_v51  ;;  %v10759_v48 = vadd.f32 %v3180_v20, %v10748_v35  ;;  %v3187_v54 = vadd.f32 %v3186_v26, %v10753_v51  ;;  %v10762_v36 = vpop.f32.mrb[63].mxu1  ;;  %v7692_v63 = vpop.f32.mrb[64].mxu0  ;;  %v8592_v26 = vld [vmem:[%s12794_s2 + $0xc0] ss:$16 sps:$4 sm:$0xff]   ;;  %4647 = vmatpush1.bf16.msra.mxu1 %v8589_v0 }
 0x216   :  { %12988 = vst [vmem:[#allocation56_spill] sm:$0xff] %v10762_v36  ;;  %v7693_v20 = vpop.f32.mrb[65].mxu0  ;;  %v8595_v51 = vld [vmem:[%s12794_s2 + $0xc8] ss:$16 sps:$4 sm:$0xff]   ;;  %4648 = vmatprep.subr.bf16.mxu1 %v8597_v16  ;;  %v8606_v16 = vld [vmem:[%s12794_s2 + $0x104] ss:$16 sps:$4 sm:$0xff]  }
 0x217   :  { %v10771_v62 = vadd.f32 %v3187_v54, %v10762_v36  ;;  %v7694_v14 = vadd.f32 %v7693_v20, %v7692_v63  ;;  %v7695_v50 = vpop.f32.mrb[66].mxu0  ;;  %v8600_v54 = vld [vmem:[%s12794_s2 + $0xe4] ss:$16 sps:$4 sm:$0xff]   ;;  %v8603_v63 = vld [vmem:[%s12794_s2 + $0xec] ss:$16 sps:$4 sm:$0xff]   ;;  %4310 = vmatpush1.bf16.msra.mxu0 %v8592_v26 }
 0x218   :  { %v7696_v15 = vpop.f32.mrb[67].mxu0  ;;  %v8601_v0 = vld [vmem:[%s12794_s2 + $0xe8] ss:$16 sps:$4 sm:$0xff]   ;;  %4311 = vmatprep.subr.bf16.mxu0 %v8600_v54 }
 0x219   :  { %v7697_v35 = vadd.f32 %v7696_v15, %v7695_v50  ;;  %4649 = vmatpush1.bf16.msra.mxu1 %v8595_v51 }
 0x21a   :  { %v7628_v36 = vpop.f32.mrb[64].mxu1  ;;  %4650 = vmatprep.subr.bf16.mxu1 %v8603_v63 }
 0x21b   :  { %v7629_v20 = vpop.f32.mrb[65].mxu1  ;;  %4312 = vmatpush1.bf16.msra.mxu0 %v8598_v47  ;;  %v8613_v47 = vld [vmem:[%s12794_s2 + $0x128] ss:$16 sps:$4 sm:$0xff]  }
 0x21c   :  { %v7630_v45 = vadd.f32 %v7629_v20, %v7628_v36  ;;  %v7631_v55 = vpop.f32.mrb[66].mxu1  ;;  %v8609_v36 = vld [vmem:[%s12794_s2 + $0x10c] ss:$16 sps:$4 sm:$0xff]   ;;  %v8604_v20 = vld [vmem:[%s12794_s2 + $0x100] ss:$16 sps:$4 sm:$0xff]   ;;  %4313 = vmatprep.subr.bf16.mxu0 %v8606_v16 }
 0x21d   :  { %v7632_v10 = vpop.f32.mrb[67].mxu1  ;;  %v7698_v46 = vpop.f32.mrb[68].mxu0  ;;  %4651 = vmatpush1.bf16.msra.mxu1 %v8601_v0  ;;  %v8621_v16 = vld [vmem:[%s12794_s2 + $0x14c] ss:$16 sps:$4 sm:$0xff]  }
 0x21e   :  { %v2824_v50 = vadd.f32 %v7630_v45, %v10503_v32  ;;  %v7633_v15 = vadd.f32 %v7632_v10, %v7631_v55  ;;  %v7699_v26 = vpop.f32.mrb[69].mxu0  ;;  %v8607_v55 = vld [vmem:[%s12794_s2 + $0x108] ss:$16 sps:$4 sm:$0xff]   ;;  %v8612_v32 = vld [vmem:[%s12794_s2 + $0x124] ss:$16 sps:$4 sm:$0xff]   ;;  %4652 = vmatprep.subr.bf16.mxu1 %v8609_v36 }
 0x21f   :  { %v7700_v54 = vadd.f32 %v7699_v26, %v7698_v46  ;;  %v7701_v9 = vpop.f32.mrb[70].mxu0  ;;  %v8615_v46 = vld [vmem:[%s12794_s2 + $0x12c] ss:$16 sps:$4 sm:$0xff]   ;;  %4314 = vmatpush1.bf16.msra.mxu0 %v8604_v20  ;;  %v8619_v20 = vld [vmem:[%s12794_s2 + $0x148] ss:$16 sps:$4 sm:$0xff]  }
 0x220   :  { %v2827_v51 = vadd.f32 %v7633_v15, %v10509_v58  ;;  %v10802_v41 = vadd.f32 %v7694_v14, %v2824_v50  ;;  %v7702_v45 = vpop.f32.mrb[71].mxu0  ;;  %v8610_v58 = vld [vmem:[%s12794_s2 + $0x120] ss:$16 sps:$4 sm:$0xff]   ;;  %4315 = vmatprep.subr.bf16.mxu0 %v8612_v32 }
 0x221   :  { %v7703_v10 = vadd.f32 %v7702_v45, %v7701_v9  ;;  %v8618_v9 = vld [vmem:[%s12794_s2 + $0x144] ss:$16 sps:$4 sm:$0xff]   ;;  %4653 = vmatpush1.bf16.msra.mxu1 %v8607_v55 }
 0x222   :  { %v7634_v63 = vpop.f32.mrb[68].mxu1  ;;  %v10810_v30 = vadd.f32 %v7697_v35, %v2827_v51  ;;  %4654 = vmatprep.subr.bf16.mxu1 %v8615_v46  ;;  %v8616_v51 = vld [vmem:[%s12794_s2 + $0x140] ss:$16 sps:$4 sm:$0xff]   ;;  %v8627_v46 = vld [vmem:[%s12794_s2 + $0x16c] ss:$16 sps:$4 sm:$0xff]  }
 0x223   :  { %v7635_v14 = vpop.f32.mrb[69].mxu1  ;;  %4316 = vmatpush1.bf16.msra.mxu0 %v8610_v58  ;;  %v8630_v58 = vld [vmem:[%s12794_s2 + $0x184] ss:$16 sps:$4 sm:$0xff]  }
 0x224   :  { %v7636_v35 = vadd.f32 %v7635_v14, %v7634_v63  ;;  %v7637_v0 = vpop.f32.mrb[70].mxu1  ;;  %v8624_v63 = vld [vmem:[%s12794_s2 + $0x164] ss:$16 sps:$4 sm:$0xff]   ;;  %4317 = vmatprep.subr.bf16.mxu0 %v8618_v9 }
 0x225   :  { %v7638_v50 = vpop.f32.mrb[71].mxu1  ;;  %v7704_v26 = vpop.f32.mrb[72].mxu0  ;;  %4655 = vmatpush1.bf16.msra.mxu1 %v8613_v47 }
 0x226   :  { %v2832_v15 = vadd.f32 %v7636_v35, %v10527_v6  ;;  %v7639_v36 = vadd.f32 %v7638_v50, %v7637_v0  ;;  %v7705_v45 = vpop.f32.mrb[73].mxu0  ;;  %4656 = vmatprep.subr.bf16.mxu1 %v8621_v16 }
 0x227   :  { %v7706_v32 = vadd.f32 %v7705_v45, %v7704_v26  ;;  %v7707_v6 = vpop.f32.mrb[74].mxu0  ;;  %4318 = vmatpush1.bf16.msra.mxu0 %v8616_v51  ;;  %v8631_v51 = vld [vmem:[%s12794_s2 + $0x188] ss:$16 sps:$4 sm:$0xff]  }
 0x228   :  { %v2835_v55 = vadd.f32 %v7639_v36, %v10533_v24  ;;  %v10838_v14 = vadd.f32 %v7700_v54, %v2832_v15  ;;  %v7708_v35 = vpop.f32.mrb[75].mxu0  ;;  %v8622_v24 = vld [vmem:[%s12794_s2 + $0x160] ss:$16 sps:$4 sm:$0xff]   ;;  %v8625_v54 = vld [vmem:[%s12794_s2 + $0x168] ss:$16 sps:$4 sm:$0xff]   ;;  %4319 = vmatprep.subr.bf16.mxu0 %v8624_v63 }
 0x229   :  { %v7709_v50 = vadd.f32 %v7708_v35, %v7707_v6  ;;  %4657 = vmatpush1.bf16.msra.mxu1 %v8619_v20 }
 0x22a   :  { %v7640_v0 = vpop.f32.mrb[72].mxu1  ;;  %v10843_v19 = vadd.f32 %v7703_v10, %v2835_v55  ;;  %v8633_v10 = vld [vmem:[%s12794_s2 + $0x18c] ss:$16 sps:$4 sm:$0xff]   ;;  %4658 = vmatprep.subr.bf16.mxu1 %v8627_v46  ;;  %v8628_v55 = vld [vmem:[%s12794_s2 + $0x180] ss:$16 sps:$4 sm:$0xff]  }
 0x22b   :  { %v7641_v36 = vpop.f32.mrb[73].mxu1  ;;  %4320 = vmatpush1.bf16.msra.mxu0 %v8622_v24 }
 0x22c   :  { %v7642_v47 = vadd.f32 %v7641_v36, %v7640_v0  ;;  %v7643_v9 = vpop.f32.mrb[74].mxu1  ;;  %4321 = vmatprep.subr.bf16.mxu0 %v8630_v58 }
 0x22d   :  { %v7644_v16 = vpop.f32.mrb[75].mxu1  ;;  %v7710_v45 = vpop.f32.mrb[76].mxu0  ;;  %4659 = vmatpush1.bf16.msra.mxu1 %v8625_v54 }
 0x22e   :  { %v2840_v15 = vadd.f32 %v7642_v47, %v10551_v23  ;;  %v7645_v26 = vadd.f32 %v7644_v16, %v7643_v9  ;;  %v7711_v6 = vpop.f32.mrb[77].mxu0  ;;  %4660 = vmatprep.subr.bf16.mxu1 %v8633_v10 }
 0x22f   :  { %v7712_v0 = vadd.f32 %v7711_v6, %v7710_v45  ;;  %v7713_v36 = vpop.f32.mrb[78].mxu0  ;;  %4322 = vmatpush1.bf16.msra.mxu0 %v8628_v55 }
 0x230   :  { %v2843_v35 = vadd.f32 %v7645_v26, %v10557_v17  ;;  %v10865_v20 = vadd.f32 %v7706_v32, %v2840_v15  ;;  %v7714_v23 = vpop.f32.mrb[79].mxu0 }
 0x231   :  { %v7715_v46 = vadd.f32 %v7714_v23, %v7713_v36  ;;  %4661 = vmatpush1.bf16.msra.mxu1 %v8631_v51 }
 0x232   :  { %v7646_v63 = vpop.f32.mrb[76].mxu1  ;;  %v10867_v47 = vadd.f32 %v7709_v50, %v2843_v35 }
 0x233   :  { %v7647_v9 = vpop.f32.mrb[77].mxu1 }
 0x234   :  { %v7648_v16 = vadd.f32 %v7647_v9, %v7646_v63  ;;  %v7649_v25 = vpop.f32.mrb[78].mxu1 }
 0x235   :  { %v7650_v1 = vpop.f32.mrb[79].mxu1  ;;  %v7716_v32 = vpop.f32.mrb[80].mxu0 }
 0x236   :  { %v2848_v17 = vadd.f32 %v7648_v16, %v10575_v22  ;;  %v7651_v26 = vadd.f32 %v7650_v1, %v7649_v25  ;;  %v7717_v15 = vpop.f32.mrb[81].mxu0 }
 0x237   :  { %v7718_v54 = vadd.f32 %v7717_v15, %v7716_v32  ;;  %v7719_v58 = vpop.f32.mrb[82].mxu0 }
 0x238   :  { %v2851_v24 = vadd.f32 %v7651_v26, %v10581_v27  ;;  %v10871_v45 = vadd.f32 %v7712_v0, %v2848_v17  ;;  %v7720_v50 = vpop.f32.mrb[83].mxu0 }
 0x239   :  { %v7721_v10 = vadd.f32 %v7720_v50, %v7719_v58 }
 0x23a   :  { %v7652_v6 = vpop.f32.mrb[80].mxu1  ;;  %v10873_v35 = vadd.f32 %v7715_v46, %v2851_v24 }
 0x23b   :  { %v7653_v36 = vpop.f32.mrb[81].mxu1 }
 0x23c   :  { %v7654_v55 = vadd.f32 %v7653_v36, %v7652_v6  ;;  %v7655_v23 = vpop.f32.mrb[82].mxu1 }
 0x23d   :  { %v7656_v51 = vpop.f32.mrb[83].mxu1  ;;  %v7722_v1 = vpop.f32.mrb[84].mxu0 }
 0x23e   :  { %v2856_v22 = vadd.f32 %v7654_v55, %v10599_v4  ;;  %v7657_v25 = vadd.f32 %v7656_v51, %v7655_v23  ;;  %v7723_v63 = vpop.f32.mrb[85].mxu0 }
 0x23f   :  { %v7724_v9 = vadd.f32 %v7723_v63, %v7722_v1  ;;  %v7725_v16 = vpop.f32.mrb[86].mxu0 }
 0x240   :  { %v2859_v27 = vadd.f32 %v7657_v25, %v10605_v2  ;;  %v10877_v0 = vadd.f32 %v7718_v54, %v2856_v22  ;;  %v7726_v17 = vpop.f32.mrb[87].mxu0 }
 0x241   :  { %v7727_v32 = vadd.f32 %v7726_v17, %v7725_v16 }
 0x242   :  { %v7658_v26 = vpop.f32.mrb[84].mxu1  ;;  %v10879_v46 = vadd.f32 %v7721_v10, %v2859_v27 }
 0x243   :  { %v7659_v15 = vpop.f32.mrb[85].mxu1 }
 0x244   :  { %v7660_v24 = vadd.f32 %v7659_v15, %v7658_v26  ;;  %v7661_v58 = vpop.f32.mrb[86].mxu1 }
 0x245   :  { %v7662_v50 = vpop.f32.mrb[87].mxu1  ;;  %v7728_v36 = vpop.f32.mrb[88].mxu0 }
 0x246   :  { %v2864_v4 = vadd.f32 %v7660_v24, %v10623_v60  ;;  %v7663_v6 = vadd.f32 %v7662_v50, %v7661_v58  ;;  %v7729_v55 = vpop.f32.mrb[89].mxu0 }
 0x247   :  { %v7730_v23 = vadd.f32 %v7729_v55, %v7728_v36  ;;  %v7731_v51 = vpop.f32.mrb[90].mxu0 }
 0x248   :  { %v2867_v2 = vadd.f32 %v7663_v6, %v10635_v8  ;;  %v10883_v54 = vadd.f32 %v7724_v9, %v2864_v4  ;;  %v7732_v22 = vpop.f32.mrb[91].mxu0 }
 0x249   :  { %v7733_v1 = vadd.f32 %v7732_v22, %v7731_v51 }
 0x24a   :  { %v7664_v25 = vpop.f32.mrb[88].mxu1  ;;  %v10885_v10 = vadd.f32 %v7727_v32, %v2867_v2 }
 0x24b   :  { %v7665_v63 = vpop.f32.mrb[89].mxu1 }
 0x24c   :  { %v7666_v27 = vadd.f32 %v7665_v63, %v7664_v25  ;;  %v7667_v16 = vpop.f32.mrb[90].mxu1 }
 0x24d   :  { %v7668_v17 = vpop.f32.mrb[91].mxu1  ;;  %v7734_v15 = vpop.f32.mrb[92].mxu0 }
 0x24e   :  { %v2872_v60 = vadd.f32 %v7666_v27, %v10680_v33  ;;  %v7669_v26 = vadd.f32 %v7668_v17, %v7667_v16  ;;  %v7735_v24 = vpop.f32.mrb[93].mxu0 }
 0x24f   :  { %v7736_v58 = vadd.f32 %v7735_v24, %v7734_v15  ;;  %v7737_v50 = vpop.f32.mrb[94].mxu0 }
 0x250   :  { %v2875_v8 = vadd.f32 %v7669_v26, %v10692_v59  ;;  %v10889_v9 = vadd.f32 %v7730_v23, %v2872_v60  ;;  %v7738_v4 = vpop.f32.mrb[95].mxu0 }
 0x251   :  { %v7739_v36 = vadd.f32 %v7738_v4, %v7737_v50 }
 0x252   :  { %v7670_v6 = vpop.f32.mrb[92].mxu1  ;;  %v10891_v32 = vadd.f32 %v7733_v1, %v2875_v8 }
 0x253   :  { %v7671_v55 = vpop.f32.mrb[93].mxu1 }
 0x254   :  { %v7672_v2 = vadd.f32 %v7671_v55, %v7670_v6  ;;  %v7673_v51 = vpop.f32.mrb[94].mxu1 }
 0x255   :  { %v7674_v22 = vpop.f32.mrb[95].mxu1 }
 0x256   :  { %v2880_v33 = vadd.f32 %v7672_v2, %v10728_v31  ;;  %v7675_v25 = vadd.f32 %v7674_v22, %v7673_v51 }
 0x258   :  { %v2883_v63 = vadd.f32 %v7675_v25, %v10740_v18  ;;  %v10895_v27 = vadd.f32 %v7736_v58, %v2880_v33 }
 0x25a   :  { %v7768_v59 = vpop.f32.mrb[96].mxu1  ;;  %v10897_v23 = vadd.f32 %v7739_v36, %v2883_v63 }
 0x25b   :  { %v10900_v16 = vadd.f32 %v7768_v59, %v10838_v14  ;;  %v3017_v1 = vpop.f32.mrb[97].mxu1 }
 0x25c   :  { %v10903_v17 = vadd.f32 %v3017_v1, %v10802_v41  ;;  %v7769_v60 = vpop.f32.mrb[98].mxu1 }
 0x25d   :  { %v10906_v26 = vadd.f32 %v7769_v60, %v10843_v19  ;;  %v3020_v31 = vpop.f32.mrb[99].mxu1  ;;  %v3098_v18 = vsel %vm3083_vm1, %v10900_v16, 0.0 }
 0x25e   :  { %v10911_v15 = vadd.f32 %v3020_v31, %v10810_v30  ;;  %v3099_v24 = vadd.f32 %v3098_v18, %v10543_v21  ;;  %v3084_v14 = vsel %vm3083_vm1, %v10903_v17, 0.0 }
 0x25f   :  { %v3085_v8 = vadd.f32 %v3084_v14, %v10519_v40  ;;  %v3105_v41 = vsel %vm3083_vm1, %v10906_v26, 0.0 }
 0x260   :  { %3100 = vadd.xlane.f32.xlu1 %v3099_v24  ;;  %v3091_v19 = vsel %vm3083_vm1, %v10911_v15, 0.0  ;;  %v3106_v50 = vadd.f32 %v3105_v41, %v10549_v44  ;;  %v8645_v41 = vld [vmem:[%s12794_s2 + $0x1cc] ss:$16 sps:$4 sm:$0xff]  }
 0x261   :  { %3086 = vadd.xlane.f32.xlu0 %v3085_v8  ;;  %v3092_v4 = vadd.f32 %v3091_v19, %v10525_v53  ;;  %v8642_v8 = vld [vmem:[%s12794_s2 + $0x1c4] ss:$16 sps:$4 sm:$0xff]  }
 0x262   :  { %v7772_v58 = vpop.f32.mrb[100].mxu1 }
 0x263   :  { %v10923_v30 = vadd.f32 %v7772_v58, %v10871_v45  ;;  %v3033_v21 = vpop.f32.mrb[101].mxu1 }
 0x264   :  { %v10927_v6 = vadd.f32 %v3033_v21, %v10865_v20  ;;  %v7773_v40 = vpop.f32.mrb[102].mxu1  ;;  %3107 = vadd.xlane.f32.xlu1 %v3106_v50  ;;  %v8640_v50 = vld [vmem:[%s12794_s2 + $0x1c0] ss:$16 sps:$4 sm:$0xff]   ;;  %v8643_v21 = vld [vmem:[%s12794_s2 + $0x1c8] ss:$16 sps:$4 sm:$0xff]  }
 0x265   :  { %v10930_v36 = vadd.f32 %v7773_v40, %v10873_v35  ;;  %v3036_v55 = vpop.f32.mrb[103].mxu1  ;;  %3093 = vadd.xlane.f32.xlu0 %v3092_v4  ;;  %v3126_v20 = vsel %vm3083_vm1, %v10923_v30, 0.0 }
 0x266   :  { %v10933_v2 = vadd.f32 %v3036_v55, %v10867_v47  ;;  %v3112_v44 = vsel %vm3083_vm1, %v10927_v6, 0.0 }
 0x267   :  { %v3113_v45 = vadd.f32 %v3112_v44, %v10567_v29  ;;  %v3133_v22 = vsel %vm3083_vm1, %v10930_v36, 0.0  ;;  %v3127_v29 = vadd.f32 %v3126_v20, %v10591_v57  ;;  %v8636_v57 = vld [vmem:[%s12794_s2 + $0x1a4] ss:$16 sps:$4 sm:$0xff]  }
 0x268   :  { %v3119_v53 = vsel %vm3083_vm1, %v10933_v2, 0.0  ;;  %4323 = vmatprep.subr.bf16.mxu0 %v8636_v57 }
 0x269   :  { %3114 = vadd.xlane.f32.xlu0 %v3113_v45  ;;  %v3120_v35 = vadd.f32 %v3119_v53, %v10573_v38  ;;  %v3134_v38 = vadd.f32 %v3133_v22, %v10597_v37  ;;  %v8634_v37 = vld [vmem:[%s12794_s2 + $0x1a0] ss:$16 sps:$4 sm:$0xff]  }
 0x26a   :  { %v7776_v51 = vpop.f32.mrb[104].mxu1  ;;  %4324 = vmatpush1.bf16.msra.mxu0 %v8634_v37 }
 0x26b   :  { %v10946_v47 = vadd.f32 %v7776_v51, %v10883_v54  ;;  %v3049_v33 = vpop.f32.mrb[105].mxu1  ;;  %3121 = vadd.xlane.f32.xlu1 %v3120_v35  ;;  %4325 = vmatprep.subr.bf16.mxu0 %v8642_v8 }
 0x26c   :  { %v10950_v25 = vadd.f32 %v3049_v33, %v10877_v0  ;;  %v7777_v63 = vpop.f32.mrb[106].mxu1  ;;  %v8639_v0 = vld [vmem:[%s12794_s2 + $0x1ac] ss:$16 sps:$4 sm:$0xff]   ;;  %v8654_v33 = vld [vmem:[%s12794_s2 + $0x204] ss:$16 sps:$4 sm:$0xff]  }
 0x26d   :  { %v10953_v59 = vadd.f32 %v7777_v63, %v10885_v10  ;;  %v3052_v1 = vpop.f32.mrb[107].mxu1  ;;  %3128 = vadd.xlane.f32.xlu0 %v3127_v29  ;;  %v3154_v18 = vsel %vm3083_vm1, %v10946_v47, 0.0  ;;  %4662 = vmatprep.subr.bf16.mxu1 %v8639_v0  ;;  %v8657_v29 = vld [vmem:[%s12794_s2 + $0x20c] ss:$16 sps:$4 sm:$0xff]  }
 0x26e   :  { %v10957_v60 = vadd.f32 %v3052_v1, %v10879_v46  ;;  %v3140_v54 = vsel %vm3083_vm1, %v10950_v25, 0.0  ;;  %v8637_v46 = vld [vmem:[%s12794_s2 + $0x1a8] ss:$16 sps:$4 sm:$0xff]   ;;  %4326 = vmatpush1.bf16.msra.mxu0 %v8640_v50 }
 0x26f   :  { %3135 = vadd.xlane.f32.xlu1 %v3134_v38  ;;  %v3141_v10 = vadd.f32 %v3140_v54, %v10615_v7  ;;  %v3161_v14 = vsel %vm3083_vm1, %v10953_v59, 0.0  ;;  %4663 = vmatpush1.bf16.msra.mxu1 %v8637_v46 }
 0x270   :  { %v3147_v31 = vsel %vm3083_vm1, %v10957_v60, 0.0  ;;  %4664 = vmatprep.subr.bf16.mxu1 %v8645_v41  ;;  %v12989_v41 = vld [vmem:[#allocation29_spill] sm:$0xff] }
 0x271   :  { %3142 = vadd.xlane.f32.xlu0 %v3141_v10  ;;  %v3148_v24 = vadd.f32 %v3147_v31, %v10621_v61  ;;  %v3155_v61 = vadd.f32 %v3154_v18, %v10660_v34  ;;  %v3162_v34 = vadd.f32 %v3161_v14, %v10672_v56  ;;  %v8646_v56 = vld [vmem:[%s12794_s2 + $0x1e0] ss:$16 sps:$4 sm:$0xff]  }
 0x272   :  { %v7780_v7 = vpop.f32.mrb[108].mxu1 }
 0x273   :  { %v10988_v19 = vadd.f32 %v7780_v7, %v10895_v27  ;;  %v3065_v58 = vpop.f32.mrb[109].mxu1  ;;  %3149 = vadd.xlane.f32.xlu1 %v3148_v24  ;;  %4665 = vmatpush1.bf16.msra.mxu1 %v8643_v21 }
 0x274   :  { %v10998_v4 = vadd.f32 %v3065_v58, %v10889_v9  ;;  %v7781_v40 = vpop.f32.mrb[110].mxu1  ;;  %v8648_v9 = vld [vmem:[%s12794_s2 + $0x1e4] ss:$16 sps:$4 sm:$0xff]  }
 0x275   :  { %v11001_v27 = vadd.f32 %v7781_v40, %v10897_v23  ;;  %v3068_v55 = vpop.f32.mrb[111].mxu1  ;;  %3156 = vadd.xlane.f32.xlu0 %v3155_v61  ;;  %v8651_v23 = vld [vmem:[%s12794_s2 + $0x1ec] ss:$16 sps:$4 sm:$0xff]   ;;  %v3182_v35 = vsel %vm3083_vm1, %v10988_v19, 0.0  ;;  %4327 = vmatprep.subr.bf16.mxu0 %v8648_v9 }
 0x276   :  { %v11005_v44 = vadd.f32 %v3068_v55, %v10891_v32  ;;  %v3168_v45 = vsel %vm3083_vm1, %v10998_v4, 0.0  ;;  %v8649_v32 = vld [vmem:[%s12794_s2 + $0x1e8] ss:$16 sps:$4 sm:$0xff]   ;;  %4666 = vmatprep.subr.bf16.mxu1 %v8651_v23  ;;  %4328 = vmatpush1.bf16.msra.mxu0 %v8646_v56  ;;  %v3183_v22 = vadd.f32 %v3182_v35, %v10759_v48  ;;  %v12991_v55 = vld [vmem:[#allocation30_spill] sm:$0xff] }
 0x277   :  { %3163 = vadd.xlane.f32.xlu1 %v3162_v34  ;;  %v3169_v53 = vadd.f32 %v3168_v45, %v10711_v52  ;;  %v3189_v52 = vsel %vm3083_vm1, %v11001_v27, 0.0  ;;  %4667 = vmatpush1.bf16.msra.mxu1 %v8649_v32  ;;  %v12992_v34 = vld [vmem:[#allocation32_spill] sm:$0xff] }
 0x278   :  { %v3175_v20 = vsel %vm3083_vm1, %v11005_v44, 0.0  ;;  %v3190_v63 = vadd.f32 %v3189_v52, %v10771_v62  ;;  %4410 = vmatprep.subr.bf16.mxu0 %v8654_v33  ;;  %4749 = vmatprep.subr.bf16.mxu1 %v8657_v29  ;;  %v8652_v29 = vld [vmem:[%s12794_s2 + $0x200] ss:$16 sps:$4 sm:$0xff]  }
 0x279   :  { %3170 = vadd.xlane.f32.xlu0 %v3169_v53  ;;  %v3176_v51 = vadd.f32 %v3175_v20, %v10723_v11 }
 0x27b   :  { %3177 = vadd.xlane.f32.xlu1 %v3176_v51 }
 0x27d   :  { %3184 = vadd.xlane.f32.xlu0 %v3183_v22 }
 0x27f   :  { %3191 = vadd.xlane.f32.xlu1 %v3190_v63 }
 0x2ed   :  { %v3101_v11 = vpop.xlane.xlu1 %3100 }
 0x2ee   :  { %v11037_v1 = vmul.f32 0.0017361111, %v3101_v11  ;;  %v3087_v38 = vpop.xlane.xlu0 %3086 }
 0x2ef   :  { %v3193_v54 = vmul.f32 0.0017361111, %v3087_v38  ;;  %v8655_v38 = vld [vmem:[%s12794_s2 + $0x208] ss:$16 sps:$4 sm:$0xff]  }
 0x2f0   :  { %v3220_v48 = vsub.f32 %v10423_v13, %v11037_v1  ;;  %v3222_v57 = vsub.f32 %v10538_v43, %v11037_v1  ;;  %v3221_v0 = vsub.f32 %v10531_v39, %v11037_v1  ;;  %v8669_v39 = vld [vmem:[%s12794_s2 + $0x24c] ss:$16 sps:$4 sm:$0xff]  }
 0x2f1   :  { %v3209_v10 = vsub.f32 %v10402_v49, %v3193_v54  ;;  %v3211_v62 = vsub.f32 %v10507_v5, %v3193_v54  ;;  %v3108_v37 = vpop.xlane.xlu1 %3107  ;;  %v3213_v46 = vsub.f32 %v10903_v17, %v3193_v54  ;;  %v3210_v7 = vsub.f32 %v10407_v3, %v3193_v54  ;;  %v12990_v17 = vld [vmem:[#allocation2_spill] sm:$0xff] }
 0x2f2   :  { %v11048_v31 = vmul.f32 0.0017361111, %v3108_v37  ;;  %v3094_v18 = vpop.xlane.xlu0 %3093  ;;  %v3300_v14 = vmax.f32 %v3220_v48, 0.0  ;;  %v3212_v8 = vsub.f32 %v10514_v28, %v3193_v54  ;;  %v12994_v48 = vld [vmem:[#allocation4_spill] sm:$0xff] }
 0x2f3   :  { %v3194_v24 = vmul.f32 0.0017361111, %v3094_v18  ;;  %v3289_v13 = vmax.f32 %v3209_v10, 0.0  ;;  %v3291_v50 = vmax.f32 %v3211_v62, 0.0  ;;  %v3293_v21 = vmax.f32 %v3213_v46, 0.0  ;;  %v12995_v18 = vld [vmem:[#allocation8_spill] sm:$0xff] }
 0x2f4   :  { %v3225_v43 = vsub.f32 %v10429_v12, %v11048_v31  ;;  %v3227_v45 = vsub.f32 %v12992_v34, %v11048_v31  ;;  %v3292_v32 = vmax.f32 %v3212_v8, 0.0  ;;  %v3224_v10 = vsub.f32 %v12994_v48, %v11048_v31  ;;  %v8660_v37 = vld [vmem:[%s12794_s2 + $0x224] ss:$16 sps:$4 sm:$0xff]   ;;  %v8663_v46 = vld [vmem:[%s12794_s2 + $0x22c] ss:$16 sps:$4 sm:$0xff]  }
 0x2f5   :  { %v3214_v49 = vsub.f32 %v10412_v42, %v3194_v24  ;;  %v3216_v5 = vsub.f32 %v12989_v41, %v3194_v24  ;;  %v3218_v58 = vsub.f32 %v10911_v15, %v3194_v24  ;;  %v3215_v61 = vsub.f32 %v12990_v17, %v3194_v24  ;;  %v12997_v8 = vld [vmem:[#allocation3_spill] sm:$0xff]  ;;  %v12998_v41 = vld [vmem:[#allocation6_spill] sm:$0xff] }
 0x2f6   :  { %v3115_v40 = vpop.xlane.xlu0 %3114  ;;  %v3217_v3 = vsub.f32 %v12991_v55, %v3194_v24  ;;  %v3305_v28 = vmax.f32 %v3225_v43, 0.0  ;;  %v3290_v42 = vmax.f32 %v3210_v7, 0.0  ;;  %v3302_v7 = vmax.f32 %v3222_v57, 0.0  ;;  %v12996_v43 = vld [vmem:[#allocation31_spill] sm:$0xff] }
 0x2f7   :  { %v3294_v12 = vmax.f32 %v3214_v49, 0.0  ;;  %v3296_v9 = vmax.f32 %v3216_v5, 0.0  ;;  %v3298_v23 = vmax.f32 %v3218_v58, 0.0  ;;  %v3295_v56 = vmax.f32 %v3215_v61, 0.0  ;;  %v12999_v58 = vld [vmem:[#allocation7_spill] sm:$0xff] }
 0x2f8   :  { %v3122_v53 = vpop.xlane.xlu1 %3121  ;;  %v3297_v20 = vmax.f32 %v3217_v3, 0.0  ;;  %v11063_v35 = vmul.f32 0.0017361111, %v3115_v40  ;;  %v3375_v54 = vpack.c.bf16 %v3305_v28, %v3300_v14  ;;  %v3226_v14 = vsub.f32 %v12996_v43, %v11048_v31  ;;  %v8661_v3 = vld [vmem:[%s12794_s2 + $0x228] ss:$16 sps:$4 sm:$0xff]  }
 0x2f9   :  { %v11061_v15 = vpack.c.bf16 %v3298_v23, %v3293_v21  ;;  %v11065_v51 = vmul.f32 0.0017361111, %v3122_v53  ;;  %v3369_v52 = vpack.c.bf16 %v3294_v12, %v3289_v13  ;;  %v3370_v33 = vpack.c.bf16 %v3295_v56, %v3290_v42  ;;  %v13000_v12 = vld [vmem:[#allocation5_spill] sm:$0xff] }
 0x2fa   :  { %v3129_v22 = vpop.xlane.xlu0 %3128  ;;  %v11070_v63 = vpack.c.bf16 %v3297_v20, %v3292_v32  ;;  %v11072_v11 = vpack.c.bf16 %v3296_v9, %v3291_v50  ;;  %v3307_v13 = vmax.f32 %v3227_v45, 0.0  ;;  %v3219_v49 = vsub.f32 %v12997_v8, %v11037_v1  ;;  %v8658_v50 = vld [vmem:[%s12794_s2 + $0x220] ss:$16 sps:$4 sm:$0xff]   ;;  %v8666_v45 = vld [vmem:[%s12794_s2 + $0x244] ss:$16 sps:$4 sm:$0xff]  }
 0x2fb   :  { %12993 = vst [vmem:[#allocation29_spill] sm:$0xff] %v11061_v15  ;;  %4329 = vmatprep.mubr.bf16.mxu0 %v3370_v33  ;;  %4668 = vmatprep.mubr.bf16.mxu1 %v3370_v33  ;;  %v3235_v24 = vsub.f32 %v12995_v18, %v11065_v51  ;;  %v3230_v5 = vsub.f32 %v12998_v41, %v11063_v35  ;;  %v11095_v61 = vmul.f32 0.0017361111, %v3129_v22  ;;  %v3301_v40 = vmax.f32 %v3221_v0, 0.0  ;;  %v13001_v22 = vld [vmem:[#allocation10_spill] sm:$0xff]  ;;  %v13033_v15 = vld [vmem:[#allocation45_spill] sm:$0xff] }
 0x2fc   :  { %v3136_v62 = vpop.xlane.xlu1 %3135  ;;  %4330 = vmatmul.mubr.bf16.vlgmr.msra.gmra.mrb[96].mxu0 %v3369_v52  ;;  %4669 = vmatmul.mubr.bf16.vlgmr.msra.gmra.mrb[112].mxu1 %v3369_v52  ;;  %v3234_v17 = vsub.f32 %v12999_v58, %v11065_v51  ;;  %v11100_v21 = vpack.c.bf16 %v3307_v13, %v3302_v7  ;;  %v3306_v55 = vmax.f32 %v3226_v14, 0.0  ;;  %v3304_v34 = vmax.f32 %v3224_v10, 0.0  ;;  %v8664_v52 = vld [vmem:[%s12794_s2 + $0x240] ss:$16 sps:$4 sm:$0xff]   ;;  %v13004_v10 = vld [vmem:[#allocation33_spill] sm:$0xff] }
 0x2fd   :  { %4339 = vmatprep.mubr.bf16.mxu0 %v3375_v54  ;;  %4411 = vmatpush1.bf16.msra.mxu0 %v8652_v29  ;;  %v3229_v9 = vsub.f32 %v13000_v12, %v11063_v35  ;;  %v11113_v23 = vmul.f32 0.0017361111, %v3136_v62  ;;  %v3315_v0 = vmax.f32 %v3235_v24, 0.0  ;;  %v3299_v42 = vmax.f32 %v3219_v49, 0.0  ;;  %v13002_v29 = vld [vmem:[#allocation34_spill] sm:$0xff]  ;;  %v13005_v7 = vld [vmem:[#allocation9_spill] sm:$0xff] }
 0x2fe   :  { %v3143_v57 = vpop.xlane.xlu0 %3142  ;;  %4678 = vmatprep.mubr.bf16.mxu1 %v3375_v54  ;;  %4750 = vmatpush1.bf16.msra.mxu1 %v8655_v38  ;;  %v11118_v53 = vpack.c.bf16 %v3306_v55, %v3301_v40  ;;  %v3310_v56 = vmax.f32 %v3230_v5, 0.0  ;;  %v3314_v32 = vmax.f32 %v3234_v17, 0.0  ;;  %v3240_v33 = vsub.f32 %v13001_v22, %v11095_v61  ;;  %v13003_v54 = vld [vmem:[#allocation36_spill] sm:$0xff]  ;;  %v8667_v18 = vld [vmem:[%s12794_s2 + $0x248] ss:$16 sps:$4 sm:$0xff]  }
 0x2ff   :  { %4412 = vmatprep.subr.bf16.mxu0 %v8660_v37  ;;  %4751 = vmatprep.subr.bf16.mxu1 %v8663_v46  ;;  %v3232_v38 = vsub.f32 %v13002_v29, %v11063_v35  ;;  %v3237_v48 = vsub.f32 %v13003_v54, %v11065_v51  ;;  %v3231_v62 = vsub.f32 %v13004_v10, %v11063_v35  ;;  %v3309_v24 = vmax.f32 %v3229_v9, 0.0  ;;  %v8672_v49 = vld [vmem:[%s12794_s2 + $0x264] ss:$16 sps:$4 sm:$0xff]   ;;  %v8675_v41 = vld [vmem:[%s12794_s2 + $0x26c] ss:$16 sps:$4 sm:$0xff]  }
 0x300   :  { %v3150_v28 = vpop.xlane.xlu1 %3149  ;;  %v3374_v46 = vpack.c.bf16 %v3304_v34, %v3299_v42  ;;  %v3239_v13 = vsub.f32 %v13005_v7, %v11095_v61  ;;  %v11138_v43 = vmul.f32 0.0017361111, %v3143_v57  ;;  %v3380_v8 = vpack.c.bf16 %v3315_v0, %v3310_v56  ;;  %v13006_v5 = vld [vmem:[#allocation12_spill] sm:$0xff]  ;;  %v13007_v40 = vld [vmem:[#allocation11_spill] sm:$0xff] }
 0x301   :  { %4413 = vmatpush1.bf16.msra.mxu0 %v8658_v50  ;;  %v11131_v37 = vmul.f32 0.0017361111, %v3150_v28  ;;  %v3245_v58 = vsub.f32 %v13006_v5, %v11113_v23  ;;  %v3379_v57 = vpack.c.bf16 %v3314_v32, %v3309_v24  ;;  %v3244_v55 = vsub.f32 %v13007_v40, %v11113_v23  ;;  %v8670_v34 = vld [vmem:[%s12794_s2 + $0x260] ss:$16 sps:$4 sm:$0xff]   ;;  %v13008_v28 = vld [vmem:[#allocation35_spill] sm:$0xff] }
 0x302   :  { %v3157_v20 = vpop.xlane.xlu0 %3156  ;;  %4752 = vmatpush1.bf16.msra.mxu1 %v8661_v3  ;;  %4414 = vmatprep.subr.bf16.mxu0 %v8666_v45  ;;  %v3320_v45 = vmax.f32 %v3240_v33, 0.0  ;;  %v3312_v12 = vmax.f32 %v3232_v38, 0.0  ;;  %v3317_v9 = vmax.f32 %v3237_v48, 0.0  ;;  %v8673_v0 = vld [vmem:[%s12794_s2 + $0x268] ss:$16 sps:$4 sm:$0xff]   ;;  %v3319_v56 = vmax.f32 %v3239_v13, 0.0 }
 0x303   :  { %4753 = vmatprep.subr.bf16.mxu1 %v8669_v39  ;;  %v11148_v17 = vmul.f32 0.0017361111, %v3157_v20  ;;  %v3236_v39 = vsub.f32 %v13008_v28, %v11065_v51  ;;  %v8678_v42 = vld [vmem:[%s12794_s2 + $0x284] ss:$16 sps:$4 sm:$0xff]   ;;  %v8681_v38 = vld [vmem:[%s12794_s2 + $0x28c] ss:$16 sps:$4 sm:$0xff]  }
 0x304   :  { %v3164_v14 = vpop.xlane.xlu1 %3163  ;;  %4340 = vmatmul.mubr.bf16.gmra.mrb[100].mxu0 %v3374_v46  ;;  %4679 = vmatmul.mubr.bf16.gmra.mrb[116].mxu1 %v3374_v46  ;;  %v13009_v32 = vld [vmem:[#allocation16_spill] sm:$0xff]  ;;  %v3325_v54 = vmax.f32 %v3245_v58, 0.0  ;;  %v13012_v48 = vld [vmem:[#allocation14_spill] sm:$0xff]  ;;  %v13013_v46 = vld [vmem:[#allocation13_spill] sm:$0xff]  ;;  %v11178_v24 = vpack.c.bf16 %v3317_v9, %v3312_v12  ;;  %v3311_v12 = vmax.f32 %v3231_v62, 0.0 }
 0x305   :  { %v11150_v50 = vmul.f32 0.0017361111, %v3164_v14  ;;  %4349 = vmatprep.mubr.bf16.mxu0 %v3380_v8  ;;  %4415 = vmatpush1.bf16.msra.mxu0 %v8664_v52  ;;  %v3255_v20 = vsub.f32 %v13009_v32, %v11131_v37  ;;  %v13010_v52 = vld [vmem:[#allocation15_spill] sm:$0xff]  ;;  %v13011_v33 = vld [vmem:[#allocation20_spill] sm:$0xff]  ;;  %v3250_v10 = vsub.f32 %v13012_v48, %v11138_v43  ;;  %v3324_v14 = vmax.f32 %v3244_v55, 0.0  ;;  %v13016_v9 = vld [vmem:[#allocation38_spill] sm:$0xff] }
 0x306   :  { %v3171_v3 = vpop.xlane.xlu0 %3170  ;;  %4688 = vmatprep.mubr.bf16.mxu1 %v3380_v8  ;;  %4754 = vmatpush1.bf16.msra.mxu1 %v8667_v18  ;;  %v3254_v22 = vsub.f32 %v13010_v52, %v11131_v37  ;;  %v3249_v18 = vsub.f32 %v13013_v46, %v11138_v43  ;;  %v13014_v8 = vld [vmem:[#allocation18_spill] sm:$0xff]  ;;  %v8679_v40 = vld [vmem:[%s12794_s2 + $0x288] ss:$16 sps:$4 sm:$0xff]   ;;  %v3242_v55 = vsub.f32 %v13016_v9, %v11095_v61  ;;  %v13017_v28 = vld [vmem:[#allocation40_spill] sm:$0xff] }
 0x307   :  { %v3265_v29 = vsub.f32 %v13011_v33, %v11150_v50  ;;  %4416 = vmatprep.subr.bf16.mxu0 %v8672_v49  ;;  %4755 = vmatprep.subr.bf16.mxu1 %v8675_v41  ;;  %v11180_v7 = vmul.f32 0.0017361111, %v3171_v3  ;;  %v3260_v49 = vsub.f32 %v13014_v8, %v11148_v17  ;;  %v13015_v41 = vld [vmem:[#allocation19_spill] sm:$0xff]  ;;  %v8676_v58 = vld [vmem:[%s12794_s2 + $0x280] ss:$16 sps:$4 sm:$0xff]   ;;  %v3316_v3 = vmax.f32 %v3236_v39, 0.0 }
 0x308   :  { %v3178_v13 = vpop.xlane.xlu1 %3177  ;;  %v3264_v5 = vsub.f32 %v13015_v41, %v11150_v50  ;;  %v3247_v32 = vsub.f32 %v13017_v28, %v11113_v23  ;;  %v3335_v52 = vmax.f32 %v3255_v20, 0.0  ;;  %v3334_v33 = vmax.f32 %v3254_v22, 0.0  ;;  %v13018_v46 = vld [vmem:[#allocation17_spill] sm:$0xff]  ;;  %v13020_v28 = vld [vmem:[#allocation22_spill] sm:$0xff] }
 0x309   :  { %4417 = vmatpush1.bf16.msra.mxu0 %v8670_v34  ;;  %v8684_v34 = vld [vmem:[%s12794_s2 + $0x2a4] ss:$16 sps:$4 sm:$0xff]   ;;  %v3345_v48 = vmax.f32 %v3265_v29, 0.0  ;;  %v3259_v8 = vsub.f32 %v13018_v46, %v11148_v17  ;;  %v11201_v62 = vmul.f32 0.0017361111, %v3178_v13  ;;  %v3385_v39 = vpack.c.bf16 %v3325_v54, %v3320_v45  ;;  %v13021_v13 = vld [vmem:[#allocation37_spill] sm:$0xff] }
 0x30a   :  { %4756 = vmatpush1.bf16.msra.mxu1 %v8673_v0  ;;  %4418 = vmatprep.subr.bf16.mxu0 %v8678_v42  ;;  %v8687_v41 = vld [vmem:[%s12794_s2 + $0x2ac] ss:$16 sps:$4 sm:$0xff]   ;;  %v3330_v0 = vmax.f32 %v3250_v10, 0.0  ;;  %v11206_v42 = vpack.c.bf16 %v3316_v3, %v3311_v12  ;;  %v3185_v9 = vpop.xlane.xlu0 %3184  ;;  %v3329_v20 = vmax.f32 %v3249_v18, 0.0  ;;  %v3340_v22 = vmax.f32 %v3260_v49, 0.0 }
 0x30b   :  { %4757 = vmatprep.subr.bf16.mxu1 %v8681_v38  ;;  %v3344_v29 = vmax.f32 %v3264_v5, 0.0  ;;  %v3270_v46 = vsub.f32 %v13020_v28, %v11180_v7  ;;  %v8682_v45 = vld [vmem:[%s12794_s2 + $0x2a0] ss:$16 sps:$4 sm:$0xff]   ;;  %v3384_v38 = vpack.c.bf16 %v3324_v14, %v3319_v56  ;;  %v3322_v54 = vmax.f32 %v3242_v55, 0.0  ;;  %v8690_v18 = vld [vmem:[%s12794_s2 + $0x2c4] ss:$16 sps:$4 sm:$0xff]  }
 0x30c   :  { %13019 = vst [vmem:[#allocation2_spill] sm:$0xff] %v11206_v42  ;;  %4350 = vmatmul.mubr.bf16.gmra.mrb[104].mxu0 %v3379_v57  ;;  %4689 = vmatmul.mubr.bf16.gmra.mrb[120].mxu1 %v3379_v57  ;;  %v3327_v10 = vmax.f32 %v3247_v32, 0.0  ;;  %v3241_v12 = vsub.f32 %v13021_v13, %v11095_v61  ;;  %v8685_v57 = vld [vmem:[%s12794_s2 + $0x2a8] ss:$16 sps:$4 sm:$0xff]   ;;  %v3390_v49 = vpack.c.bf16 %v3335_v52, %v3330_v0  ;;  %v3339_v56 = vmax.f32 %v3259_v8, 0.0  ;;  %v3192_v3 = vpop.xlane.xlu1 %3191  ;;  %v13022_v55 = vld [vmem:[#allocation24_spill] sm:$0xff] }
 0x30d   :  { %4359 = vmatprep.mubr.bf16.mxu0 %v3385_v39  ;;  %4419 = vmatpush1.bf16.msra.mxu0 %v8676_v58  ;;  %v11221_v5 = vpack.c.bf16 %v3334_v33, %v3329_v20  ;;  %v11223_v58 = vpack.c.bf16 %v3345_v48, %v3340_v22  ;;  %v11225_v14 = vmul.f32 0.0017361111, %v3185_v9  ;;  %v3275_v32 = vsub.f32 %v13022_v55, %v11201_v62  ;;  %v13024_v52 = vld [vmem:[#allocation39_spill] sm:$0xff]  ;;  %v8688_v9 = vld [vmem:[%s12794_s2 + $0x2c0] ss:$16 sps:$4 sm:$0xff]  }
 0x30e   :  { %4698 = vmatprep.mubr.bf16.mxu1 %v3385_v39  ;;  %4758 = vmatpush1.bf16.msra.mxu1 %v8679_v40  ;;  %v8693_v40 = vld [vmem:[%s12794_s2 + $0x2cc] ss:$16 sps:$4 sm:$0xff]   ;;  %v11232_v39 = vpack.c.bf16 %v3327_v10, %v3322_v54  ;;  %v3246_v33 = vsub.f32 %v13024_v52, %v11113_v23  ;;  %v11236_v48 = vpack.c.bf16 %v3344_v29, %v3339_v56  ;;  %v11238_v8 = vmax.f32 %v3270_v46, 0.0  ;;  %v8691_v20 = vld [vmem:[%s12794_s2 + $0x2c8] ss:$16 sps:$4 sm:$0xff]   ;;  %v13026_v28 = vld [vmem:[#allocation44_spill] sm:$0xff] }
 0x30f   :  { %4420 = vmatprep.subr.bf16.mxu0 %v8684_v34  ;;  %4759 = vmatprep.subr.bf16.mxu1 %v8687_v41  ;;  %v3321_v0 = vmax.f32 %v3241_v12, 0.0  ;;  %v13025_v34 = vld [vmem:[#allocation42_spill] sm:$0xff]  ;;  %v3257_v29 = vsub.f32 %v13026_v28, %v11131_v37  ;;  %v13027_v46 = vld [vmem:[#allocation41_spill] sm:$0xff]  ;;  %v13028_v10 = vld [vmem:[#allocation43_spill] sm:$0xff]  ;;  %v11254_v12 = vmul.f32 0.0017361111, %v3192_v3 }
 0x310   :  { %13023 = vst [vmem:[#allocation30_spill] sm:$0xff] %v11232_v39  ;;  %v3252_v41 = vsub.f32 %v13025_v34, %v11138_v43  ;;  %v3326_v22 = vmax.f32 %v3246_v33, 0.0  ;;  %v3251_v54 = vsub.f32 %v13027_v46, %v11138_v43  ;;  %v3256_v13 = vsub.f32 %v13028_v10, %v11131_v37  ;;  %v13029_v56 = vld [vmem:[#allocation23_spill] sm:$0xff]  ;;  %v13030_v33 = vld [vmem:[#allocation46_spill] sm:$0xff]  ;;  %v13032_v55 = vld [vmem:[#allocation48_spill] sm:$0xff] }
 0x311   :  { %4421 = vmatpush1.bf16.msra.mxu0 %v8682_v45  ;;  %v8696_v45 = vld [vmem:[%s12794_s2 + $0x2e4] ss:$16 sps:$4 sm:$0xff]   ;;  %v3262_v34 = vsub.f32 %v13030_v33, %v11148_v17  ;;  %v8699_v28 = vld [vmem:[%s12794_s2 + $0x2ec] ss:$16 sps:$4 sm:$0xff]   ;;  %v11268_v10 = vmax.f32 %v3275_v32, 0.0  ;;  %v3261_v33 = vsub.f32 %v13033_v15, %v11148_v17 }
 0x312   :  { %4760 = vmatpush1.bf16.msra.mxu1 %v8685_v57  ;;  %4422 = vmatprep.subr.bf16.mxu0 %v8690_v18  ;;  %v3332_v52 = vmax.f32 %v3252_v41, 0.0  ;;  %v11266_v3 = vpack.c.bf16 %v3326_v22, %v3321_v0  ;;  %v3337_v57 = vmax.f32 %v3257_v29, 0.0  ;;  %v3331_v18 = vmax.f32 %v3251_v54, 0.0  ;;  %v8694_v0 = vld [vmem:[%s12794_s2 + $0x2e0] ss:$16 sps:$4 sm:$0xff]  }
 0x313   :  { %4761 = vmatprep.subr.bf16.mxu1 %v8693_v40  ;;  %v3336_v46 = vmax.f32 %v3256_v13, 0.0  ;;  %v3267_v41 = vsub.f32 %v13032_v55, %v11150_v50  ;;  %v13034_v40 = vld [vmem:[#allocation47_spill] sm:$0xff]  ;;  %v3342_v29 = vmax.f32 %v3262_v34, 0.0  ;;  %v13037_v15 = vld [vmem:[#allocation50_spill] sm:$0xff]  ;;  %v3341_v55 = vmax.f32 %v3261_v33, 0.0 }
 0x314   :  { %13031 = vst [vmem:[#allocation32_spill] sm:$0xff] %v11266_v3  ;;  %4360 = vmatmul.mubr.bf16.gmra.mrb[108].mxu0 %v3384_v38  ;;  %4699 = vmatmul.mubr.bf16.gmra.mrb[124].mxu1 %v3384_v38  ;;  %v3266_v39 = vsub.f32 %v13034_v40, %v11150_v50  ;;  %v8697_v38 = vld [vmem:[%s12794_s2 + $0x2e8] ss:$16 sps:$4 sm:$0xff]   ;;  %v11282_v32 = vpack.c.bf16 %v3337_v57, %v3332_v52  ;;  %v13038_v3 = vld [vmem:[#allocation52_spill] sm:$0xff]  ;;  %v8705_v52 = vld [vmem:[%s12794_s2 + $0x30c] ss:$16 sps:$4 sm:$0xff]  }
 0x315   :  { %4369 = vmatprep.mubr.bf16.mxu0 %v3390_v49  ;;  %4423 = vmatpush1.bf16.msra.mxu0 %v8688_v9  ;;  %v11284_v22 = vpack.c.bf16 %v3336_v46, %v3331_v18  ;;  %v3272_v54 = vsub.f32 %v13037_v15, %v11180_v7  ;;  %v8702_v9 = vld [vmem:[%s12794_s2 + $0x304] ss:$16 sps:$4 sm:$0xff]   ;;  %v3347_v13 = vmax.f32 %v3267_v41, 0.0  ;;  %v3277_v42 = vsub.f32 %v13038_v3, %v11201_v62  ;;  %v13040_v57 = vld [vmem:[#allocation51_spill] sm:$0xff]  ;;  %v8700_v15 = vld [vmem:[%s12794_s2 + $0x300] ss:$16 sps:$4 sm:$0xff]  }
 0x316   :  { %13035 = vst [vmem:[#allocation4_spill] sm:$0xff] %v11282_v32  ;;  %4708 = vmatprep.mubr.bf16.mxu1 %v3390_v49  ;;  %4762 = vmatpush1.bf16.msra.mxu1 %v8691_v20  ;;  %v3346_v40 = vmax.f32 %v3266_v39, 0.0  ;;  %v13039_v49 = vld [vmem:[#allocation49_spill] sm:$0xff]  ;;  %v3276_v18 = vsub.f32 %v13040_v57, %v11201_v62  ;;  %v13041_v46 = vld [vmem:[#allocation54_spill] sm:$0xff] }
 0x317   :  { %13036 = vst [vmem:[#allocation8_spill] sm:$0xff] %v11284_v22  ;;  %4424 = vmatprep.subr.bf16.mxu0 %v8696_v45  ;;  %4763 = vmatprep.subr.bf16.mxu1 %v8699_v28  ;;  %v3352_v34 = vmax.f32 %v3272_v54, 0.0  ;;  %v3271_v20 = vsub.f32 %v13039_v49, %v11180_v7  ;;  %v3282_v41 = vsub.f32 %v13041_v46, %v11225_v14  ;;  %v3357_v45 = vmax.f32 %v3277_v42, 0.0  ;;  %v13042_v28 = vld [vmem:[#allocation56_spill] sm:$0xff]  ;;  %v13043_v57 = vld [vmem:[#allocation53_spill] sm:$0xff] }
 0x318   :  { %v11302_v39 = vpack.c.bf16 %v3347_v13, %v3342_v29  ;;  %v11304_v33 = vpack.c.bf16 %v3346_v40, %v3341_v55  ;;  %v3287_v3 = vsub.f32 %v13042_v28, %v11254_v12  ;;  %v3356_v49 = vmax.f32 %v3276_v18, 0.0  ;;  %v8703_v42 = vld [vmem:[%s12794_s2 + $0x308] ss:$16 sps:$4 sm:$0xff]  }
 0x319   :  { %4425 = vmatpush1.bf16.msra.mxu0 %v8694_v0  ;;  %v3351_v54 = vmax.f32 %v3271_v20, 0.0  ;;  %v3362_v22 = vmax.f32 %v3282_v41, 0.0  ;;  %v3281_v32 = vsub.f32 %v13043_v57, %v11225_v14  ;;  %v11316_v29 = vpack.c.bf16 %v3357_v45, %v3352_v34  ;;  %v13044_v0 = vld [vmem:[#allocation55_spill] sm:$0xff]  ;;  %v8708_v20 = vld [vmem:[%s12794_s2 + $0x324] ss:$16 sps:$4 sm:$0xff]  }
 0x31a   :  { %4764 = vmatpush1.bf16.msra.mxu1 %v8697_v38  ;;  %4426 = vmatprep.subr.bf16.mxu0 %v8702_v9  ;;  %v3367_v13 = vmax.f32 %v3287_v3, 0.0  ;;  %v3286_v55 = vsub.f32 %v13044_v0, %v11254_v12  ;;  %v3223_v40 = vsub.f32 %v10900_v16, %v11037_v1  ;;  %v8711_v38 = vld [vmem:[%s12794_s2 + $0x32c] ss:$16 sps:$4 sm:$0xff]   ;;  %v3228_v18 = vsub.f32 %v10906_v26, %v11048_v31  ;;  %v8706_v26 = vld [vmem:[%s12794_s2 + $0x320] ss:$16 sps:$4 sm:$0xff]  }
 0x31b   :  { %4765 = vmatprep.subr.bf16.mxu1 %v8705_v52  ;;  %v11328_v9 = vpack.c.bf16 %v3356_v49, %v3351_v54  ;;  %v3361_v34 = vmax.f32 %v3281_v32, 0.0  ;;  %v3233_v46 = vsub.f32 %v10927_v6, %v11063_v35  ;;  %v3238_v41 = vsub.f32 %v10933_v2, %v11065_v51  ;;  %v8709_v2 = vld [vmem:[%s12794_s2 + $0x328] ss:$16 sps:$4 sm:$0xff]   ;;  %v8714_v51 = vld [vmem:[%s12794_s2 + $0x344] ss:$16 sps:$4 sm:$0xff]  }
 0x31c   :  { %4370 = vmatmul.mubr.bf16.gmra.mrb[112].mxu0 %v11221_v5  ;;  %4709 = vmatmul.mubr.bf16.gmra.mrb[128].mxu1 %v11221_v5  ;;  %v11336_v16 = vpack.c.bf16 %v3367_v13, %v3362_v22  ;;  %v3366_v1 = vmax.f32 %v3286_v55, 0.0  ;;  %v3303_v52 = vmax.f32 %v3223_v40, 0.0  ;;  %v3308_v31 = vmax.f32 %v3228_v18, 0.0  ;;  %v8723_v13 = vld [vmem:[%s12794_s2 + $0x36c] ss:$16 sps:$4 sm:$0xff]   ;;  %v13045_v0 = vld [vmem:[#allocation28_spill] sm:$0xff] }
 0x31d   :  { %4379 = vmatprep.mubr.bf16.mxu0 %v11223_v58  ;;  %4427 = vmatpush1.bf16.msra.mxu0 %v8700_v15  ;;  %v3313_v6 = vmax.f32 %v3233_v46, 0.0  ;;  %v3243_v35 = vsub.f32 %v10923_v30, %v11095_v61  ;;  %v3248_v5 = vsub.f32 %v10930_v36, %v11113_v23  ;;  %v3318_v22 = vmax.f32 %v3238_v41, 0.0  ;;  %v8717_v61 = vld [vmem:[%s12794_s2 + $0x34c] ss:$16 sps:$4 sm:$0xff]   ;;  %v13047_v18 = vld [vmem:[#allocation26_spill] sm:$0xff] }
 0x31e   :  { %4718 = vmatprep.mubr.bf16.mxu1 %v11223_v58  ;;  %4766 = vmatpush1.bf16.msra.mxu1 %v8703_v42  ;;  %v11355_v32 = vpack.c.bf16 %v3366_v1, %v3361_v34  ;;  %v3253_v30 = vsub.f32 %v10950_v25, %v11138_v43  ;;  %v3258_v36 = vsub.f32 %v10957_v60, %v11131_v37  ;;  %v8712_v37 = vld [vmem:[%s12794_s2 + $0x340] ss:$16 sps:$4 sm:$0xff]   ;;  %v8726_v41 = vld [vmem:[%s12794_s2 + $0x384] ss:$16 sps:$4 sm:$0xff]  }
 0x31f   :  { %4428 = vmatprep.subr.bf16.mxu0 %v8708_v20  ;;  %4767 = vmatprep.subr.bf16.mxu1 %v8711_v38  ;;  %v11364_v23 = vpack.c.bf16 %v3308_v31, %v3303_v52  ;;  %v3323_v58 = vmax.f32 %v3243_v35, 0.0  ;;  %v3328_v45 = vmax.f32 %v3248_v5, 0.0  ;;  %v3263_v28 = vsub.f32 %v10946_v47, %v11148_v17  ;;  %v8718_v34 = vld [vmem:[%s12794_s2 + $0x360] ss:$16 sps:$4 sm:$0xff]   ;;  %v8729_v31 = vld [vmem:[%s12794_s2 + $0x38c] ss:$16 sps:$4 sm:$0xff]  }
 0x320   :  { %v11368_v3 = vpack.c.bf16 %v3318_v22, %v3313_v6  ;;  %v3333_v15 = vmax.f32 %v3253_v30, 0.0  ;;  %v3338_v25 = vmax.f32 %v3258_v36, 0.0  ;;  %v3268_v60 = vsub.f32 %v10953_v59, %v11150_v50  ;;  %v8715_v59 = vld [vmem:[%s12794_s2 + $0x348] ss:$16 sps:$4 sm:$0xff]   ;;  %v8732_v36 = vld [vmem:[%s12794_s2 + $0x3a4] ss:$16 sps:$4 sm:$0xff]  }
 0x321   :  { %4429 = vmatpush1.bf16.msra.mxu0 %v8706_v26  ;;  %v11375_v43 = vpack.c.bf16 %v3328_v45, %v3323_v58  ;;  %v3343_v54 = vmax.f32 %v3263_v28, 0.0  ;;  %v3273_v49 = vsub.f32 %v10998_v4, %v11180_v7  ;;  %v3278_v47 = vsub.f32 %v11005_v44, %v11201_v62  ;;  %v8720_v44 = vld [vmem:[%s12794_s2 + $0x364] ss:$16 sps:$4 sm:$0xff]   ;;  %v13050_v58 = vld [vmem:[#allocation25_spill] sm:$0xff] }
 0x322   :  { %4768 = vmatpush1.bf16.msra.mxu1 %v8709_v2  ;;  %4430 = vmatprep.subr.bf16.mxu0 %v8714_v51  ;;  %v11384_v17 = vpack.c.bf16 %v3338_v25, %v3333_v15  ;;  %v3348_v50 = vmax.f32 %v3268_v60, 0.0  ;;  %v3283_v57 = vsub.f32 %v10988_v19, %v11225_v14  ;;  %v3288_v42 = vsub.f32 %v11001_v27, %v11254_v12  ;;  %v13046_v27 = vld [vmem:[#allocation21_spill] sm:$0xff]  ;;  %v13049_v51 = vld [vmem:[#allocation27_spill] sm:$0xff]  ;;  %v8738_v25 = vld [vmem:[%s12794_s2 + $0x3c4] ss:$16 sps:$4 sm:$0xff]  }
 0x323   :  { %4769 = vmatprep.subr.bf16.mxu1 %v8717_v61  ;;  %v3400_v4 = vpack.c.bf16 %v11268_v10, %v11238_v8  ;;  %v3285_v55 = vsub.f32 %v13045_v0, %v11254_v12  ;;  %v3353_v40 = vmax.f32 %v3273_v49, 0.0  ;;  %v3358_v19 = vmax.f32 %v3278_v47, 0.0  ;;  %v8727_v2 = vld [vmem:[%s12794_s2 + $0x388] ss:$16 sps:$4 sm:$0xff]   ;;  %v8735_v61 = vld [vmem:[%s12794_s2 + $0x3ac] ss:$16 sps:$4 sm:$0xff]  }
 0x324   :  { %4380 = vmatmul.mubr.bf16.gmra.mrb[116].mxu0 %v11236_v48  ;;  %4719 = vmatmul.mubr.bf16.gmra.mrb[132].mxu1 %v11236_v48  ;;  %v3269_v8 = vsub.f32 %v13046_v27, %v11180_v7  ;;  %v11404_v10 = vpack.c.bf16 %v3348_v50, %v3343_v54  ;;  %v3363_v20 = vmax.f32 %v3283_v57, 0.0  ;;  %v3368_v38 = vmax.f32 %v3288_v42, 0.0  ;;  %v8721_v7 = vld [vmem:[%s12794_s2 + $0x368] ss:$16 sps:$4 sm:$0xff]   ;;  %v8744_v47 = vld [vmem:[%s12794_s2 + $0x3e4] ss:$16 sps:$4 sm:$0xff]  }
 0x325   :  { %4389 = vmatprep.mubr.bf16.mxu0 %v3400_v4  ;;  %4431 = vmatpush1.bf16.msra.mxu0 %v8712_v37  ;;  %v3280_v46 = vsub.f32 %v13047_v18, %v11225_v14  ;;  %v11411_v1 = vpack.c.bf16 %v3358_v19, %v3353_v40  ;;  %v13048_v48 = vsub.f32 %v13029_v56, %v11201_v62  ;;  %v3365_v6 = vmax.f32 %v3285_v55, 0.0  ;;  %v8724_v62 = vld [vmem:[%s12794_s2 + $0x380] ss:$16 sps:$4 sm:$0xff]   ;;  %v8733_v28 = vld [vmem:[%s12794_s2 + $0x3a8] ss:$16 sps:$4 sm:$0xff]  }
 0x326   :  { %4728 = vmatprep.mubr.bf16.mxu1 %v3400_v4  ;;  %4770 = vmatpush1.bf16.msra.mxu1 %v8715_v59  ;;  %v11422_v26 = vpack.c.bf16 %v3368_v38, %v3363_v20  ;;  %v3349_v35 = vmax.f32 %v3269_v8, 0.0  ;;  %v3284_v22 = vsub.f32 %v13049_v51, %v11254_v12  ;;  %v3279_v45 = vsub.f32 %v13050_v58, %v11225_v14  ;;  %v8730_v12 = vld [vmem:[%s12794_s2 + $0x3a0] ss:$16 sps:$4 sm:$0xff]   ;;  %v8741_v14 = vld [vmem:[%s12794_s2 + $0x3cc] ss:$16 sps:$4 sm:$0xff]  }
 0x327   :  { %v3354_v52 = vmax.f32 %v13048_v48, 0.0  ;;  %4432 = vmatprep.subr.bf16.mxu0 %v8720_v44  ;;  %4771 = vmatprep.subr.bf16.mxu1 %v8723_v13  ;;  %v3360_v56 = vmax.f32 %v3280_v46, 0.0  ;;  %v8736_v37 = vld [vmem:[%s12794_s2 + $0x3c0] ss:$16 sps:$4 sm:$0xff]   ;;  %v8739_v49 = vld [vmem:[%s12794_s2 + $0x3c8] ss:$16 sps:$4 sm:$0xff]  }
 0x328   :  { %v3364_v15 = vmax.f32 %v3284_v22, 0.0  ;;  %v3359_v60 = vmax.f32 %v3279_v45, 0.0  ;;  %v8747_v59 = vld [vmem:[%s12794_s2 + $0x3ec] ss:$16 sps:$4 sm:$0xff]   ;;  %v8742_v50 = vld [vmem:[%s12794_s2 + $0x3e0] ss:$16 sps:$4 sm:$0xff]  }
 0x329   :  { %4433 = vmatpush1.bf16.msra.mxu0 %v8718_v34  ;;  %v3399_v5 = vpack.c.bf16 %v3354_v52, %v3349_v35  ;;  %v3405_v30 = vpack.c.bf16 %v3365_v6, %v3360_v56  ;;  %v8745_v57 = vld [vmem:[%s12794_s2 + $0x3e8] ss:$16 sps:$4 sm:$0xff]   ;;  %v8750_v42 = vld [vmem:[%s12794_s2 + $0x404] ss:$16 sps:$4 sm:$0xff]   ;;  %v8753_v4 = vld [vmem:[%s12794_s2 + $0x40c] ss:$16 sps:$4 sm:$0xff]  }
 0x32a   :  { %4772 = vmatpush1.bf16.msra.mxu1 %v8721_v7  ;;  %4434 = vmatprep.subr.bf16.mxu0 %v8726_v41  ;;  %v3404_v54 = vpack.c.bf16 %v3364_v15, %v3359_v60  ;;  %v8751_v44 = vld [vmem:[%s12794_s2 + $0x408] ss:$16 sps:$4 sm:$0xff]   ;;  %v8756_v13 = vld [vmem:[%s12794_s2 + $0x424] ss:$16 sps:$4 sm:$0xff]   ;;  %v8759_v0 = vld [vmem:[%s12794_s2 + $0x42c] ss:$16 sps:$4 sm:$0xff]  }
 0x32b   :  { %4773 = vmatprep.subr.bf16.mxu1 %v8729_v31  ;;  %v8754_v55 = vld [vmem:[%s12794_s2 + $0x420] ss:$16 sps:$4 sm:$0xff]   ;;  %v8757_v40 = vld [vmem:[%s12794_s2 + $0x428] ss:$16 sps:$4 sm:$0xff]   ;;  %v8762_v19 = vld [vmem:[%s12794_s2 + $0x444] ss:$16 sps:$4 sm:$0xff]  }
 0x32c   :  { %4390 = vmatmul.mubr.bf16.gmra.mrb[120].mxu0 %v3399_v5  ;;  %4729 = vmatmul.mubr.bf16.gmra.mrb[136].mxu1 %v3399_v5  ;;  %v8763_v27 = vld [vmem:[%s12794_s2 + $0x448] ss:$16 sps:$4 sm:$0xff]   ;;  %v8768_v8 = vld [vmem:[%s12794_s2 + $0x464] ss:$16 sps:$4 sm:$0xff]   ;;  %v8771_v20 = vld [vmem:[%s12794_s2 + $0x46c] ss:$16 sps:$4 sm:$0xff]  }
 0x32d   :  { %4399 = vmatprep.mubr.bf16.mxu0 %v3405_v30  ;;  %4435 = vmatpush1.bf16.msra.mxu0 %v8724_v62  ;;  %v8766_v38 = vld [vmem:[%s12794_s2 + $0x460] ss:$16 sps:$4 sm:$0xff]   ;;  %v8769_v34 = vld [vmem:[%s12794_s2 + $0x468] ss:$16 sps:$4 sm:$0xff]   ;;  %v8789_v48 = vld [vmem:[%s12795_s3 + $0x54] ss:$8 sps:$4 sm:$0xff]  }
 0x32e   :  { %4738 = vmatprep.mubr.bf16.mxu1 %v3405_v30  ;;  %4774 = vmatpush1.bf16.msra.mxu1 %v8727_v2  ;;  %v13051_v18 = vld [vmem:[#allocation2_spill] sm:$0xff]  ;;  %v13054_v46 = vld [vmem:[#allocation4_spill] sm:$0xff] }
 0x32f   :  { %4436 = vmatprep.subr.bf16.mxu0 %v8732_v36  ;;  %4775 = vmatprep.subr.bf16.mxu1 %v8735_v61  ;;  %v13055_v7 = vld [vmem:[#allocation8_spill] sm:$0xff]  ;;  %v8792_v41 = vld [vmem:[%s12795_s3 + $0x64] ss:$8 sps:$4 sm:$0xff]   ;;  %v8796_v62 = vld [vmem:[%s12795_s3 + $0x80] ss:$8 sps:$4 sm:$0xff]  }
 0x330   :  { %v8787_v52 = vld [vmem:[%s12795_s3 + $0x50] ss:$8 sps:$4 sm:$0xff]   ;;  %v8795_v31 = vld [vmem:[%s12795_s3 + $0x74] ss:$8 sps:$4 sm:$0xff]   ;;  %v8798_v35 = vld [vmem:[%s12795_s3 + $0x84] ss:$8 sps:$4 sm:$0xff]  }
 0x331   :  { %4437 = vmatpush1.bf16.msra.mxu0 %v8730_v12  ;;  %v8793_v6 = vld [vmem:[%s12795_s3 + $0x70] ss:$8 sps:$4 sm:$0xff]   ;;  %v8801_v56 = vld [vmem:[%s12795_s3 + $0x94] ss:$8 sps:$4 sm:$0xff]   ;;  %v8804_v2 = vld [vmem:[%s12795_s3 + $0xa4] ss:$8 sps:$4 sm:$0xff]  }
 0x332   :  { %4776 = vmatpush1.bf16.msra.mxu1 %v8733_v28  ;;  %4438 = vmatprep.subr.bf16.mxu0 %v8738_v25  ;;  %v8799_v5 = vld [vmem:[%s12795_s3 + $0x90] ss:$8 sps:$4 sm:$0xff]   ;;  %v8802_v51 = vld [vmem:[%s12795_s3 + $0xa0] ss:$8 sps:$4 sm:$0xff]   ;;  %v8807_v22 = vld [vmem:[%s12795_s3 + $0xb4] ss:$8 sps:$4 sm:$0xff]  }
 0x333   :  { %4777 = vmatprep.subr.bf16.mxu1 %v8741_v14  ;;  %v8805_v30 = vld [vmem:[%s12795_s3 + $0xb0] ss:$8 sps:$4 sm:$0xff]   ;;  %v8810_v36 = vld [vmem:[%s12795_s3 + $0xc4] ss:$8 sps:$4 sm:$0xff]   ;;  %v8808_v61 = vld [vmem:[%s12795_s3 + $0xc0] ss:$8 sps:$4 sm:$0xff]  }
 0x334   :  { %4400 = vmatmul.mubr.bf16.gmra.mrb[124].mxu0 %v3404_v54  ;;  %4739 = vmatmul.mubr.bf16.gmra.mrb[140].mxu1 %v3404_v54  ;;  %v8813_v58 = vld [vmem:[%s12795_s3 + $0xd4] ss:$8 sps:$4 sm:$0xff]   ;;  %v8811_v45 = vld [vmem:[%s12795_s3 + $0xd0] ss:$8 sps:$4 sm:$0xff]  }
 0x335   :  { %4439 = vmatpush1.bf16.msra.mxu0 %v8736_v37  ;;  %4442 = vmatprep.mubr.bf16.mxu0 %v11070_v63 }
 0x336   :  { %4778 = vmatpush1.bf16.msra.mxu1 %v8739_v49  ;;  %4781 = vmatprep.mubr.bf16.mxu1 %v11070_v63  ;;  %v8748_v63 = vld [vmem:[%s12794_s2 + $0x400] ss:$16 sps:$4 sm:$0xff]  }
 0x337   :  { %4440 = vmatprep.subr.bf16.mxu0 %v8744_v47  ;;  %4779 = vmatprep.subr.bf16.mxu1 %v8747_v59 }
 0x339   :  { %4441 = vmatpush1.bf16.msra.mxu0 %v8742_v50 }
 0x33a   :  { %4780 = vmatpush1.bf16.msra.mxu1 %v8745_v57  ;;  %4523 = vmatprep.subr.bf16.mxu0 %v8750_v42 }
 0x33b   :  { %4862 = vmatprep.subr.bf16.mxu1 %v8753_v4 }
 0x33c   :  { %4443 = vmatmul.mubr.bf16.vlgmr.msra.gmra.mrb[96].mxu0 %v11072_v11 }
 0x33d   :  { %4782 = vmatmul.mubr.bf16.vlgmr.msra.gmra.mrb[112].mxu1 %v11072_v11  ;;  %4452 = vmatprep.mubr.bf16.mxu0 %v11100_v21  ;;  %v8765_v11 = vld [vmem:[%s12794_s2 + $0x44c] ss:$16 sps:$4 sm:$0xff]  }
 0x33e   :  { %4524 = vmatpush1.bf16.msra.mxu0 %v8748_v63  ;;  %4791 = vmatprep.mubr.bf16.mxu1 %v11100_v21  ;;  %v8760_v21 = vld [vmem:[%s12794_s2 + $0x440] ss:$16 sps:$4 sm:$0xff]  }
 0x33f   :  { %4863 = vmatpush1.bf16.msra.mxu1 %v8751_v44  ;;  %4525 = vmatprep.subr.bf16.mxu0 %v8756_v13 }
 0x340   :  { %4864 = vmatprep.subr.bf16.mxu1 %v8759_v0 }
 0x342   :  { %4526 = vmatpush1.bf16.msra.mxu0 %v8754_v55 }
 0x343   :  { %4865 = vmatpush1.bf16.msra.mxu1 %v8757_v40  ;;  %4527 = vmatprep.subr.bf16.mxu0 %v8762_v19 }
 0x344   :  { %4453 = vmatmul.mubr.bf16.gmra.mrb[100].mxu0 %v11118_v53  ;;  %4866 = vmatprep.subr.bf16.mxu1 %v8765_v11 }
 0x345   :  { %4792 = vmatmul.mubr.bf16.gmra.mrb[116].mxu1 %v11118_v53  ;;  %4462 = vmatprep.mubr.bf16.mxu0 %v11178_v24  ;;  %v13052_v53 = vld [vmem:[#allocation30_spill] sm:$0xff] }
 0x346   :  { %4801 = vmatprep.mubr.bf16.mxu1 %v11178_v24  ;;  %4528 = vmatpush1.bf16.msra.mxu0 %v8760_v21  ;;  %v13053_v24 = vld [vmem:[#allocation32_spill] sm:$0xff] }
 0x347   :  { %4867 = vmatpush1.bf16.msra.mxu1 %v8763_v27  ;;  %4529 = vmatprep.subr.bf16.mxu0 %v8768_v8 }
 0x348   :  { %4868 = vmatprep.subr.bf16.mxu1 %v8771_v20 }
 0x34a   :  { %4530 = vmatpush1.bf16.msra.mxu0 %v8766_v38 }
 0x34b   :  { %4869 = vmatpush1.bf16.msra.mxu1 %v8769_v34 }
 0x34c   :  { %4463 = vmatmul.mubr.bf16.gmra.mrb[104].mxu0 %v13051_v18 }
 0x34d   :  { %4802 = vmatmul.mubr.bf16.gmra.mrb[120].mxu1 %v13051_v18  ;;  %4472 = vmatprep.mubr.bf16.mxu0 %v13052_v53 }
 0x34e   :  { %4811 = vmatprep.mubr.bf16.mxu1 %v13052_v53 }
 0x354   :  { %4473 = vmatmul.mubr.bf16.gmra.mrb[108].mxu0 %v13053_v24 }
 0x355   :  { %4812 = vmatmul.mubr.bf16.gmra.mrb[124].mxu1 %v13053_v24  ;;  %4482 = vmatprep.mubr.bf16.mxu0 %v13054_v46 }
 0x356   :  { %4821 = vmatprep.mubr.bf16.mxu1 %v13054_v46 }
 0x35c   :  { %4483 = vmatmul.mubr.bf16.gmra.mrb[112].mxu0 %v13055_v7 }
 0x35d   :  { %4822 = vmatmul.mubr.bf16.gmra.mrb[128].mxu1 %v13055_v7  ;;  %4492 = vmatprep.mubr.bf16.mxu0 %v11302_v39 }
 0x35e   :  { %4831 = vmatprep.mubr.bf16.mxu1 %v11302_v39  ;;  %v13056_v39 = vmov 0  }
 0x364   :  { %4493 = vmatmul.mubr.bf16.gmra.mrb[116].mxu0 %v11304_v33 }
 0x365   :  { %4832 = vmatmul.mubr.bf16.gmra.mrb[132].mxu1 %v11304_v33  ;;  %4502 = vmatprep.mubr.bf16.mxu0 %v11316_v29  ;;  %v13057_v33 = vld [vmem:[#allocation29_spill] sm:$0xff] }
 0x366   :  { %4841 = vmatprep.mubr.bf16.mxu1 %v11316_v29  ;;  %v8772_v29 = vld [vmem:[%s12795_s3] ss:$8 sps:$4 sm:$0xff]  }
 0x36c   :  { %4503 = vmatmul.mubr.bf16.gmra.mrb[120].mxu0 %v11328_v9 }
 0x36d   :  { %4842 = vmatmul.mubr.bf16.gmra.mrb[136].mxu1 %v11328_v9  ;;  %4512 = vmatprep.mubr.bf16.mxu0 %v11336_v16  ;;  %v8774_v9 = vld [vmem:[%s12795_s3 + $0x4] ss:$8 sps:$4 sm:$0xff]  }
 0x36e   :  { %4851 = vmatprep.mubr.bf16.mxu1 %v11336_v16  ;;  %v8777_v16 = vld [vmem:[%s12795_s3 + $0x14] ss:$8 sps:$4 sm:$0xff]   ;;  %5571 = vmatprep.subr.bf16.mxu0 %v8774_v9 }
 0x374   :  { %4513 = vmatmul.mubr.bf16.gmra.mrb[124].mxu0 %v11355_v32 }
 0x375   :  { %4852 = vmatmul.mubr.bf16.gmra.mrb[140].mxu1 %v11355_v32  ;;  %4555 = vmatprep.mubr.bf16.mxu0 %v13056_v39  ;;  %v8775_v32 = vld [vmem:[%s12795_s3 + $0x10] ss:$8 sps:$4 sm:$0xff]  }
 0x376   :  { %4894 = vmatprep.mubr.bf16.mxu1 %v13056_v39 }
 0x37c   :  { %7410 = vmatmul.mubr.msk.bf16.vlgmr.msra.gmra.mrb[96].mxu0 %vm3083_vm1, %v13057_v33 }
 0x37d   :  { %7418 = vmatmul.mubr.msk.bf16.vlgmr.msra.gmra.mrb[112].mxu1 %vm3083_vm1, %v13057_v33  ;;  %4565 = vmatprep.mubr.bf16.mxu0 %v13056_v39 }
 0x37e   :  { %4904 = vmatprep.mubr.bf16.mxu1 %v13056_v39  ;;  %5572 = vmatpush1.bf16.msra.mxu0 %v8772_v29 }
 0x37f   :  { %5573 = vmatprep.subr.bf16.mxu0 %v8777_v16 }
 0x382   :  { %5574 = vmatpush1.bf16.msra.mxu0 %v8775_v32 }
 0x384   :  { %7411 = vmatmul.mubr.msk.bf16.gmra.mrb[100].mxu0 %vm3083_vm1, %v11364_v23 }
 0x385   :  { %7419 = vmatmul.mubr.msk.bf16.gmra.mrb[116].mxu1 %vm3083_vm1, %v11364_v23  ;;  %4575 = vmatprep.mubr.bf16.mxu0 %v13056_v39  ;;  %v8780_v23 = vld [vmem:[%s12795_s3 + $0x24] ss:$8 sps:$4 sm:$0xff]  }
 0x386   :  { %4914 = vmatprep.mubr.bf16.mxu1 %v13056_v39  ;;  %5575 = vmatprep.subr.bf16.mxu0 %v8780_v23 }
 0x38c   :  { %7412 = vmatmul.mubr.msk.bf16.gmra.mrb[104].mxu0 %vm3083_vm1, %v11368_v3 }
 0x38d   :  { %7420 = vmatmul.mubr.msk.bf16.gmra.mrb[120].mxu1 %vm3083_vm1, %v11368_v3  ;;  %4585 = vmatprep.mubr.bf16.mxu0 %v13056_v39  ;;  %v8778_v3 = vld [vmem:[%s12795_s3 + $0x20] ss:$8 sps:$4 sm:$0xff]  }
 0x38e   :  { %4924 = vmatprep.mubr.bf16.mxu1 %v13056_v39  ;;  %5576 = vmatpush1.bf16.msra.mxu0 %v8778_v3 }
 0x394   :  { %7413 = vmatmul.mubr.msk.bf16.gmra.mrb[108].mxu0 %vm3083_vm1, %v11375_v43 }
 0x395   :  { %7421 = vmatmul.mubr.msk.bf16.gmra.mrb[124].mxu1 %vm3083_vm1, %v11375_v43  ;;  %4595 = vmatprep.mubr.bf16.mxu0 %v13056_v39  ;;  %v8783_v43 = vld [vmem:[%s12795_s3 + $0x34] ss:$8 sps:$4 sm:$0xff]  }
 0x396   :  { %4934 = vmatprep.mubr.bf16.mxu1 %v13056_v39  ;;  %5577 = vmatprep.subr.bf16.mxu0 %v8783_v43 }
 0x39c   :  { %7414 = vmatmul.mubr.msk.bf16.gmra.mrb[112].mxu0 %vm3083_vm1, %v11384_v17 }
 0x39d   :  { %7422 = vmatmul.mubr.msk.bf16.gmra.mrb[128].mxu1 %vm3083_vm1, %v11384_v17  ;;  %4605 = vmatprep.mubr.bf16.mxu0 %v13056_v39  ;;  %v8781_v17 = vld [vmem:[%s12795_s3 + $0x30] ss:$8 sps:$4 sm:$0xff]  }
 0x39e   :  { %4944 = vmatprep.mubr.bf16.mxu1 %v13056_v39  ;;  %5578 = vmatpush1.bf16.msra.mxu0 %v8781_v17 }
 0x3a4   :  { %7415 = vmatmul.mubr.msk.bf16.gmra.mrb[116].mxu0 %vm3083_vm1, %v11404_v10 }
 0x3a5   :  { %7423 = vmatmul.mubr.msk.bf16.gmra.mrb[132].mxu1 %vm3083_vm1, %v11404_v10  ;;  %4615 = vmatprep.mubr.bf16.mxu0 %v13056_v39  ;;  %v8786_v10 = vld [vmem:[%s12795_s3 + $0x44] ss:$8 sps:$4 sm:$0xff]  }
 0x3a6   :  { %4954 = vmatprep.mubr.bf16.mxu1 %v13056_v39  ;;  %5579 = vmatprep.subr.bf16.mxu0 %v8786_v10 }
 0x3ac   :  { %7416 = vmatmul.mubr.msk.bf16.gmra.mrb[120].mxu0 %vm3083_vm1, %v11411_v1 }
 0x3ad   :  { %7424 = vmatmul.mubr.msk.bf16.gmra.mrb[136].mxu1 %vm3083_vm1, %v11411_v1  ;;  %4625 = vmatprep.mubr.bf16.mxu0 %v13056_v39  ;;  %v8784_v1 = vld [vmem:[%s12795_s3 + $0x40] ss:$8 sps:$4 sm:$0xff]  }
 0x3ae   :  { %4964 = vmatprep.mubr.bf16.mxu1 %v13056_v39  ;;  %5580 = vmatpush1.bf16.msra.mxu0 %v8784_v1 }
 0x3af   :  { %5581 = vmatprep.subr.bf16.mxu0 %v8789_v48 }
 0x3b2   :  { %5582 = vmatpush1.bf16.msra.mxu0 %v8787_v52 }
 0x3b3   :  { %5583 = vmatprep.subr.bf16.mxu0 %v8792_v41 }
 0x3b4   :  { %7417 = vmatmul.mubr.msk.bf16.gmra.mrb[124].mxu0 %vm3083_vm1, %v11422_v26 }
 0x3b5   :  { %7425 = vmatmul.mubr.msk.bf16.gmra.mrb[140].mxu1 %vm3083_vm1, %v11422_v26  ;;  %v8790_v26 = vld [vmem:[%s12795_s3 + $0x60] ss:$8 sps:$4 sm:$0xff]  }
 0x3b6   :  { %5584 = vmatpush1.bf16.msra.mxu0 %v8790_v26 }
 0x3b7   :  { %5585 = vmatprep.subr.bf16.mxu0 %v8795_v31 }
 0x3ba   :  { %5586 = vmatpush1.bf16.msra.mxu0 %v8793_v6 }
 0x3bb   :  { %5587 = vmatprep.subr.bf16.mxu0 %v8798_v35 }
 0x3be   :  { %5588 = vmatpush1.bf16.msra.mxu0 %v8796_v62 }
 0x3bf   :  { %5589 = vmatprep.subr.bf16.mxu0 %v8801_v56 }
 0x3c2   :  { %5590 = vmatpush1.bf16.msra.mxu0 %v8799_v5 }
 0x3c3   :  { %5591 = vmatprep.subr.bf16.mxu0 %v8804_v2 }
 0x3c6   :  { %5592 = vmatpush1.bf16.msra.mxu0 %v8802_v51 }
 0x3c7   :  { %5593 = vmatprep.subr.bf16.mxu0 %v8807_v22 }
 0x3ca   :  { %5594 = vmatpush1.bf16.msra.mxu0 %v8805_v30 }
 0x3cb   :  { %5595 = vmatprep.subr.bf16.mxu0 %v8810_v36 }
 0x3ce   :  { %5596 = vmatpush1.bf16.msra.mxu0 %v8808_v61 }
 0x3cf   :  { %5597 = vmatprep.subr.bf16.mxu0 %v8813_v58 }
 0x3d2   :  { %5598 = vmatpush1.bf16.msra.mxu0 %v8811_v45 }
 0x44f   :  { %v11685_v12 = vpop.f32.mrb[96].mxu0 }
 0x450   :  { %v11687_v28 = vpop.f32.mrb[112].mxu1  ;;  %v11689_v15 = vpop.f32.mrb[97].mxu0 }
 0x451   :  { %v4975_v25 = vadd.f32 %v11689_v15, %v11685_v12  ;;  %v11693_v14 = vpop.f32.mrb[113].mxu1  ;;  %v11695_v60 = vpop.f32.mrb[98].mxu0 }
 0x452   :  { %v11697_v37 = vpop.f32.mrb[114].mxu1  ;;  %v11699_v54 = vpop.f32.mrb[99].mxu0  ;;  %v4977_v50 = vsel %vm1763_vm0, %v11693_v14, 0.0 }
 0x453   :  { %v4981_v49 = vadd.f32 %v11699_v54, %v11695_v60  ;;  %v11703_v47 = vpop.f32.mrb[115].mxu1  ;;  %v4976_v59 = vadd.f32 %v4975_v25, %v11687_v28  ;;  %v8814_v25 = vld [vmem:[%s12795_s3 + $0xe0] ss:$8 sps:$4 sm:$0xff]  }
 0x454   :  { %v4983_v4 = vsel %vm1763_vm0, %v11703_v47, 0.0 }
 0x455   :  { %v4978_v57 = vadd.f32 %v4977_v50, %v4976_v59  ;;  %v4982_v42 = vadd.f32 %v4981_v49, %v11697_v37  ;;  %v8816_v49 = vld [vmem:[%s12795_s3 + $0xe4] ss:$8 sps:$4 sm:$0xff]  }
 0x456   :  { %5599 = vmatprep.subr.bf16.mxu0 %v8816_v49 }
 0x457   :  { %4979 = vadd.xlane.f32.xlu0 %v4978_v57  ;;  %v11711_v63 = vpop.f32.mrb[100].mxu0  ;;  %v4984_v44 = vadd.f32 %v4983_v4, %v4982_v42  ;;  %v8819_v57 = vld [vmem:[%s12795_s3 + $0xf4] ss:$8 sps:$4 sm:$0xff]   ;;  %5600 = vmatpush1.bf16.msra.mxu0 %v8814_v25 }
 0x458   :  { %v11713_v13 = vpop.f32.mrb[116].mxu1  ;;  %v11715_v0 = vpop.f32.mrb[101].mxu0  ;;  %5601 = vmatprep.subr.bf16.mxu0 %v8819_v57 }
 0x459   :  { %v4987_v55 = vadd.f32 %v11715_v0, %v11711_v63  ;;  %v11719_v40 = vpop.f32.mrb[117].mxu1  ;;  %4985 = vadd.xlane.f32.xlu1 %v4984_v44  ;;  %v11721_v19 = vpop.f32.mrb[102].mxu0 }
 0x45a   :  { %v11723_v11 = vpop.f32.mrb[118].mxu1  ;;  %v11725_v21 = vpop.f32.mrb[103].mxu0  ;;  %v4989_v38 = vsel %vm1763_vm0, %v11719_v40, 0.0 }
 0x45b   :  { %v4993_v27 = vadd.f32 %v11725_v21, %v11721_v19  ;;  %v11729_v8 = vpop.f32.mrb[119].mxu1  ;;  %v4988_v20 = vadd.f32 %v4987_v55, %v11713_v13 }
 0x45c   :  { %v4995_v53 = vsel %vm1763_vm0, %v11729_v8, 0.0 }
 0x45d   :  { %v4990_v34 = vadd.f32 %v4989_v38, %v4988_v20  ;;  %v4994_v18 = vadd.f32 %v4993_v27, %v11723_v11  ;;  %v8817_v20 = vld [vmem:[%s12795_s3 + $0xf0] ss:$8 sps:$4 sm:$0xff]  }
 0x45e   :  { %5602 = vmatpush1.bf16.msra.mxu0 %v8817_v20 }
 0x45f   :  { %4991 = vadd.xlane.f32.xlu0 %v4990_v34  ;;  %v11737_v24 = vpop.f32.mrb[104].mxu0  ;;  %v4996_v46 = vadd.f32 %v4995_v53, %v4994_v18 }
 0x460   :  { %v11739_v7 = vpop.f32.mrb[120].mxu1  ;;  %v11741_v33 = vpop.f32.mrb[105].mxu0 }
 0x461   :  { %v4999_v29 = vadd.f32 %v11741_v33, %v11737_v24  ;;  %v11745_v9 = vpop.f32.mrb[121].mxu1  ;;  %4997 = vadd.xlane.f32.xlu1 %v4996_v46  ;;  %v11747_v16 = vpop.f32.mrb[106].mxu0 }
 0x462   :  { %v11749_v32 = vpop.f32.mrb[122].mxu1  ;;  %v11751_v23 = vpop.f32.mrb[107].mxu0  ;;  %v5001_v10 = vsel %vm1763_vm0, %v11745_v9, 0.0 }
 0x463   :  { %v5005_v3 = vadd.f32 %v11751_v23, %v11747_v16  ;;  %v11755_v43 = vpop.f32.mrb[123].mxu1  ;;  %v5000_v17 = vadd.f32 %v4999_v29, %v11739_v7  ;;  %v8822_v29 = vld [vmem:[%s12795_s3 + $0x104] ss:$8 sps:$4 sm:$0xff]  }
 0x464   :  { %v5007_v52 = vsel %vm1763_vm0, %v11755_v43, 0.0  ;;  %5684 = vmatprep.subr.bf16.mxu0 %v8822_v29 }
 0x465   :  { %v5002_v1 = vadd.f32 %v5001_v10, %v5000_v17  ;;  %v5006_v48 = vadd.f32 %v5005_v3, %v11749_v32 }
 0x467   :  { %5003 = vadd.xlane.f32.xlu0 %v5002_v1  ;;  %v11763_v41 = vpop.f32.mrb[108].mxu0  ;;  %v5008_v26 = vadd.f32 %v5007_v52, %v5006_v48 }
 0x468   :  { %v11765_v31 = vpop.f32.mrb[124].mxu1  ;;  %v11767_v6 = vpop.f32.mrb[109].mxu0 }
 0x469   :  { %v5011_v35 = vadd.f32 %v11767_v6, %v11763_v41  ;;  %v11771_v62 = vpop.f32.mrb[125].mxu1  ;;  %5009 = vadd.xlane.f32.xlu1 %v5008_v26  ;;  %v11773_v56 = vpop.f32.mrb[110].mxu0 }
 0x46a   :  { %v11775_v5 = vpop.f32.mrb[126].mxu1  ;;  %v11777_v2 = vpop.f32.mrb[111].mxu0  ;;  %v5013_v36 = vsel %vm1763_vm0, %v11771_v62, 0.0 }
 0x46b   :  { %v5017_v51 = vadd.f32 %v11777_v2, %v11773_v56  ;;  %v11781_v22 = vpop.f32.mrb[127].mxu1  ;;  %v5012_v30 = vadd.f32 %v5011_v35, %v11765_v31 }
 0x46c   :  { %v5019_v45 = vsel %vm1763_vm0, %v11781_v22, 0.0 }
 0x46d   :  { %v5014_v61 = vadd.f32 %v5013_v36, %v5012_v30  ;;  %v5018_v58 = vadd.f32 %v5017_v51, %v11775_v5 }
 0x46f   :  { %5015 = vadd.xlane.f32.xlu0 %v5014_v61  ;;  %v11795_v59 = vpop.f32.mrb[112].mxu0  ;;  %v5020_v50 = vadd.f32 %v5019_v45, %v5018_v58 }
 0x470   :  { %v11800_v42 = vpop.f32.mrb[128].mxu1  ;;  %v11802_v4 = vpop.f32.mrb[113].mxu0 }
 0x471   :  { %v5023_v44 = vadd.f32 %v11802_v4, %v11795_v59  ;;  %v11806_v55 = vpop.f32.mrb[129].mxu1  ;;  %5021 = vadd.xlane.f32.xlu1 %v5020_v50  ;;  %v11808_v27 = vpop.f32.mrb[114].mxu0 }
 0x472   :  { %v11813_v38 = vpop.f32.mrb[130].mxu1  ;;  %v11815_v34 = vpop.f32.mrb[115].mxu0  ;;  %v5025_v3 = vsel %vm1763_vm0, %v11806_v55, 0.0 }
 0x473   :  { %v5029_v18 = vadd.f32 %v11815_v34, %v11808_v27  ;;  %v11819_v53 = vpop.f32.mrb[131].mxu1  ;;  %v5024_v46 = vadd.f32 %v5023_v44, %v11800_v42 }
 0x474   :  { %v5031_v1 = vsel %vm1763_vm0, %v11819_v53, 0.0 }
 0x475   :  { %v5026_v17 = vadd.f32 %v5025_v3, %v5024_v46  ;;  %v5030_v10 = vadd.f32 %v5029_v18, %v11813_v38 }
 0x477   :  { %5027 = vadd.xlane.f32.xlu0 %v5026_v17  ;;  %v11830_v48 = vpop.f32.mrb[116].mxu0  ;;  %v5032_v52 = vadd.f32 %v5031_v1, %v5030_v10 }
 0x478   :  { %v11832_v26 = vpop.f32.mrb[132].mxu1  ;;  %v11834_v35 = vpop.f32.mrb[117].mxu0 }
 0x479   :  { %v5035_v51 = vadd.f32 %v11834_v35, %v11830_v48  ;;  %v11838_v30 = vpop.f32.mrb[133].mxu1  ;;  %5033 = vadd.xlane.f32.xlu1 %v5032_v52  ;;  %v11840_v36 = vpop.f32.mrb[118].mxu0 }
 0x47a   :  { %v11842_v61 = vpop.f32.mrb[134].mxu1  ;;  %v11844_v58 = vpop.f32.mrb[119].mxu0  ;;  %v5037_v50 = vsel %vm1763_vm0, %v11838_v30, 0.0 }
 0x47b   :  { %13058 = vst [vmem:[#allocation31_spill] sm:$0xff] %v11842_v61  ;;  %v5041_v45 = vadd.f32 %v11844_v58, %v11840_v36  ;;  %v11848_v25 = vpop.f32.mrb[135].mxu1  ;;  %v5036_v49 = vadd.f32 %v5035_v51, %v11832_v26 }
 0x47c   :  { %v5043_v20 = vsel %vm1763_vm0, %v11848_v25, 0.0 }
 0x47d   :  { %v5038_v57 = vadd.f32 %v5037_v50, %v5036_v49  ;;  %v5042_v44 = vadd.f32 %v5041_v45, %v11842_v61 }
 0x47f   :  { %5039 = vadd.xlane.f32.xlu0 %v5038_v57  ;;  %v11856_v18 = vpop.f32.mrb[120].mxu0  ;;  %v5044_v46 = vadd.f32 %v5043_v20, %v5042_v44 }
 0x480   :  { %13059 = vst [vmem:[#allocation3_spill] sm:$0xff] %v11856_v18  ;;  %v11858_v29 = vpop.f32.mrb[136].mxu1  ;;  %v11860_v3 = vpop.f32.mrb[121].mxu0 }
 0x481   :  { %13060 = vst [vmem:[#allocation6_spill] sm:$0xff] %v11858_v29  ;;  %13061 = vst [vmem:[#allocation7_spill] sm:$0xff] %v11860_v3  ;;  %v5047_v17 = vadd.f32 %v11860_v3, %v11856_v18  ;;  %v11864_v10 = vpop.f32.mrb[137].mxu1  ;;  %5045 = vadd.xlane.f32.xlu1 %v5044_v46  ;;  %v11866_v1 = vpop.f32.mrb[122].mxu0 }
 0x482   :  { %13062 = vst [vmem:[#allocation5_spill] sm:$0xff] %v11864_v10  ;;  %13063 = vst [vmem:[#allocation10_spill] sm:$0xff] %v11866_v1  ;;  %v11868_v52 = vpop.f32.mrb[138].mxu1  ;;  %v11870_v51 = vpop.f32.mrb[123].mxu0  ;;  %v5049_v57 = vsel %vm1763_vm0, %v11864_v10, 0.0 }
 0x483   :  { %13064 = vst [vmem:[#allocation34_spill] sm:$0xff] %v11868_v52  ;;  %13065 = vst [vmem:[#allocation36_spill] sm:$0xff] %v11870_v51  ;;  %v5053_v45 = vadd.f32 %v11870_v51, %v11866_v1  ;;  %v11874_v49 = vpop.f32.mrb[139].mxu1  ;;  %v5048_v50 = vadd.f32 %v5047_v17, %v11858_v29 }
 0x484   :  { %13066 = vst [vmem:[#allocation33_spill] sm:$0xff] %v11874_v49  ;;  %v5055_v46 = vsel %vm1763_vm0, %v11874_v49, 0.0 }
 0x485   :  { %v5050_v44 = vadd.f32 %v5049_v57, %v5048_v50  ;;  %v5054_v20 = vadd.f32 %v5053_v45, %v11868_v52 }
 0x487   :  { %5051 = vadd.xlane.f32.xlu0 %v5050_v44  ;;  %v11882_v39 = vpop.f32.mrb[124].mxu0  ;;  %v5056_v18 = vadd.f32 %v5055_v46, %v5054_v20 }
 0x488   :  { %13067 = vst [vmem:[#allocation9_spill] sm:$0xff] %v11882_v39  ;;  %v11884_v3 = vpop.f32.mrb[140].mxu1  ;;  %v11886_v1 = vpop.f32.mrb[125].mxu0 }
 0x489   :  { %13068 = vst [vmem:[#allocation12_spill] sm:$0xff] %v11884_v3  ;;  %13069 = vst [vmem:[#allocation11_spill] sm:$0xff] %v11886_v1  ;;  %v5059_v17 = vadd.f32 %v11886_v1, %v11882_v39  ;;  %v11890_v51 = vpop.f32.mrb[141].mxu1  ;;  %5057 = vadd.xlane.f32.xlu1 %v5056_v18  ;;  %v11892_v50 = vpop.f32.mrb[126].mxu0 }
 0x48a   :  { %13070 = vst [vmem:[#allocation35_spill] sm:$0xff] %v11892_v50  ;;  %v11894_v45 = vpop.f32.mrb[142].mxu1  ;;  %v11896_v57 = vpop.f32.mrb[127].mxu0  ;;  %v5061_v52 = vsel %vm1763_vm0, %v11890_v51, 0.0 }
 0x48b   :  { %13071 = vst [vmem:[#allocation16_spill] sm:$0xff] %v11894_v45  ;;  %13072 = vst [vmem:[#allocation15_spill] sm:$0xff] %v11896_v57  ;;  %v5065_v44 = vadd.f32 %v11896_v57, %v11892_v50  ;;  %v11900_v20 = vpop.f32.mrb[143].mxu1  ;;  %v5060_v46 = vadd.f32 %v5059_v17, %v11884_v3 }
 0x48c   :  { %v5067_v18 = vsel %vm1763_vm0, %v11900_v20, 0.0 }
 0x48d   :  { %v5062_v39 = vadd.f32 %v5061_v52, %v5060_v46  ;;  %v5066_v1 = vadd.f32 %v5065_v44, %v11894_v45 }
 0x48f   :  { %5063 = vadd.xlane.f32.xlu0 %v5062_v39  ;;  %v5068_v49 = vadd.f32 %v5067_v18, %v5066_v1 }
 0x491   :  { %5069 = vadd.xlane.f32.xlu1 %v5068_v49 }
 0x4e4   :  { %v4980_v29 = vpop.xlane.xlu0 %4979 }
 0x4e5   :  { %v5071_v10 = vmul.f32 0.0025, %v4980_v29 }
 0x4e6   :  { %v4986_v61 = vpop.xlane.xlu1 %4985 }
 0x4e7   :  { %v5087_v50 = vsub.f32 %v11685_v12, %v5071_v10  ;;  %v5089_v57 = vsub.f32 %v11687_v28, %v5071_v10  ;;  %v5090_v17 = vsub.f32 %v11693_v14, %v5071_v10  ;;  %v5072_v3 = vmul.f32 0.0025, %v4986_v61 }
 0x4e8   :  { %v5088_v52 = vsub.f32 %v11689_v15, %v5071_v10 }
 0x4e9   :  { %v5091_v44 = vsub.f32 %v11695_v60, %v5072_v3  ;;  %v5093_v46 = vsub.f32 %v11697_v37, %v5072_v3  ;;  %v5094_v39 = vsub.f32 %v11703_v47, %v5072_v3  ;;  %v5092_v1 = vsub.f32 %v11699_v54, %v5072_v3  ;;  %v8820_v3 = vld [vmem:[%s12795_s3 + $0x100] ss:$8 sps:$4 sm:$0xff]  }
 0x4ea   :  { %v5151_v49 = vmax.f32 %v5087_v50, 0.0  ;;  %v11916_v29 = vmax.f32 %v5089_v57, 0.0  ;;  %v11918_v18 = vmax.f32 %v5090_v17, 0.0  ;;  %v5152_v15 = vmax.f32 %v5088_v52, 0.0 }
 0x4eb   :  { %v5155_v12 = vmax.f32 %v5091_v44, 0.0  ;;  %v11920_v28 = vmax.f32 %v5093_v46, 0.0  ;;  %v11922_v14 = vmax.f32 %v5094_v39, 0.0  ;;  %v5156_v10 = vmax.f32 %v5092_v1, 0.0  ;;  %v8825_v44 = vld [vmem:[%s12795_s3 + $0x114] ss:$8 sps:$4 sm:$0xff]  }
 0x4ec   :  { %v4992_v61 = vpop.xlane.xlu0 %4991 }
 0x4ed   :  { %v5215_v60 = vpack.c.bf16 %v5155_v12, %v5151_v49  ;;  %v5073_v45 = vmul.f32 0.0025, %v4992_v61  ;;  %v5217_v37 = vpack.c.bf16 %v11920_v28, %v11916_v29  ;;  %v5216_v54 = vpack.c.bf16 %v5156_v10, %v5152_v15  ;;  %v8847_v29 = vld [vmem:[%s12796_s4] ss:$8 sps:$4 sm:$0xff]   ;;  %v8852_v28 = vld [vmem:[%s12796_s4 + $0x14] ss:$8 sps:$4 sm:$0xff]  }
 0x4ee   :  { %v4998_v47 = vpop.xlane.xlu1 %4997  ;;  %v5218_v50 = vpack.c.bf16 %v11922_v14, %v11918_v18  ;;  %v8849_v18 = vld [vmem:[%s12796_s4 + $0x4] ss:$8 sps:$4 sm:$0xff]   ;;  %v8850_v14 = vld [vmem:[%s12796_s4 + $0x10] ss:$8 sps:$4 sm:$0xff]  }
 0x4ef   :  { %v5098_v57 = vsub.f32 %v11719_v40, %v5073_v45  ;;  %v5074_v17 = vmul.f32 0.0025, %v4998_v47  ;;  %v5096_v52 = vsub.f32 %v11715_v0, %v5073_v45  ;;  %5603 = vmatprep.mubr.bf16.mxu0 %v5216_v54  ;;  %v5095_v46 = vsub.f32 %v11711_v63, %v5073_v45  ;;  %v8823_v0 = vld [vmem:[%s12795_s3 + $0x110] ss:$8 sps:$4 sm:$0xff]   ;;  %7812 = vmatprep.subr.bf16.mxu1 %v8849_v18 }
 0x4f0   :  { %v5097_v39 = vsub.f32 %v11713_v13, %v5073_v45  ;;  %5604 = vmatmul.mubr.bf16.vlgmr.msra.gmra.mrb[128].mxu0 %v5215_v60  ;;  %7828 = vmatpush1.bf16.msra.mxu1 %v8847_v29 }
 0x4f1   :  { %v5102_v1 = vsub.f32 %v11729_v8, %v5074_v17  ;;  %v5100_v49 = vsub.f32 %v11725_v21, %v5074_v17  ;;  %5685 = vmatpush1.bf16.msra.mxu0 %v8820_v3  ;;  %v5099_v40 = vsub.f32 %v11721_v19, %v5074_v17  ;;  %v5101_v12 = vsub.f32 %v11723_v11, %v5074_v17  ;;  %v8828_v21 = vld [vmem:[%s12795_s3 + $0x124] ss:$8 sps:$4 sm:$0xff]   ;;  %v8826_v17 = vld [vmem:[%s12795_s3 + $0x120] ss:$8 sps:$4 sm:$0xff]  }
 0x4f2   :  { %v11945_v61 = vmax.f32 %v5098_v57, 0.0  ;;  %v5160_v63 = vmax.f32 %v5096_v52, 0.0  ;;  %5686 = vmatprep.subr.bf16.mxu0 %v8825_v44  ;;  %v5159_v45 = vmax.f32 %v5095_v46, 0.0  ;;  %v11952_v10 = vmax.f32 %v5097_v39, 0.0  ;;  %7813 = vmatprep.subr.bf16.mxu1 %v8852_v28 }
 0x4f3   :  { %v11947_v15 = vmax.f32 %v5102_v1, 0.0  ;;  %v5164_v13 = vmax.f32 %v5100_v49, 0.0  ;;  %v5163_v19 = vmax.f32 %v5099_v40, 0.0  ;;  %v11954_v60 = vmax.f32 %v5101_v12, 0.0  ;;  %v8831_v1 = vld [vmem:[%s12795_s3 + $0x134] ss:$8 sps:$4 sm:$0xff]  }
 0x4f4   :  { %v5004_v8 = vpop.xlane.xlu0 %5003  ;;  %7829 = vmatpush1.bf16.msra.mxu1 %v8850_v14 }
 0x4f5   :  { %v5075_v47 = vmul.f32 0.0025, %v5004_v8  ;;  %v5220_v11 = vpack.c.bf16 %v5164_v13, %v5160_v63  ;;  %v5222_v54 = vpack.c.bf16 %v11947_v15, %v11945_v61  ;;  %v5219_v57 = vpack.c.bf16 %v5163_v19, %v5159_v45  ;;  %5687 = vmatpush1.bf16.msra.mxu0 %v8823_v0  ;;  %v8858_v61 = vld [vmem:[%s12796_s4 + $0x34] ss:$8 sps:$4 sm:$0xff]   ;;  %v8856_v15 = vld [vmem:[%s12796_s4 + $0x30] ss:$8 sps:$4 sm:$0xff]  }
 0x4f6   :  { %v5010_v3 = vpop.xlane.xlu1 %5009  ;;  %v5221_v52 = vpack.c.bf16 %v11954_v60, %v11952_v10  ;;  %5688 = vmatprep.subr.bf16.mxu0 %v8828_v21  ;;  %v8861_v10 = vld [vmem:[%s12796_s4 + $0x44] ss:$8 sps:$4 sm:$0xff]   ;;  %v8859_v60 = vld [vmem:[%s12796_s4 + $0x40] ss:$8 sps:$4 sm:$0xff]  }
 0x4f7   :  { %v5106_v44 = vsub.f32 %v11745_v9, %v5075_v47  ;;  %v5076_v46 = vmul.f32 0.0025, %v5010_v3  ;;  %5613 = vmatprep.mubr.bf16.mxu0 %v5220_v11  ;;  %v5104_v39 = vsub.f32 %v11741_v33, %v5075_v47  ;;  %v5103_v49 = vsub.f32 %v11737_v24, %v5075_v47  ;;  %v8829_v33 = vld [vmem:[%s12795_s3 + $0x130] ss:$8 sps:$4 sm:$0xff]  }
 0x4f8   :  { %v5105_v40 = vsub.f32 %v11739_v7, %v5075_v47  ;;  %5614 = vmatmul.mubr.bf16.gmra.mrb[132].mxu0 %v5219_v57 }
 0x4f9   :  { %v5110_v0 = vsub.f32 %v11755_v43, %v5076_v46  ;;  %v5108_v12 = vsub.f32 %v11751_v23, %v5076_v46  ;;  %v5107_v9 = vsub.f32 %v11747_v16, %v5076_v46  ;;  %5689 = vmatpush1.bf16.msra.mxu0 %v8826_v17  ;;  %v5109_v63 = vsub.f32 %v11749_v32, %v5076_v46  ;;  %v8834_v23 = vld [vmem:[%s12795_s3 + $0x144] ss:$8 sps:$4 sm:$0xff]   ;;  %v8832_v17 = vld [vmem:[%s12795_s3 + $0x140] ss:$8 sps:$4 sm:$0xff]  }
 0x4fa   :  { %v11977_v13 = vmax.f32 %v5106_v44, 0.0  ;;  %v5168_v24 = vmax.f32 %v5104_v39, 0.0  ;;  %5690 = vmatprep.subr.bf16.mxu0 %v8831_v1  ;;  %v5167_v16 = vmax.f32 %v5103_v49, 0.0  ;;  %v11984_v45 = vmax.f32 %v5105_v40, 0.0  ;;  %v8837_v49 = vld [vmem:[%s12795_s3 + $0x154] ss:$8 sps:$4 sm:$0xff]  }
 0x4fb   :  { %v11979_v21 = vmax.f32 %v5110_v0, 0.0  ;;  %v5172_v7 = vmax.f32 %v5108_v12, 0.0  ;;  %v5171_v8 = vmax.f32 %v5107_v9, 0.0  ;;  %v11986_v19 = vmax.f32 %v5109_v63, 0.0 }
 0x4fc   :  { %v5016_v43 = vpop.xlane.xlu0 %5015 }
 0x4fd   :  { %v5077_v47 = vmul.f32 0.0025, %v5016_v43  ;;  %v5224_v32 = vpack.c.bf16 %v5172_v7, %v5168_v24  ;;  %v5226_v11 = vpack.c.bf16 %v11979_v21, %v11977_v13  ;;  %v5223_v57 = vpack.c.bf16 %v5171_v8, %v5167_v16  ;;  %5691 = vmatpush1.bf16.msra.mxu0 %v8829_v33  ;;  %v8867_v13 = vld [vmem:[%s12796_s4 + $0x64] ss:$8 sps:$4 sm:$0xff]   ;;  %v8865_v21 = vld [vmem:[%s12796_s4 + $0x60] ss:$8 sps:$4 sm:$0xff]  }
 0x4fe   :  { %v5022_v3 = vpop.xlane.xlu1 %5021  ;;  %v5225_v44 = vpack.c.bf16 %v11986_v19, %v11984_v45  ;;  %5692 = vmatprep.subr.bf16.mxu0 %v8834_v23  ;;  %v8870_v45 = vld [vmem:[%s12796_s4 + $0x74] ss:$8 sps:$4 sm:$0xff]   ;;  %v8868_v19 = vld [vmem:[%s12796_s4 + $0x70] ss:$8 sps:$4 sm:$0xff]  }
 0x4ff   :  { %v5114_v46 = vsub.f32 %v11771_v62, %v5077_v47  ;;  %v5078_v39 = vmul.f32 0.0025, %v5022_v3  ;;  %5623 = vmatprep.mubr.bf16.mxu0 %v5224_v32  ;;  %v5112_v1 = vsub.f32 %v11767_v6, %v5077_v47  ;;  %v5111_v40 = vsub.f32 %v11763_v41, %v5077_v47  ;;  %v8835_v6 = vld [vmem:[%s12795_s3 + $0x150] ss:$8 sps:$4 sm:$0xff]   ;;  %v8838_v3 = vld [vmem:[%s12795_s3 + $0x160] ss:$8 sps:$4 sm:$0xff]  }
 0x500   :  { %v5113_v0 = vsub.f32 %v11765_v31, %v5077_v47  ;;  %5624 = vmatmul.mubr.bf16.gmra.mrb[136].mxu0 %v5223_v57 }
 0x501   :  { %v5118_v12 = vsub.f32 %v11781_v22, %v5078_v39  ;;  %v5116_v9 = vsub.f32 %v11777_v2, %v5078_v39  ;;  %v5115_v62 = vsub.f32 %v11773_v56, %v5078_v39  ;;  %5693 = vmatpush1.bf16.msra.mxu0 %v8832_v17  ;;  %v5117_v33 = vsub.f32 %v11775_v5, %v5078_v39  ;;  %v8840_v2 = vld [vmem:[%s12795_s3 + $0x164] ss:$8 sps:$4 sm:$0xff]  }
 0x502   :  { %v12009_v63 = vmax.f32 %v5114_v46, 0.0  ;;  %v5176_v41 = vmax.f32 %v5112_v1, 0.0  ;;  %5694 = vmatprep.subr.bf16.mxu0 %v8837_v49  ;;  %v5175_v56 = vmax.f32 %v5111_v40, 0.0  ;;  %v12016_v23 = vmax.f32 %v5113_v0, 0.0  ;;  %v8843_v1 = vld [vmem:[%s12795_s3 + $0x174] ss:$8 sps:$4 sm:$0xff]  }
 0x503   :  { %v12011_v24 = vmax.f32 %v5118_v12, 0.0  ;;  %v5180_v31 = vmax.f32 %v5116_v9, 0.0  ;;  %v5179_v7 = vmax.f32 %v5115_v62, 0.0  ;;  %v12018_v43 = vmax.f32 %v5117_v33, 0.0 }
 0x504   :  { %v5028_v22 = vpop.xlane.xlu0 %5027 }
 0x505   :  { %v5079_v16 = vmul.f32 0.0025, %v5028_v22  ;;  %v5228_v5 = vpack.c.bf16 %v5180_v31, %v5176_v41  ;;  %v5230_v8 = vpack.c.bf16 %v12011_v24, %v12009_v63  ;;  %v5227_v32 = vpack.c.bf16 %v5179_v7, %v5175_v56  ;;  %5695 = vmatpush1.bf16.msra.mxu0 %v8835_v6  ;;  %v8876_v63 = vld [vmem:[%s12796_s4 + $0x94] ss:$8 sps:$4 sm:$0xff]   ;;  %v8874_v24 = vld [vmem:[%s12796_s4 + $0x90] ss:$8 sps:$4 sm:$0xff]  }
 0x506   :  { %v5034_v47 = vpop.xlane.xlu1 %5033  ;;  %v5229_v57 = vpack.c.bf16 %v12018_v43, %v12016_v23  ;;  %5696 = vmatprep.subr.bf16.mxu0 %v8840_v2  ;;  %v8879_v23 = vld [vmem:[%s12796_s4 + $0xa4] ss:$8 sps:$4 sm:$0xff]   ;;  %v8877_v43 = vld [vmem:[%s12796_s4 + $0xa0] ss:$8 sps:$4 sm:$0xff]  }
 0x507   :  { %v5122_v17 = vsub.f32 %v11806_v55, %v5079_v16  ;;  %v5080_v46 = vmul.f32 0.0025, %v5034_v47  ;;  %5633 = vmatprep.mubr.bf16.mxu0 %v5228_v5  ;;  %v5120_v39 = vsub.f32 %v11802_v4, %v5079_v16  ;;  %v5119_v49 = vsub.f32 %v11795_v59, %v5079_v16  ;;  %v8841_v4 = vld [vmem:[%s12795_s3 + $0x170] ss:$8 sps:$4 sm:$0xff]  }
 0x508   :  { %v5121_v40 = vsub.f32 %v11800_v42, %v5079_v16  ;;  %5634 = vmatmul.mubr.bf16.gmra.mrb[140].mxu0 %v5227_v32  ;;  %v8844_v16 = vld [vmem:[%s12795_s3 + $0x180] ss:$8 sps:$4 sm:$0xff]  }
 0x509   :  { %v5126_v0 = vsub.f32 %v11819_v53, %v5080_v46  ;;  %v5124_v12 = vsub.f32 %v11815_v34, %v5080_v46  ;;  %v5123_v55 = vsub.f32 %v11808_v27, %v5080_v46  ;;  %5697 = vmatpush1.bf16.msra.mxu0 %v8838_v3  ;;  %v5125_v9 = vsub.f32 %v11813_v38, %v5080_v46  ;;  %v8846_v34 = vld [vmem:[%s12795_s3 + $0x184] ss:$8 sps:$4 sm:$0xff]  }
 0x50a   :  { %v12041_v62 = vmax.f32 %v5122_v17, 0.0  ;;  %v5184_v59 = vmax.f32 %v5120_v39, 0.0  ;;  %5698 = vmatprep.subr.bf16.mxu0 %v8843_v1  ;;  %v5183_v27 = vmax.f32 %v5119_v49, 0.0  ;;  %v12048_v41 = vmax.f32 %v5121_v40, 0.0  ;;  %v13073_v40 = vld [vmem:[#allocation31_spill] sm:$0xff] }
 0x50b   :  { %v12043_v6 = vmax.f32 %v5126_v0, 0.0  ;;  %v5188_v42 = vmax.f32 %v5124_v12, 0.0  ;;  %v5187_v33 = vmax.f32 %v5123_v55, 0.0  ;;  %v12050_v31 = vmax.f32 %v5125_v9, 0.0 }
 0x50c   :  { %v5040_v53 = vpop.xlane.xlu0 %5039 }
 0x50d   :  { %v5081_v2 = vmul.f32 0.0025, %v5040_v53  ;;  %v5232_v38 = vpack.c.bf16 %v5188_v42, %v5184_v59  ;;  %v5234_v22 = vpack.c.bf16 %v12043_v6, %v12041_v62  ;;  %v5231_v7 = vpack.c.bf16 %v5187_v33, %v5183_v27  ;;  %5699 = vmatpush1.bf16.msra.mxu0 %v8841_v4  ;;  %v13074_v27 = vld [vmem:[#allocation5_spill] sm:$0xff]  ;;  %v8885_v62 = vld [vmem:[%s12796_s4 + $0xc4] ss:$8 sps:$4 sm:$0xff]  }
 0x50e   :  { %v5046_v56 = vpop.xlane.xlu1 %5045  ;;  %v5233_v5 = vpack.c.bf16 %v12050_v31, %v12048_v41  ;;  %5700 = vmatprep.subr.bf16.mxu0 %v8846_v34  ;;  %v8883_v6 = vld [vmem:[%s12796_s4 + $0xc0] ss:$8 sps:$4 sm:$0xff]   ;;  %v8888_v41 = vld [vmem:[%s12796_s4 + $0xd4] ss:$8 sps:$4 sm:$0xff]   ;;  %v8886_v31 = vld [vmem:[%s12796_s4 + $0xd0] ss:$8 sps:$4 sm:$0xff]  }
 0x50f   :  { %v5130_v47 = vsub.f32 %v11838_v30, %v5081_v2  ;;  %v5082_v32 = vmul.f32 0.0025, %v5046_v56  ;;  %5643 = vmatprep.mubr.bf16.mxu0 %v5232_v38  ;;  %v5128_v3 = vsub.f32 %v11834_v35, %v5081_v2  ;;  %v5127_v17 = vsub.f32 %v11830_v48, %v5081_v2  ;;  %v13075_v38 = vld [vmem:[#allocation7_spill] sm:$0xff] }
 0x510   :  { %v5129_v46 = vsub.f32 %v11832_v26, %v5081_v2  ;;  %5644 = vmatmul.mubr.bf16.gmra.mrb[144].mxu0 %v5231_v7  ;;  %v13076_v7 = vld [vmem:[#allocation3_spill] sm:$0xff] }
 0x511   :  { %v5134_v39 = vsub.f32 %v11848_v25, %v5082_v32  ;;  %v5132_v1 = vsub.f32 %v11844_v58, %v5082_v32  ;;  %v5131_v49 = vsub.f32 %v11840_v36, %v5082_v32  ;;  %5701 = vmatpush1.bf16.msra.mxu0 %v8844_v16  ;;  %v5133_v0 = vsub.f32 %v13073_v40, %v5082_v32  ;;  %v13081_v40 = vld [vmem:[#allocation34_spill] sm:$0xff] }
 0x512   :  { %v12067_v30 = vmax.f32 %v5130_v47, 0.0  ;;  %v5192_v35 = vmax.f32 %v5128_v3, 0.0  ;;  %v5191_v48 = vmax.f32 %v5127_v17, 0.0  ;;  %v12071_v26 = vmax.f32 %v5129_v46, 0.0  ;;  %v13077_v47 = vld [vmem:[#allocation6_spill] sm:$0xff]  ;;  %v13078_v3 = vld [vmem:[#allocation33_spill] sm:$0xff]  ;;  %6133 = vmatprep.subr.bf16.mxu0 %v8849_v18 }
 0x513   :  { %v12069_v12 = vmax.f32 %v5134_v39, 0.0  ;;  %v5196_v55 = vmax.f32 %v5132_v1, 0.0  ;;  %v5195_v9 = vmax.f32 %v5131_v49, 0.0  ;;  %v12073_v25 = vmax.f32 %v5133_v0, 0.0  ;;  %v13079_v46 = vld [vmem:[#allocation36_spill] sm:$0xff]  ;;  %v13080_v1 = vld [vmem:[#allocation10_spill] sm:$0xff] }
 0x514   :  { %v5052_v4 = vpop.xlane.xlu0 %5051 }
 0x515   :  { %v5083_v59 = vmul.f32 0.0025, %v5052_v4  ;;  %v5236_v58 = vpack.c.bf16 %v5196_v55, %v5192_v35  ;;  %v5238_v36 = vpack.c.bf16 %v12069_v12, %v12067_v30  ;;  %v5235_v34 = vpack.c.bf16 %v5195_v9, %v5191_v48 }
 0x516   :  { %v5058_v42 = vpop.xlane.xlu1 %5057 }
 0x517   :  { %v5138_v33 = vsub.f32 %v13074_v27, %v5083_v59  ;;  %v5084_v2 = vmul.f32 0.0025, %v5058_v42  ;;  %5653 = vmatprep.mubr.bf16.mxu0 %v5236_v58  ;;  %v5136_v56 = vsub.f32 %v13075_v38, %v5083_v59  ;;  %v5135_v16 = vsub.f32 %v13076_v7, %v5083_v59 }
 0x518   :  { %v5137_v32 = vsub.f32 %v13077_v47, %v5083_v59  ;;  %5654 = vmatmul.mubr.bf16.gmra.mrb[148].mxu0 %v5235_v34 }
 0x519   :  { %v5142_v17 = vsub.f32 %v13078_v3, %v5084_v2  ;;  %v5140_v39 = vsub.f32 %v13079_v46, %v5084_v2  ;;  %v5139_v49 = vsub.f32 %v13080_v1, %v5084_v2  ;;  %v5141_v0 = vsub.f32 %v13081_v40, %v5084_v2  ;;  %v13082_v2 = vld [vmem:[#allocation11_spill] sm:$0xff] }
 0x51a   :  { %v5202_v35 = vmax.f32 %v5138_v33, 0.0  ;;  %v5200_v4 = vmax.f32 %v5136_v56, 0.0  ;;  %v5199_v58 = vmax.f32 %v5135_v16, 0.0  ;;  %v5201_v27 = vmax.f32 %v5137_v32, 0.0  ;;  %v13085_v32 = vld [vmem:[#allocation15_spill] sm:$0xff] }
 0x51b   :  { %v5206_v55 = vmax.f32 %v5142_v17, 0.0  ;;  %v5204_v48 = vmax.f32 %v5140_v39, 0.0  ;;  %v5203_v42 = vmax.f32 %v5139_v49, 0.0  ;;  %v5205_v38 = vmax.f32 %v5141_v0, 0.0  ;;  %v13083_v17 = vld [vmem:[#allocation9_spill] sm:$0xff]  ;;  %v13084_v39 = vld [vmem:[#allocation12_spill] sm:$0xff] }
 0x51c   :  { %v5064_v9 = vpop.xlane.xlu0 %5063  ;;  %v13086_v0 = vld [vmem:[#allocation35_spill] sm:$0xff] }
 0x51d   :  { %v5085_v7 = vmul.f32 0.0025, %v5064_v9  ;;  %v5240_v59 = vpack.c.bf16 %v5204_v48, %v5200_v4  ;;  %v5242_v47 = vpack.c.bf16 %v5206_v55, %v5202_v35  ;;  %v5239_v34 = vpack.c.bf16 %v5203_v42, %v5199_v58  ;;  %v13087_v55 = vld [vmem:[#allocation16_spill] sm:$0xff] }
 0x51e   :  { %v5070_v3 = vpop.xlane.xlu1 %5069  ;;  %v5241_v53 = vpack.c.bf16 %v5205_v38, %v5201_v27 }
 0x51f   :  { %v5146_v46 = vsub.f32 %v11890_v51, %v5085_v7  ;;  %v5086_v1 = vmul.f32 0.0025, %v5070_v3  ;;  %5663 = vmatprep.mubr.bf16.mxu0 %v5240_v59  ;;  %v5144_v33 = vsub.f32 %v13082_v2, %v5085_v7  ;;  %v5143_v56 = vsub.f32 %v13083_v17, %v5085_v7 }
 0x520   :  { %v5145_v40 = vsub.f32 %v13084_v39, %v5085_v7  ;;  %5664 = vmatmul.mubr.bf16.gmra.mrb[152].mxu0 %v5239_v34 }
 0x521   :  { %v5150_v16 = vsub.f32 %v11900_v20, %v5086_v1  ;;  %v5148_v49 = vsub.f32 %v13085_v32, %v5086_v1  ;;  %v5147_v35 = vsub.f32 %v13086_v0, %v5086_v1  ;;  %v5149_v4 = vsub.f32 %v13087_v55, %v5086_v1 }
 0x522   :  { %v5210_v48 = vmax.f32 %v5146_v46, 0.0  ;;  %v5208_v51 = vmax.f32 %v5144_v33, 0.0  ;;  %v5207_v42 = vmax.f32 %v5143_v56, 0.0  ;;  %v5209_v38 = vmax.f32 %v5145_v40, 0.0 }
 0x523   :  { %v5214_v9 = vmax.f32 %v5150_v16, 0.0  ;;  %v5212_v58 = vmax.f32 %v5148_v49, 0.0  ;;  %v5211_v27 = vmax.f32 %v5147_v35, 0.0  ;;  %v5213_v59 = vmax.f32 %v5149_v4, 0.0  ;;  %v8889_v4 = vld [vmem:[%s12796_s4 + $0xe0] ss:$8 sps:$4 sm:$0xff]  }
 0x524   :  { %v13088_v20 = vpack.c.bf16 %v12073_v25, %v12071_v26 }
 0x525   :  { %v5244_v3 = vpack.c.bf16 %v5212_v58, %v5208_v51  ;;  %v5246_v2 = vpack.c.bf16 %v5214_v9, %v5210_v48  ;;  %v5243_v7 = vpack.c.bf16 %v5211_v27, %v5207_v42  ;;  %v5245_v17 = vpack.c.bf16 %v5213_v59, %v5209_v38  ;;  %v8891_v48 = vld [vmem:[%s12796_s4 + $0xe4] ss:$8 sps:$4 sm:$0xff]   ;;  %v8894_v51 = vld [vmem:[%s12796_s4 + $0xf4] ss:$8 sps:$4 sm:$0xff]   ;;  %v8892_v42 = vld [vmem:[%s12796_s4 + $0xf0] ss:$8 sps:$4 sm:$0xff]  }
 0x527   :  { %5673 = vmatprep.mubr.bf16.mxu0 %v5244_v3 }
 0x528   :  { %5674 = vmatmul.mubr.bf16.gmra.mrb[156].mxu0 %v5243_v7 }
 0x529   :  { %7476 = vmatprep.mubr.msk.bf16.mxu0 %vm1763_vm0, %v5218_v50  ;;  %v8853_v50 = vld [vmem:[%s12796_s4 + $0x20] ss:$8 sps:$4 sm:$0xff]  }
 0x530   :  { %5717 = vmatmul.mubr.bf16.vlgmr.msra.gmra.mrb[128].mxu0 %v5217_v37  ;;  %v8855_v37 = vld [vmem:[%s12796_s4 + $0x24] ss:$8 sps:$4 sm:$0xff]  }
 0x531   :  { %7477 = vmatprep.mubr.msk.bf16.mxu0 %vm1763_vm0, %v5222_v54  ;;  %6134 = vmatpush1.bf16.msra.mxu0 %v8847_v29  ;;  %v8864_v54 = vld [vmem:[%s12796_s4 + $0x54] ss:$8 sps:$4 sm:$0xff]  }
 0x532   :  { %6135 = vmatprep.subr.bf16.mxu0 %v8852_v28  ;;  %7814 = vmatprep.subr.bf16.mxu1 %v8855_v37 }
 0x533   :  { %7830 = vmatpush1.bf16.msra.mxu1 %v8853_v50 }
 0x534   :  { %7815 = vmatprep.subr.bf16.mxu1 %v8858_v61 }
 0x535   :  { %6136 = vmatpush1.bf16.msra.mxu0 %v8850_v14 }
 0x536   :  { %6137 = vmatprep.subr.bf16.mxu0 %v8855_v37 }
 0x537   :  { %7831 = vmatpush1.bf16.msra.mxu1 %v8856_v15 }
 0x538   :  { %5727 = vmatmul.mubr.bf16.gmra.mrb[132].mxu0 %v5221_v52  ;;  %7816 = vmatprep.subr.bf16.mxu1 %v8861_v10  ;;  %v8862_v52 = vld [vmem:[%s12796_s4 + $0x50] ss:$8 sps:$4 sm:$0xff]  }
 0x539   :  { %7478 = vmatprep.mubr.msk.bf16.mxu0 %vm1763_vm0, %v5226_v11  ;;  %6138 = vmatpush1.bf16.msra.mxu0 %v8853_v50  ;;  %v8873_v11 = vld [vmem:[%s12796_s4 + $0x84] ss:$8 sps:$4 sm:$0xff]  }
 0x53a   :  { %6139 = vmatprep.subr.bf16.mxu0 %v8858_v61 }
 0x53b   :  { %7832 = vmatpush1.bf16.msra.mxu1 %v8859_v60 }
 0x53c   :  { %7817 = vmatprep.subr.bf16.mxu1 %v8864_v54 }
 0x53d   :  { %6140 = vmatpush1.bf16.msra.mxu0 %v8856_v15 }
 0x53e   :  { %6141 = vmatprep.subr.bf16.mxu0 %v8861_v10 }
 0x53f   :  { %7833 = vmatpush1.bf16.msra.mxu1 %v8862_v52 }
 0x540   :  { %5737 = vmatmul.mubr.bf16.gmra.mrb[136].mxu0 %v5225_v44  ;;  %7818 = vmatprep.subr.bf16.mxu1 %v8867_v13  ;;  %v8871_v44 = vld [vmem:[%s12796_s4 + $0x80] ss:$8 sps:$4 sm:$0xff]  }
 0x541   :  { %7479 = vmatprep.mubr.msk.bf16.mxu0 %vm1763_vm0, %v5230_v8  ;;  %6142 = vmatpush1.bf16.msra.mxu0 %v8859_v60  ;;  %v8882_v8 = vld [vmem:[%s12796_s4 + $0xb4] ss:$8 sps:$4 sm:$0xff]  }
 0x542   :  { %6143 = vmatprep.subr.bf16.mxu0 %v8864_v54 }
 0x543   :  { %7834 = vmatpush1.bf16.msra.mxu1 %v8865_v21 }
 0x544   :  { %7819 = vmatprep.subr.bf16.mxu1 %v8870_v45 }
 0x545   :  { %6144 = vmatpush1.bf16.msra.mxu0 %v8862_v52 }
 0x546   :  { %6145 = vmatprep.subr.bf16.mxu0 %v8867_v13 }
 0x547   :  { %7835 = vmatpush1.bf16.msra.mxu1 %v8868_v19 }
 0x548   :  { %5747 = vmatmul.mubr.bf16.gmra.mrb[140].mxu0 %v5229_v57  ;;  %7820 = vmatprep.subr.bf16.mxu1 %v8873_v11  ;;  %v8880_v57 = vld [vmem:[%s12796_s4 + $0xb0] ss:$8 sps:$4 sm:$0xff]  }
 0x549   :  { %7480 = vmatprep.mubr.msk.bf16.mxu0 %vm1763_vm0, %v5234_v22  ;;  %6146 = vmatpush1.bf16.msra.mxu0 %v8865_v21 }
 0x54a   :  { %6147 = vmatprep.subr.bf16.mxu0 %v8870_v45 }
 0x54b   :  { %7836 = vmatpush1.bf16.msra.mxu1 %v8871_v44 }
 0x54c   :  { %7821 = vmatprep.subr.bf16.mxu1 %v8876_v63 }
 0x54d   :  { %6148 = vmatpush1.bf16.msra.mxu0 %v8868_v19 }
 0x54e   :  { %6149 = vmatprep.subr.bf16.mxu0 %v8873_v11 }
 0x54f   :  { %7837 = vmatpush1.bf16.msra.mxu1 %v8874_v24 }
 0x550   :  { %5757 = vmatmul.mubr.bf16.gmra.mrb[144].mxu0 %v5233_v5  ;;  %7822 = vmatprep.subr.bf16.mxu1 %v8879_v23 }
 0x551   :  { %7481 = vmatprep.mubr.msk.bf16.mxu0 %vm1763_vm0, %v5238_v36  ;;  %6150 = vmatpush1.bf16.msra.mxu0 %v8871_v44 }
 0x552   :  { %6151 = vmatprep.subr.bf16.mxu0 %v8876_v63 }
 0x553   :  { %7838 = vmatpush1.bf16.msra.mxu1 %v8877_v43 }
 0x554   :  { %7823 = vmatprep.subr.bf16.mxu1 %v8882_v8 }
 0x555   :  { %6152 = vmatpush1.bf16.msra.mxu0 %v8874_v24 }
 0x556   :  { %6153 = vmatprep.subr.bf16.mxu0 %v8879_v23 }
 0x557   :  { %7839 = vmatpush1.bf16.msra.mxu1 %v8880_v57 }
 0x558   :  { %5767 = vmatmul.mubr.bf16.gmra.mrb[148].mxu0 %v13088_v20  ;;  %7824 = vmatprep.subr.bf16.mxu1 %v8885_v62 }
 0x559   :  { %7482 = vmatprep.mubr.msk.bf16.mxu0 %vm1763_vm0, %v5242_v47  ;;  %6154 = vmatpush1.bf16.msra.mxu0 %v8877_v43 }
 0x55a   :  { %6155 = vmatprep.subr.bf16.mxu0 %v8882_v8 }
 0x55b   :  { %7840 = vmatpush1.bf16.msra.mxu1 %v8883_v6 }
 0x55c   :  { %7825 = vmatprep.subr.bf16.mxu1 %v8888_v41 }
 0x55d   :  { %6156 = vmatpush1.bf16.msra.mxu0 %v8880_v57 }
 0x55e   :  { %6157 = vmatprep.subr.bf16.mxu0 %v8885_v62 }
 0x55f   :  { %7841 = vmatpush1.bf16.msra.mxu1 %v8886_v31 }
 0x560   :  { %5777 = vmatmul.mubr.bf16.gmra.mrb[152].mxu0 %v5241_v53  ;;  %7826 = vmatprep.subr.bf16.mxu1 %v8891_v48 }
 0x561   :  { %7483 = vmatprep.mubr.msk.bf16.mxu0 %vm1763_vm0, %v5246_v2  ;;  %6158 = vmatpush1.bf16.msra.mxu0 %v8883_v6 }
 0x562   :  { %6159 = vmatprep.subr.bf16.mxu0 %v8888_v41 }
 0x563   :  { %7842 = vmatpush1.bf16.msra.mxu1 %v8889_v4 }
 0x564   :  { %7827 = vmatprep.subr.bf16.mxu1 %v8894_v51 }
 0x565   :  { %6160 = vmatpush1.bf16.msra.mxu0 %v8886_v31 }
 0x566   :  { %6161 = vmatprep.subr.bf16.mxu0 %v8891_v48 }
 0x567   :  { %7843 = vmatpush1.bf16.msra.mxu1 %v8892_v42 }
 0x568   :  { %5787 = vmatmul.mubr.bf16.gmra.mrb[156].mxu0 %v5245_v17  ;;  %v13089_v17 = vmov 0  }
 0x569   :  { %6162 = vmatpush1.bf16.msra.mxu0 %v8889_v4  ;;  %6502 = vmatprep.subr.bf16.mxu1 %v13089_v17 }
 0x56a   :  { %6163 = vmatprep.subr.bf16.mxu0 %v8894_v51 }
 0x56d   :  { %6164 = vmatpush1.bf16.msra.mxu0 %v8892_v42 }
 0x603   :  { %v12223_v22 = vpop.f32.mrb[128].mxu0 }
 0x604   :  { %v12225_v5 = vpop.f32.mrb[129].mxu0 }
 0x605   :  { %v12227_v30 = vpop.f32.mrb[130].mxu0  ;;  %v5797_v12 = vadd.f32 %v12225_v5, %v12223_v22 }
 0x606   :  { %v12231_v26 = vpop.f32.mrb[131].mxu0 }
 0x607   :  { %5798 = vadd.xlane.f32.xlu0 %v5797_v12  ;;  %v5800_v25 = vadd.f32 %v12231_v26, %v12227_v30 }
 0x609   :  { %5801 = vadd.xlane.f32.xlu1 %v5800_v25 }
 0x60b   :  { %v12235_v36 = vpop.f32.mrb[132].mxu0 }
 0x60c   :  { %v12237_v53 = vpop.f32.mrb[133].mxu0 }
 0x60d   :  { %v12239_v47 = vpop.f32.mrb[134].mxu0  ;;  %v5803_v34 = vadd.f32 %v12237_v53, %v12235_v36 }
 0x60e   :  { %v12243_v46 = vpop.f32.mrb[135].mxu0 }
 0x60f   :  { %5804 = vadd.xlane.f32.xlu0 %v5803_v34  ;;  %v5806_v1 = vadd.f32 %v12243_v46, %v12239_v47 }
 0x611   :  { %5807 = vadd.xlane.f32.xlu1 %v5806_v1 }
 0x613   :  { %v12247_v33 = vpop.f32.mrb[136].mxu0 }
 0x614   :  { %v12249_v56 = vpop.f32.mrb[137].mxu0 }
 0x615   :  { %v12251_v39 = vpop.f32.mrb[138].mxu0  ;;  %v5809_v40 = vadd.f32 %v12249_v56, %v12247_v33 }
 0x616   :  { %v12255_v16 = vpop.f32.mrb[139].mxu0 }
 0x617   :  { %5810 = vadd.xlane.f32.xlu0 %v5809_v40  ;;  %v5812_v32 = vadd.f32 %v12255_v16, %v12251_v39 }
 0x619   :  { %5813 = vadd.xlane.f32.xlu1 %v5812_v32 }
 0x61b   :  { %v12259_v49 = vpop.f32.mrb[140].mxu0 }
 0x61c   :  { %v12261_v0 = vpop.f32.mrb[141].mxu0 }
 0x61d   :  { %v12263_v35 = vpop.f32.mrb[142].mxu0  ;;  %v5815_v55 = vadd.f32 %v12261_v0, %v12259_v49 }
 0x61e   :  { %v12273_v9 = vpop.f32.mrb[143].mxu0 }
 0x61f   :  { %5816 = vadd.xlane.f32.xlu0 %v5815_v55  ;;  %v5818_v58 = vadd.f32 %v12273_v9, %v12263_v35 }
 0x621   :  { %5819 = vadd.xlane.f32.xlu1 %v5818_v58 }
 0x623   :  { %v12283_v27 = vpop.f32.mrb[144].mxu0 }
 0x624   :  { %v12285_v38 = vpop.f32.mrb[145].mxu0 }
 0x625   :  { %v12287_v59 = vpop.f32.mrb[146].mxu0  ;;  %v5821_v3 = vadd.f32 %v12285_v38, %v12283_v27 }
 0x626   :  { %v12291_v2 = vpop.f32.mrb[147].mxu0 }
 0x627   :  { %5822 = vadd.xlane.f32.xlu0 %v5821_v3  ;;  %v5824_v7 = vadd.f32 %v12291_v2, %v12287_v59 }
 0x629   :  { %5825 = vadd.xlane.f32.xlu1 %v5824_v7 }
 0x62b   :  { %v12296_v20 = vpop.f32.mrb[148].mxu0 }
 0x62c   :  { %v12298_v29 = vpop.f32.mrb[149].mxu0 }
 0x62d   :  { %v12300_v18 = vpop.f32.mrb[150].mxu0  ;;  %v5827_v28 = vadd.f32 %v12298_v29, %v12296_v20 }
 0x62e   :  { %v12304_v14 = vpop.f32.mrb[151].mxu0 }
 0x62f   :  { %5828 = vadd.xlane.f32.xlu0 %v5827_v28  ;;  %v5830_v37 = vadd.f32 %v12304_v14, %v12300_v18 }
 0x631   :  { %5831 = vadd.xlane.f32.xlu1 %v5830_v37 }
 0x633   :  { %v12308_v50 = vpop.f32.mrb[152].mxu0 }
 0x634   :  { %v12310_v61 = vpop.f32.mrb[153].mxu0 }
 0x635   :  { %v12312_v15 = vpop.f32.mrb[154].mxu0  ;;  %v5833_v10 = vadd.f32 %v12310_v61, %v12308_v50 }
 0x636   :  { %v12316_v60 = vpop.f32.mrb[155].mxu0 }
 0x637   :  { %5834 = vadd.xlane.f32.xlu0 %v5833_v10  ;;  %v5836_v54 = vadd.f32 %v12316_v60, %v12312_v15 }
 0x639   :  { %5837 = vadd.xlane.f32.xlu1 %v5836_v54 }
 0x63b   :  { %v12320_v52 = vpop.f32.mrb[156].mxu0 }
 0x63c   :  { %v12322_v13 = vpop.f32.mrb[157].mxu0 }
 0x63d   :  { %v12324_v21 = vpop.f32.mrb[158].mxu0  ;;  %v5839_v45 = vadd.f32 %v12322_v13, %v12320_v52 }
 0x63e   :  { %v12328_v19 = vpop.f32.mrb[159].mxu0 }
 0x63f   :  { %5840 = vadd.xlane.f32.xlu0 %v5839_v45  ;;  %v5842_v11 = vadd.f32 %v12328_v19, %v12324_v21 }
 0x641   :  { %5843 = vadd.xlane.f32.xlu1 %v5842_v11 }
 0x694   :  { %v5799_v44 = vpop.xlane.xlu0 %5798 }
 0x695   :  { %v5845_v63 = vmul.f32 0.00390625, %v5799_v44 }
 0x696   :  { %v5802_v24 = vpop.xlane.xlu1 %5801 }
 0x697   :  { %v5861_v23 = vsub.f32 %v12223_v22, %v5845_v63  ;;  %v5862_v43 = vsub.f32 %v12225_v5, %v5845_v63  ;;  %v5846_v8 = vmul.f32 0.00390625, %v5802_v24 }
 0x699   :  { %v5863_v57 = vsub.f32 %v12227_v30, %v5846_v8  ;;  %v5864_v62 = vsub.f32 %v12231_v26, %v5846_v8  ;;  %v5893_v6 = vmax.f32 %v5861_v23, 0.0  ;;  %v5894_v41 = vmax.f32 %v5862_v43, 0.0 }
 0x69b   :  { %v5895_v31 = vmax.f32 %v5863_v57, 0.0  ;;  %v5896_v12 = vmax.f32 %v5864_v62, 0.0 }
 0x69c   :  { %v5805_v25 = vpop.xlane.xlu0 %5804 }
 0x69d   :  { %v5925_v34 = vpack.c.bf16 %v5895_v31, %v5893_v6  ;;  %v5847_v1 = vmul.f32 0.00390625, %v5805_v25  ;;  %v5926_v40 = vpack.c.bf16 %v5896_v12, %v5894_v41 }
 0x69e   :  { %v5808_v32 = vpop.xlane.xlu1 %5807 }
 0x69f   :  { %v5865_v55 = vsub.f32 %v12235_v36, %v5847_v1  ;;  %v5866_v22 = vsub.f32 %v12237_v53, %v5847_v1  ;;  %v5848_v4 = vmul.f32 0.00390625, %v5808_v32  ;;  %6165 = vmatprep.mubr.bf16.mxu0 %v5926_v40 }
 0x6a0   :  { %6166 = vmatmul.mubr.bf16.vlgmr.msra.gmra.mrb[160].mxu0 %v5925_v34 }
 0x6a1   :  { %v5867_v5 = vsub.f32 %v12239_v47, %v5848_v4  ;;  %v5868_v30 = vsub.f32 %v12243_v46, %v5848_v4  ;;  %v5897_v26 = vmax.f32 %v5865_v55, 0.0  ;;  %v5898_v48 = vmax.f32 %v5866_v22, 0.0 }
 0x6a3   :  { %v5899_v51 = vmax.f32 %v5867_v5, 0.0  ;;  %v5900_v58 = vmax.f32 %v5868_v30, 0.0 }
 0x6a4   :  { %v5811_v42 = vpop.xlane.xlu0 %5810 }
 0x6a5   :  { %v5849_v3 = vmul.f32 0.00390625, %v5811_v42  ;;  %v5928_v7 = vpack.c.bf16 %v5900_v58, %v5898_v48  ;;  %v5927_v28 = vpack.c.bf16 %v5899_v51, %v5897_v26 }
 0x6a6   :  { %v5814_v37 = vpop.xlane.xlu1 %5813 }
 0x6a7   :  { %v5869_v36 = vsub.f32 %v12247_v33, %v5849_v3  ;;  %v5870_v53 = vsub.f32 %v12249_v56, %v5849_v3  ;;  %v5850_v10 = vmul.f32 0.00390625, %v5814_v37  ;;  %6175 = vmatprep.mubr.bf16.mxu0 %v5928_v7 }
 0x6a8   :  { %6176 = vmatmul.mubr.bf16.gmra.mrb[164].mxu0 %v5927_v28 }
 0x6a9   :  { %v5871_v47 = vsub.f32 %v12251_v39, %v5850_v10  ;;  %v5872_v46 = vsub.f32 %v12255_v16, %v5850_v10  ;;  %v5901_v54 = vmax.f32 %v5869_v36, 0.0  ;;  %v5902_v45 = vmax.f32 %v5870_v53, 0.0 }
 0x6ab   :  { %v5903_v11 = vmax.f32 %v5871_v47, 0.0  ;;  %v5904_v44 = vmax.f32 %v5872_v46, 0.0 }
 0x6ac   :  { %v5817_v63 = vpop.xlane.xlu0 %5816 }
 0x6ad   :  { %v5851_v24 = vmul.f32 0.00390625, %v5817_v63  ;;  %v5930_v23 = vpack.c.bf16 %v5904_v44, %v5902_v45  ;;  %v5929_v43 = vpack.c.bf16 %v5903_v11, %v5901_v54 }
 0x6ae   :  { %v5820_v8 = vpop.xlane.xlu1 %5819 }
 0x6af   :  { %v5873_v33 = vsub.f32 %v12259_v49, %v5851_v24  ;;  %v5874_v56 = vsub.f32 %v12261_v0, %v5851_v24  ;;  %v5852_v57 = vmul.f32 0.00390625, %v5820_v8  ;;  %6185 = vmatprep.mubr.bf16.mxu0 %v5930_v23 }
 0x6b0   :  { %6186 = vmatmul.mubr.bf16.gmra.mrb[168].mxu0 %v5929_v43 }
 0x6b1   :  { %v5875_v39 = vsub.f32 %v12263_v35, %v5852_v57  ;;  %v5876_v16 = vsub.f32 %v12273_v9, %v5852_v57  ;;  %v5905_v62 = vmax.f32 %v5873_v33, 0.0  ;;  %v5906_v6 = vmax.f32 %v5874_v56, 0.0 }
 0x6b3   :  { %v5907_v41 = vmax.f32 %v5875_v39, 0.0  ;;  %v5908_v31 = vmax.f32 %v5876_v16, 0.0 }
 0x6b4   :  { %v5823_v12 = vpop.xlane.xlu0 %5822 }
 0x6b5   :  { %v5931_v25 = vpack.c.bf16 %v5907_v41, %v5905_v62  ;;  %v5853_v34 = vmul.f32 0.00390625, %v5823_v12  ;;  %v5932_v1 = vpack.c.bf16 %v5908_v31, %v5906_v6  ;;  %v8899_v31 = vld [vmem:[%s12797_s5 + $0x20] sm:$0xff]   ;;  %v8900_v12 = vld [vmem:[%s12797_s5 + $0x28] sm:$0xff]  }
 0x6b6   :  { %v5826_v40 = vpop.xlane.xlu1 %5825 }
 0x6b7   :  { %v5877_v49 = vsub.f32 %v12283_v27, %v5853_v34  ;;  %v5878_v0 = vsub.f32 %v12285_v38, %v5853_v34  ;;  %v5854_v32 = vmul.f32 0.00390625, %v5826_v40  ;;  %6195 = vmatprep.mubr.bf16.mxu1 %v5932_v1 }
 0x6b8   :  { %6196 = vmatmul.mubr.bf16.vlgmr.msra.gmra.mrb[144].mxu1 %v5931_v25  ;;  %v8901_v25 = vld [vmem:[%s12797_s5 + $0x30] sm:$0xff]  }
 0x6b9   :  { %v5879_v35 = vsub.f32 %v12287_v59, %v5854_v32  ;;  %v5880_v9 = vsub.f32 %v12291_v2, %v5854_v32  ;;  %v5909_v55 = vmax.f32 %v5877_v49, 0.0  ;;  %v5910_v22 = vmax.f32 %v5878_v0, 0.0 }
 0x6bb   :  { %v5911_v4 = vmax.f32 %v5879_v35, 0.0  ;;  %v5912_v5 = vmax.f32 %v5880_v9, 0.0 }
 0x6bc   :  { %v5829_v30 = vpop.xlane.xlu0 %5828 }
 0x6bd   :  { %v5855_v26 = vmul.f32 0.00390625, %v5829_v30  ;;  %v5934_v48 = vpack.c.bf16 %v5912_v5, %v5910_v22  ;;  %v5933_v51 = vpack.c.bf16 %v5911_v4, %v5909_v55 }
 0x6be   :  { %v5832_v58 = vpop.xlane.xlu1 %5831 }
 0x6bf   :  { %v5881_v27 = vsub.f32 %v12296_v20, %v5855_v26  ;;  %v5882_v38 = vsub.f32 %v12298_v29, %v5855_v26  ;;  %v5856_v42 = vmul.f32 0.00390625, %v5832_v58  ;;  %6205 = vmatprep.mubr.bf16.mxu1 %v5934_v48 }
 0x6c0   :  { %6206 = vmatmul.mubr.bf16.gmra.mrb[148].mxu1 %v5933_v51 }
 0x6c1   :  { %v5883_v59 = vsub.f32 %v12300_v18, %v5856_v42  ;;  %v5884_v2 = vsub.f32 %v12304_v14, %v5856_v42  ;;  %v5913_v3 = vmax.f32 %v5881_v27, 0.0  ;;  %v5914_v7 = vmax.f32 %v5882_v38, 0.0 }
 0x6c3   :  { %v5915_v28 = vmax.f32 %v5883_v59, 0.0  ;;  %v5916_v37 = vmax.f32 %v5884_v2, 0.0 }
 0x6c4   :  { %v5835_v36 = vpop.xlane.xlu0 %5834 }
 0x6c5   :  { %v5857_v53 = vmul.f32 0.00390625, %v5835_v36  ;;  %v5936_v10 = vpack.c.bf16 %v5916_v37, %v5914_v7  ;;  %v5935_v47 = vpack.c.bf16 %v5915_v28, %v5913_v3 }
 0x6c6   :  { %v5838_v46 = vpop.xlane.xlu1 %5837 }
 0x6c7   :  { %v5885_v20 = vsub.f32 %v12308_v50, %v5857_v53  ;;  %v5886_v29 = vsub.f32 %v12310_v61, %v5857_v53  ;;  %v5858_v54 = vmul.f32 0.00390625, %v5838_v46  ;;  %6215 = vmatprep.mubr.bf16.mxu1 %v5936_v10  ;;  %v8902_v46 = vld [vmem:[%s12797_s5 + $0x38] sm:$0xff]  }
 0x6c8   :  { %6216 = vmatmul.mubr.bf16.gmra.mrb[152].mxu1 %v5935_v47 }
 0x6c9   :  { %v5887_v18 = vsub.f32 %v12312_v15, %v5858_v54  ;;  %v5888_v14 = vsub.f32 %v12316_v60, %v5858_v54  ;;  %v5917_v45 = vmax.f32 %v5885_v20, 0.0  ;;  %v5918_v11 = vmax.f32 %v5886_v29, 0.0  ;;  %v8903_v54 = vld [vmem:[%s12797_s5 + $0x40] sm:$0xff]  }
 0x6cb   :  { %v5919_v44 = vmax.f32 %v5887_v18, 0.0  ;;  %v5920_v63 = vmax.f32 %v5888_v14, 0.0 }
 0x6cc   :  { %v5841_v24 = vpop.xlane.xlu0 %5840 }
 0x6cd   :  { %v5859_v23 = vmul.f32 0.00390625, %v5841_v24  ;;  %v5938_v43 = vpack.c.bf16 %v5920_v63, %v5918_v11  ;;  %v5937_v8 = vpack.c.bf16 %v5919_v44, %v5917_v45 }
 0x6ce   :  { %v5844_v33 = vpop.xlane.xlu1 %5843 }
 0x6cf   :  { %v5889_v50 = vsub.f32 %v12320_v52, %v5859_v23  ;;  %v5890_v61 = vsub.f32 %v12322_v13, %v5859_v23  ;;  %v5860_v56 = vmul.f32 0.00390625, %v5844_v33  ;;  %6225 = vmatprep.mubr.bf16.mxu1 %v5938_v43  ;;  %v8895_v52 = vld [vmem:[%s12797_s5] sm:$0xff]   ;;  %v8896_v13 = vld [vmem:[%s12797_s5 + $0x8] sm:$0xff]  }
 0x6d0   :  { %6226 = vmatmul.mubr.bf16.gmra.mrb[156].mxu1 %v5937_v8 }
 0x6d1   :  { %v5891_v15 = vsub.f32 %v12324_v21, %v5860_v56  ;;  %v5892_v60 = vsub.f32 %v12328_v19, %v5860_v56  ;;  %v5921_v57 = vmax.f32 %v5889_v50, 0.0  ;;  %v5922_v39 = vmax.f32 %v5890_v61, 0.0  ;;  %6503 = vmatpush1.bf16.msra.mxu1 %v8895_v52  ;;  %v8897_v21 = vld [vmem:[%s12797_s5 + $0x10] sm:$0xff]   ;;  %v8898_v19 = vld [vmem:[%s12797_s5 + $0x18] sm:$0xff]  }
 0x6d2   :  { %6504 = vmatprep.subr.bf16.mxu1 %v13089_v17 }
 0x6d3   :  { %v5923_v16 = vmax.f32 %v5891_v15, 0.0  ;;  %v5924_v62 = vmax.f32 %v5892_v60, 0.0 }
 0x6d5   :  { %v5940_v6 = vpack.c.bf16 %v5924_v62, %v5922_v39  ;;  %v5939_v41 = vpack.c.bf16 %v5923_v16, %v5921_v57  ;;  %6505 = vmatpush1.bf16.msra.mxu1 %v8896_v13 }
 0x6d6   :  { %6506 = vmatprep.subr.bf16.mxu1 %v13089_v17 }
 0x6d7   :  { %6235 = vmatprep.mubr.bf16.mxu1 %v5940_v6 }
 0x6d8   :  { %6236 = vmatmul.mubr.bf16.gmra.mrb[160].mxu1 %v5939_v41 }
 0x6d9   :  { %6507 = vmatpush1.bf16.msra.mxu1 %v8897_v21 }
 0x6da   :  { %6508 = vmatprep.subr.bf16.mxu1 %v13089_v17 }
 0x6dd   :  { %6509 = vmatpush1.bf16.msra.mxu1 %v8898_v19 }
 0x6de   :  { %6510 = vmatprep.subr.bf16.mxu1 %v13089_v17 }
 0x6e1   :  { %6511 = vmatpush1.bf16.msra.mxu1 %v8899_v31 }
 0x6e2   :  { %6512 = vmatprep.subr.bf16.mxu1 %v13089_v17 }
 0x6e5   :  { %6513 = vmatpush1.bf16.msra.mxu1 %v8900_v12 }
 0x6e6   :  { %6514 = vmatprep.subr.bf16.mxu1 %v13089_v17 }
 0x6e9   :  { %6515 = vmatpush1.bf16.msra.mxu1 %v8901_v25 }
 0x6ea   :  { %6516 = vmatprep.subr.bf16.mxu1 %v13089_v17 }
 0x6ed   :  { %6517 = vmatpush1.bf16.msra.mxu1 %v8902_v46 }
 0x6ee   :  { %6518 = vmatprep.subr.bf16.mxu1 %v13089_v17 }
 0x6f1   :  { %6519 = vmatpush1.bf16.msra.mxu1 %v8903_v54 }
 0x773   :  { %v12392_v34 = vpop.f32.mrb[160].mxu0 }
 0x774   :  { %v12394_v1 = vpop.f32.mrb[161].mxu0 }
 0x775   :  { %v6246_v40 = vsel %vm1763_vm0, %v12394_v1, 0.0  ;;  %v12398_v49 = vpop.f32.mrb[162].mxu0 }
 0x776   :  { %v12400_v0 = vpop.f32.mrb[163].mxu0  ;;  %v6247_v32 = vadd.f32 %v6246_v40, %v12392_v34 }
 0x777   :  { %v6250_v35 = vsel %vm1763_vm0, %v12400_v0, 0.0 }
 0x778   :  { %6248 = vadd.xlane.f32.xlu0 %v6247_v32  ;;  %v6251_v9 = vadd.f32 %v6250_v35, %v12398_v49 }
 0x77a   :  { %6252 = vadd.xlane.f32.xlu1 %v6251_v9 }
 0x77b   :  { %v12406_v55 = vpop.f32.mrb[164].mxu0 }
 0x77c   :  { %v12408_v22 = vpop.f32.mrb[165].mxu0 }
 0x77d   :  { %v6254_v4 = vsel %vm1763_vm0, %v12408_v22, 0.0  ;;  %v12412_v5 = vpop.f32.mrb[166].mxu0 }
 0x77e   :  { %v12414_v30 = vpop.f32.mrb[167].mxu0  ;;  %v6255_v26 = vadd.f32 %v6254_v4, %v12406_v55 }
 0x77f   :  { %v6258_v48 = vsel %vm1763_vm0, %v12414_v30, 0.0 }
 0x780   :  { %6256 = vadd.xlane.f32.xlu0 %v6255_v26  ;;  %v6259_v51 = vadd.f32 %v6258_v48, %v12412_v5 }
 0x782   :  { %6260 = vadd.xlane.f32.xlu1 %v6259_v51 }
 0x783   :  { %v12420_v58 = vpop.f32.mrb[168].mxu0 }
 0x784   :  { %v12422_v27 = vpop.f32.mrb[169].mxu0 }
 0x785   :  { %v6262_v38 = vsel %vm1763_vm0, %v12422_v27, 0.0  ;;  %v12426_v42 = vpop.f32.mrb[170].mxu0 }
 0x786   :  { %v12428_v59 = vpop.f32.mrb[171].mxu0  ;;  %v6263_v2 = vadd.f32 %v6262_v38, %v12420_v58 }
 0x787   :  { %v6266_v3 = vsel %vm1763_vm0, %v12428_v59, 0.0 }
 0x788   :  { %6264 = vadd.xlane.f32.xlu0 %v6263_v2  ;;  %v6267_v7 = vadd.f32 %v6266_v3, %v12426_v42 }
 0x78a   :  { %6268 = vadd.xlane.f32.xlu1 %v6267_v7 }
 0x78b   :  { %v12434_v28 = vpop.f32.mrb[144].mxu1 }
 0x78c   :  { %v12436_v37 = vpop.f32.mrb[145].mxu1 }
 0x78d   :  { %v6270_v36 = vsel %vm1763_vm0, %v12436_v37, 0.0  ;;  %v12440_v53 = vpop.f32.mrb[146].mxu1 }
 0x78e   :  { %v12442_v10 = vpop.f32.mrb[147].mxu1  ;;  %v6271_v47 = vadd.f32 %v6270_v36, %v12434_v28 }
 0x78f   :  { %v6274_v20 = vsel %vm1763_vm0, %v12442_v10, 0.0 }
 0x790   :  { %6272 = vadd.xlane.f32.xlu0 %v6271_v47  ;;  %v6275_v29 = vadd.f32 %v6274_v20, %v12440_v53 }
 0x792   :  { %6276 = vadd.xlane.f32.xlu1 %v6275_v29 }
 0x793   :  { %v12455_v18 = vpop.f32.mrb[148].mxu1 }
 0x794   :  { %v12457_v14 = vpop.f32.mrb[149].mxu1 }
 0x795   :  { %v6278_v45 = vsel %vm1763_vm0, %v12457_v14, 0.0  ;;  %v12461_v11 = vpop.f32.mrb[150].mxu1 }
 0x796   :  { %v12463_v44 = vpop.f32.mrb[151].mxu1  ;;  %v6279_v63 = vadd.f32 %v6278_v45, %v12455_v18 }
 0x797   :  { %v6282_v17 = vsel %vm1763_vm0, %v12463_v44, 0.0 }
 0x798   :  { %6280 = vadd.xlane.f32.xlu0 %v6279_v63  ;;  %v6283_v24 = vadd.f32 %v6282_v17, %v12461_v11 }
 0x79a   :  { %6284 = vadd.xlane.f32.xlu1 %v6283_v24 }
 0x79b   :  { %v12469_v23 = vpop.f32.mrb[152].mxu1 }
 0x79c   :  { %v12471_v43 = vpop.f32.mrb[153].mxu1 }
 0x79d   :  { %v6286_v8 = vsel %vm1763_vm0, %v12471_v43, 0.0  ;;  %v12475_v33 = vpop.f32.mrb[154].mxu1 }
 0x79e   :  { %v12477_v50 = vpop.f32.mrb[155].mxu1  ;;  %v6287_v61 = vadd.f32 %v6286_v8, %v12469_v23 }
 0x79f   :  { %v6290_v56 = vsel %vm1763_vm0, %v12477_v50, 0.0 }
 0x7a0   :  { %6288 = vadd.xlane.f32.xlu0 %v6287_v61  ;;  %v6291_v15 = vadd.f32 %v6290_v56, %v12475_v33 }
 0x7a2   :  { %6292 = vadd.xlane.f32.xlu1 %v6291_v15 }
 0x7a3   :  { %v12483_v60 = vpop.f32.mrb[156].mxu1 }
 0x7a4   :  { %v12485_v57 = vpop.f32.mrb[157].mxu1 }
 0x7a5   :  { %v6294_v39 = vsel %vm1763_vm0, %v12485_v57, 0.0  ;;  %v12489_v16 = vpop.f32.mrb[158].mxu1 }
 0x7a6   :  { %v12491_v62 = vpop.f32.mrb[159].mxu1  ;;  %v6295_v6 = vadd.f32 %v6294_v39, %v12483_v60 }
 0x7a7   :  { %v6298_v41 = vsel %vm1763_vm0, %v12491_v62, 0.0 }
 0x7a8   :  { %6296 = vadd.xlane.f32.xlu0 %v6295_v6  ;;  %v6299_v52 = vadd.f32 %v6298_v41, %v12489_v16 }
 0x7aa   :  { %6300 = vadd.xlane.f32.xlu1 %v6299_v52 }
 0x7ab   :  { %v12497_v13 = vpop.f32.mrb[160].mxu1 }
 0x7ac   :  { %v12499_v21 = vpop.f32.mrb[161].mxu1 }
 0x7ad   :  { %v6302_v19 = vsel %vm1763_vm0, %v12499_v21, 0.0  ;;  %v12503_v31 = vpop.f32.mrb[162].mxu1 }
 0x7ae   :  { %v12505_v12 = vpop.f32.mrb[163].mxu1  ;;  %v6303_v25 = vadd.f32 %v6302_v19, %v12497_v13 }
 0x7af   :  { %v6306_v40 = vsel %vm1763_vm0, %v12505_v12, 0.0 }
 0x7b0   :  { %6304 = vadd.xlane.f32.xlu0 %v6303_v25  ;;  %v6307_v32 = vadd.f32 %v6306_v40, %v12503_v31 }
 0x7b2   :  { %6308 = vadd.xlane.f32.xlu1 %v6307_v32 }
 0x805   :  { %v6249_v35 = vpop.xlane.xlu0 %6248 }
 0x806   :  { %v6310_v9 = vmul.f32 0.0069444445, %v6249_v35 }
 0x807   :  { %v6253_v4 = vpop.xlane.xlu1 %6252 }
 0x808   :  { %v6326_v26 = vsub.f32 %v12392_v34, %v6310_v9  ;;  %v6327_v48 = vsub.f32 %v12394_v1, %v6310_v9  ;;  %v6311_v51 = vmul.f32 0.0069444445, %v6253_v4 }
 0x80a   :  { %v6328_v38 = vsub.f32 %v12398_v49, %v6311_v51  ;;  %v6329_v2 = vsub.f32 %v12400_v0, %v6311_v51  ;;  %v6358_v3 = vmax.f32 %v6326_v26, 0.0  ;;  %v6359_v7 = vmax.f32 %v6327_v48, 0.0 }
 0x80c   :  { %v6360_v36 = vmax.f32 %v6328_v38, 0.0  ;;  %v6361_v47 = vmax.f32 %v6329_v2, 0.0 }
 0x80d   :  { %v6257_v46 = vpop.xlane.xlu0 %6256 }
 0x80e   :  { %v6390_v20 = vpack.c.bf16 %v6360_v36, %v6358_v3  ;;  %v6391_v29 = vpack.c.bf16 %v6361_v47, %v6359_v7  ;;  %v6312_v54 = vmul.f32 0.0069444445, %v6257_v46 }
 0x80f   :  { %v6261_v45 = vpop.xlane.xlu1 %6260 }
 0x810   :  { %v6330_v63 = vsub.f32 %v12406_v55, %v6312_v54  ;;  %v6331_v34 = vsub.f32 %v12408_v22, %v6312_v54  ;;  %v6313_v17 = vmul.f32 0.0069444445, %v6261_v45  ;;  %7525 = vmatprep.mubr.msk.bf16.mxu1 %vm1763_vm0, %v6391_v29 }
 0x811   :  { %6535 = vmatmul.mubr.bf16.vlgmr.msra.gmra.mrb[164].mxu1 %v6390_v20 }
 0x812   :  { %v6332_v1 = vsub.f32 %v12412_v5, %v6313_v17  ;;  %v6333_v49 = vsub.f32 %v12414_v30, %v6313_v17  ;;  %v6362_v0 = vmax.f32 %v6330_v63, 0.0  ;;  %v6363_v24 = vmax.f32 %v6331_v34, 0.0 }
 0x814   :  { %v6364_v8 = vmax.f32 %v6332_v1, 0.0  ;;  %v6365_v61 = vmax.f32 %v6333_v49, 0.0 }
 0x815   :  { %v6265_v56 = vpop.xlane.xlu0 %6264 }
 0x816   :  { %v6393_v15 = vpack.c.bf16 %v6365_v61, %v6363_v24  ;;  %v6314_v39 = vmul.f32 0.0069444445, %v6265_v56  ;;  %v6392_v6 = vpack.c.bf16 %v6364_v8, %v6362_v0 }
 0x817   :  { %v6269_v41 = vpop.xlane.xlu1 %6268 }
 0x818   :  { %v6334_v55 = vsub.f32 %v12420_v58, %v6314_v39  ;;  %v6335_v22 = vsub.f32 %v12422_v27, %v6314_v39  ;;  %v6315_v52 = vmul.f32 0.0069444445, %v6269_v41  ;;  %7526 = vmatprep.mubr.msk.bf16.mxu1 %vm1763_vm0, %v6393_v15 }
 0x819   :  { %6543 = vmatmul.mubr.bf16.gmra.mrb[168].mxu1 %v6392_v6 }
 0x81a   :  { %v6336_v5 = vsub.f32 %v12426_v42, %v6315_v52  ;;  %v6337_v30 = vsub.f32 %v12428_v59, %v6315_v52  ;;  %v6366_v19 = vmax.f32 %v6334_v55, 0.0  ;;  %v6367_v25 = vmax.f32 %v6335_v22, 0.0 }
 0x81c   :  { %v6368_v40 = vmax.f32 %v6336_v5, 0.0  ;;  %v6369_v32 = vmax.f32 %v6337_v30, 0.0 }
 0x81d   :  { %v6273_v35 = vpop.xlane.xlu0 %6272 }
 0x81e   :  { %v6395_v9 = vpack.c.bf16 %v6369_v32, %v6367_v25  ;;  %v6316_v4 = vmul.f32 0.0069444445, %v6273_v35  ;;  %v6394_v26 = vpack.c.bf16 %v6368_v40, %v6366_v19 }
 0x81f   :  { %v6277_v48 = vpop.xlane.xlu1 %6276 }
 0x820   :  { %v6338_v58 = vsub.f32 %v12434_v28, %v6316_v4  ;;  %v6339_v27 = vsub.f32 %v12436_v37, %v6316_v4  ;;  %v6317_v51 = vmul.f32 0.0069444445, %v6277_v48  ;;  %7527 = vmatprep.mubr.msk.bf16.mxu1 %vm1763_vm0, %v6395_v9 }
 0x821   :  { %6551 = vmatmul.mubr.bf16.gmra.mrb[172].mxu1 %v6394_v26 }
 0x822   :  { %v6340_v42 = vsub.f32 %v12440_v53, %v6317_v51  ;;  %v6341_v59 = vsub.f32 %v12442_v10, %v6317_v51  ;;  %v6370_v38 = vmax.f32 %v6338_v58, 0.0  ;;  %v6371_v2 = vmax.f32 %v6339_v27, 0.0 }
 0x824   :  { %v6372_v3 = vmax.f32 %v6340_v42, 0.0  ;;  %v6373_v7 = vmax.f32 %v6341_v59, 0.0 }
 0x825   :  { %v6281_v36 = vpop.xlane.xlu0 %6280 }
 0x826   :  { %v6397_v47 = vpack.c.bf16 %v6373_v7, %v6371_v2  ;;  %v6318_v46 = vmul.f32 0.0069444445, %v6281_v36  ;;  %v6396_v20 = vpack.c.bf16 %v6372_v3, %v6370_v38 }
 0x827   :  { %v6285_v29 = vpop.xlane.xlu1 %6284 }
 0x828   :  { %v6342_v28 = vsub.f32 %v12455_v18, %v6318_v46  ;;  %v6343_v37 = vsub.f32 %v12457_v14, %v6318_v46  ;;  %v6319_v54 = vmul.f32 0.0069444445, %v6285_v29  ;;  %7528 = vmatprep.mubr.msk.bf16.mxu1 %vm1763_vm0, %v6397_v47 }
 0x829   :  { %6559 = vmatmul.mubr.bf16.gmra.mrb[176].mxu1 %v6396_v20 }
 0x82a   :  { %v6344_v53 = vsub.f32 %v12461_v11, %v6319_v54  ;;  %v6345_v10 = vsub.f32 %v12463_v44, %v6319_v54  ;;  %v6374_v45 = vmax.f32 %v6342_v28, 0.0  ;;  %v6375_v63 = vmax.f32 %v6343_v37, 0.0 }
 0x82c   :  { %v6376_v34 = vmax.f32 %v6344_v53, 0.0  ;;  %v6377_v17 = vmax.f32 %v6345_v10, 0.0 }
 0x82d   :  { %v6289_v1 = vpop.xlane.xlu0 %6288 }
 0x82e   :  { %v6399_v49 = vpack.c.bf16 %v6377_v17, %v6375_v63  ;;  %v6320_v0 = vmul.f32 0.0069444445, %v6289_v1  ;;  %v6398_v24 = vpack.c.bf16 %v6376_v34, %v6374_v45 }
 0x82f   :  { %v6293_v8 = vpop.xlane.xlu1 %6292 }
 0x830   :  { %v6346_v18 = vsub.f32 %v12469_v23, %v6320_v0  ;;  %v6347_v14 = vsub.f32 %v12471_v43, %v6320_v0  ;;  %v6321_v61 = vmul.f32 0.0069444445, %v6293_v8  ;;  %7529 = vmatprep.mubr.msk.bf16.mxu1 %vm1763_vm0, %v6399_v49  ;;  %v8907_v0 = vld [vmem:[%s12798_s6 + $0x18] sm:$0xff]  }
 0x831   :  { %6567 = vmatmul.mubr.bf16.gmra.mrb[180].mxu1 %v6398_v24  ;;  %v8908_v24 = vld [vmem:[%s12798_s6 + $0x20] sm:$0xff]  }
 0x832   :  { %v6348_v11 = vsub.f32 %v12475_v33, %v6321_v61  ;;  %v6349_v44 = vsub.f32 %v12477_v50, %v6321_v61  ;;  %v6378_v56 = vmax.f32 %v6346_v18, 0.0  ;;  %v6379_v15 = vmax.f32 %v6347_v14, 0.0 }
 0x834   :  { %v6380_v39 = vmax.f32 %v6348_v11, 0.0  ;;  %v6381_v6 = vmax.f32 %v6349_v44, 0.0 }
 0x835   :  { %v6297_v41 = vpop.xlane.xlu0 %6296 }
 0x836   :  { %v6401_v55 = vpack.c.bf16 %v6381_v6, %v6379_v15  ;;  %v6322_v22 = vmul.f32 0.0069444445, %v6297_v41  ;;  %v6400_v52 = vpack.c.bf16 %v6380_v39, %v6378_v56  ;;  %v8909_v56 = vld [vmem:[%s12798_s6 + $0x28] sm:$0xff]   ;;  %v8910_v15 = vld [vmem:[%s12798_s6 + $0x30] ss:$0 sps:$4 sm:$0x33]  }
 0x837   :  { %v6301_v5 = vpop.xlane.xlu1 %6300 }
 0x838   :  { %v6350_v23 = vsub.f32 %v12483_v60, %v6322_v22  ;;  %v6351_v43 = vsub.f32 %v12485_v57, %v6322_v22  ;;  %v6323_v30 = vmul.f32 0.0069444445, %v6301_v5  ;;  %7530 = vmatprep.mubr.msk.bf16.mxu1 %vm1763_vm0, %v6401_v55 }
 0x839   :  { %6575 = vmatmul.mubr.bf16.gmra.mrb[184].mxu1 %v6400_v52  ;;  %v6782_v52 = vsel %vm6780_vm3, %v8910_v15, 0 }
 0x83a   :  { %v6352_v33 = vsub.f32 %v12489_v16, %v6323_v30  ;;  %v6353_v50 = vsub.f32 %v12491_v62, %v6323_v30  ;;  %v6382_v19 = vmax.f32 %v6350_v23, 0.0  ;;  %v6383_v25 = vmax.f32 %v6351_v43, 0.0 }
 0x83c   :  { %v6384_v40 = vmax.f32 %v6352_v33, 0.0  ;;  %v6385_v32 = vmax.f32 %v6353_v50, 0.0 }
 0x83d   :  { %v6305_v35 = vpop.xlane.xlu0 %6304 }
 0x83e   :  { %v6403_v9 = vpack.c.bf16 %v6385_v32, %v6383_v25  ;;  %v6324_v4 = vmul.f32 0.0069444445, %v6305_v35  ;;  %v6402_v26 = vpack.c.bf16 %v6384_v40, %v6382_v19 }
 0x83f   :  { %v6309_v48 = vpop.xlane.xlu1 %6308 }
 0x840   :  { %v6354_v60 = vsub.f32 %v12497_v13, %v6324_v4  ;;  %v6355_v57 = vsub.f32 %v12499_v21, %v6324_v4  ;;  %v6325_v58 = vmul.f32 0.0069444445, %v6309_v48  ;;  %7531 = vmatprep.mubr.msk.bf16.mxu1 %vm1763_vm0, %v6403_v9  ;;  %v8904_v13 = vld [vmem:[%s12798_s6] sm:$0xff]   ;;  %v8905_v21 = vld [vmem:[%s12798_s6 + $0x8] sm:$0xff]  }
 0x841   :  { %6583 = vmatmul.mubr.bf16.gmra.mrb[188].mxu1 %v6402_v26  ;;  %7782 = vmatprep.subr.bf16.mxu0 %v8904_v13 }
 0x842   :  { %v6356_v16 = vsub.f32 %v12503_v31, %v6325_v58  ;;  %v6357_v62 = vsub.f32 %v12505_v12, %v6325_v58  ;;  %v6386_v27 = vmax.f32 %v6354_v60, 0.0  ;;  %v6387_v51 = vmax.f32 %v6355_v57, 0.0  ;;  %v8906_v31 = vld [vmem:[%s12798_s6 + $0x10] sm:$0xff]   ;;  %7844 = vmatprep.subr.bf16.mxu1 %v8904_v13  ;;  %7783 = vmatpush3.bf16.msra.mxu0 %v8904_v13 }
 0x843   :  { %7851 = vmatpush3.bf16.msra.mxu1 %v8904_v13  ;;  %7784 = vmatprep.subr.bf16.mxu0 %v8905_v21 }
 0x844   :  { %v6388_v42 = vmax.f32 %v6356_v16, 0.0  ;;  %v6389_v59 = vmax.f32 %v6357_v62, 0.0  ;;  %7845 = vmatprep.subr.bf16.mxu1 %v8905_v21 }
 0x846   :  { %v6405_v38 = vpack.c.bf16 %v6389_v59, %v6387_v51  ;;  %v6404_v2 = vpack.c.bf16 %v6388_v42, %v6386_v27  ;;  %7785 = vmatpush3.bf16.msra.mxu0 %v8905_v21 }
 0x847   :  { %7852 = vmatpush3.bf16.msra.mxu1 %v8905_v21  ;;  %7786 = vmatprep.subr.bf16.mxu0 %v8906_v31 }
 0x848   :  { %7532 = vmatprep.mubr.msk.bf16.mxu1 %vm1763_vm0, %v6405_v38  ;;  %7846 = vmatprep.subr.bf16.mxu1 %v8906_v31 }
 0x849   :  { %6591 = vmatmul.mubr.bf16.gmra.mrb[192].mxu1 %v6404_v2 }
 0x84a   :  { %7787 = vmatpush3.bf16.msra.mxu0 %v8906_v31 }
 0x84b   :  { %7853 = vmatpush3.bf16.msra.mxu1 %v8906_v31  ;;  %7788 = vmatprep.subr.bf16.mxu0 %v8907_v0 }
 0x84c   :  { %7847 = vmatprep.subr.bf16.mxu1 %v8907_v0 }
 0x84e   :  { %7789 = vmatpush3.bf16.msra.mxu0 %v8907_v0 }
 0x84f   :  { %7790 = vmatprep.subr.bf16.mxu0 %v8908_v24  ;;  %7854 = vmatpush3.bf16.msra.mxu1 %v8907_v0 }
 0x850   :  { %7848 = vmatprep.subr.bf16.mxu1 %v8908_v24 }
 0x852   :  { %7791 = vmatpush3.bf16.msra.mxu0 %v8908_v24 }
 0x853   :  { %7855 = vmatpush3.bf16.msra.mxu1 %v8908_v24  ;;  %7792 = vmatprep.subr.bf16.mxu0 %v8909_v56 }
 0x854   :  { %7849 = vmatprep.subr.bf16.mxu1 %v8909_v56 }
 0x856   :  { %7793 = vmatpush3.bf16.msra.mxu0 %v8909_v56 }
 0x857   :  { %8210 = vmatprep.subr.msk.bf16.mxu0 %vm6780_vm3, %v8910_v15  ;;  %7856 = vmatpush3.bf16.msra.mxu1 %v8909_v56 }
 0x858   :  { %8211 = vmatprep.subr.msk.bf16.mxu1 %vm6780_vm3, %v8910_v15 }
 0x85a   :  { %7795 = vmatpush3.bf16.msra.mxu0 %v6782_v52 }
 0x85b   :  { %7857 = vmatpush3.bf16.msra.mxu1 %v6782_v52 }
 0x8e4   :  { %v12560_v12 = vpop.f32.mrb[164].mxu1 }
 0x8e5   :  { %v6538_v3 = vpop.f32.mrb[165].mxu1  ;;  %v6600_v7 = vsel %vm6599_vm2, %v12560_v12, 0.0 }
 0x8e6   :  { %6601 = vadd.xlane.f32.xlu0 %v6600_v7  ;;  %v12564_v36 = vpop.f32.mrb[166].mxu1 }
 0x8e7   :  { %v6541_v47 = vpop.f32.mrb[167].mxu1  ;;  %v6603_v46 = vsel %vm6599_vm2, %v12564_v36, 0.0 }
 0x8e8   :  { %6604 = vadd.xlane.f32.xlu1 %v6603_v46 }
 0x8ec   :  { %v12568_v20 = vpop.f32.mrb[168].mxu1 }
 0x8ed   :  { %v6546_v29 = vpop.f32.mrb[169].mxu1  ;;  %v6606_v28 = vsel %vm6599_vm2, %v12568_v20, 0.0 }
 0x8ee   :  { %6607 = vadd.xlane.f32.xlu0 %v6606_v28  ;;  %v12572_v37 = vpop.f32.mrb[170].mxu1 }
 0x8ef   :  { %v6549_v54 = vpop.f32.mrb[171].mxu1  ;;  %v6609_v53 = vsel %vm6599_vm2, %v12572_v37, 0.0 }
 0x8f0   :  { %6610 = vadd.xlane.f32.xlu1 %v6609_v53 }
 0x8f4   :  { %v12576_v10 = vpop.f32.mrb[172].mxu1 }
 0x8f5   :  { %v6554_v45 = vpop.f32.mrb[173].mxu1  ;;  %v6612_v63 = vsel %vm6599_vm2, %v12576_v10, 0.0 }
 0x8f6   :  { %6613 = vadd.xlane.f32.xlu0 %v6612_v63  ;;  %v12580_v34 = vpop.f32.mrb[174].mxu1 }
 0x8f7   :  { %v6557_v17 = vpop.f32.mrb[175].mxu1  ;;  %v6615_v1 = vsel %vm6599_vm2, %v12580_v34, 0.0 }
 0x8f8   :  { %6616 = vadd.xlane.f32.xlu1 %v6615_v1 }
 0x8fc   :  { %v12584_v49 = vpop.f32.mrb[176].mxu1 }
 0x8fd   :  { %v6562_v8 = vpop.f32.mrb[177].mxu1  ;;  %v6618_v18 = vsel %vm6599_vm2, %v12584_v49, 0.0 }
 0x8fe   :  { %6619 = vadd.xlane.f32.xlu0 %v6618_v18  ;;  %v12594_v14 = vpop.f32.mrb[178].mxu1 }
 0x8ff   :  { %v6565_v61 = vpop.f32.mrb[179].mxu1  ;;  %v6621_v11 = vsel %vm6599_vm2, %v12594_v14, 0.0 }
 0x900   :  { %6622 = vadd.xlane.f32.xlu1 %v6621_v11 }
 0x904   :  { %v12598_v44 = vpop.f32.mrb[180].mxu1 }
 0x905   :  { %v6570_v39 = vpop.f32.mrb[181].mxu1  ;;  %v6624_v6 = vsel %vm6599_vm2, %v12598_v44, 0.0 }
 0x906   :  { %6625 = vadd.xlane.f32.xlu0 %v6624_v6  ;;  %v12608_v41 = vpop.f32.mrb[182].mxu1 }
 0x907   :  { %v6573_v55 = vpop.f32.mrb[183].mxu1  ;;  %v6627_v22 = vsel %vm6599_vm2, %v12608_v41, 0.0 }
 0x908   :  { %6628 = vadd.xlane.f32.xlu1 %v6627_v22 }
 0x90c   :  { %v12612_v5 = vpop.f32.mrb[184].mxu1 }
 0x90d   :  { %v6578_v23 = vpop.f32.mrb[185].mxu1  ;;  %v6630_v43 = vsel %vm6599_vm2, %v12612_v5, 0.0 }
 0x90e   :  { %6631 = vadd.xlane.f32.xlu0 %v6630_v43  ;;  %v12616_v30 = vpop.f32.mrb[186].mxu1 }
 0x90f   :  { %v6581_v33 = vpop.f32.mrb[187].mxu1  ;;  %v6633_v50 = vsel %vm6599_vm2, %v12616_v30, 0.0 }
 0x910   :  { %6634 = vadd.xlane.f32.xlu1 %v6633_v50 }
 0x914   :  { %v12620_v19 = vpop.f32.mrb[188].mxu1 }
 0x915   :  { %v6586_v25 = vpop.f32.mrb[189].mxu1  ;;  %v6636_v40 = vsel %vm6599_vm2, %v12620_v19, 0.0 }
 0x916   :  { %6637 = vadd.xlane.f32.xlu0 %v6636_v40  ;;  %v12624_v32 = vpop.f32.mrb[190].mxu1 }
 0x917   :  { %v6589_v35 = vpop.f32.mrb[191].mxu1  ;;  %v6639_v9 = vsel %vm6599_vm2, %v12624_v32, 0.0 }
 0x918   :  { %6640 = vadd.xlane.f32.xlu1 %v6639_v9 }
 0x91c   :  { %v12628_v4 = vpop.f32.mrb[192].mxu1 }
 0x91d   :  { %v6594_v26 = vpop.f32.mrb[193].mxu1  ;;  %v6642_v48 = vsel %vm6599_vm2, %v12628_v4, 0.0 }
 0x91e   :  { %6643 = vadd.xlane.f32.xlu0 %v6642_v48  ;;  %v12632_v60 = vpop.f32.mrb[194].mxu1 }
 0x91f   :  { %v6597_v57 = vpop.f32.mrb[195].mxu1  ;;  %v6645_v58 = vsel %vm6599_vm2, %v12632_v60, 0.0 }
 0x920   :  { %6646 = vadd.xlane.f32.xlu1 %v6645_v58 }
 0x973   :  { %v6602_v16 = vpop.xlane.xlu0 %6601 }
 0x974   :  { %v6648_v62 = vmul.f32 0.01, %v6602_v16 }
 0x975   :  { %v6605_v27 = vpop.xlane.xlu1 %6604 }
 0x976   :  { %v6664_v51 = vsub.f32 %v12560_v12, %v6648_v62  ;;  %v6649_v42 = vmul.f32 0.01, %v6605_v27 }
 0x978   :  { %v6665_v59 = vsub.f32 %v12564_v36, %v6649_v42  ;;  %v6680_v38 = vmax.f32 %v6664_v51, 0.0 }
 0x97a   :  { %v6681_v2 = vmax.f32 %v6665_v59, 0.0 }
 0x97b   :  { %v6608_v13 = vpop.xlane.xlu0 %6607 }
 0x97c   :  { %v6696_v21 = vpack.c.bf16 %v6681_v2, %v6680_v38  ;;  %v6650_v31 = vmul.f32 0.01, %v6608_v13 }
 0x97d   :  { %v6611_v3 = vpop.xlane.xlu1 %6610 }
 0x97e   :  { %v6666_v7 = vsub.f32 %v12568_v20, %v6650_v31  ;;  %v6651_v47 = vmul.f32 0.01, %v6611_v3  ;;  %7796 = vmatprep.mubr.msk.bf16.mxu0 %vm6599_vm2, %v6696_v21 }
 0x980   :  { %v6667_v46 = vsub.f32 %v12572_v37, %v6651_v47  ;;  %v6682_v29 = vmax.f32 %v6666_v7, 0.0 }
 0x982   :  { %v6683_v28 = vmax.f32 %v6667_v46, 0.0 }
 0x983   :  { %v6614_v54 = vpop.xlane.xlu0 %6613 }
 0x984   :  { %v6697_v12 = vpack.c.bf16 %v6683_v28, %v6682_v29  ;;  %v6652_v53 = vmul.f32 0.01, %v6614_v54 }
 0x985   :  { %v6617_v45 = vpop.xlane.xlu1 %6616 }
 0x986   :  { %v6668_v36 = vsub.f32 %v12576_v10, %v6652_v53  ;;  %v6653_v63 = vmul.f32 0.01, %v6617_v45  ;;  %7797 = vmatmul.mubr.msk.bf16.vlgmr.msra.gmra.mrb[172].mxu0 %vm6599_vm2, %v6697_v12 }
 0x988   :  { %v6669_v17 = vsub.f32 %v12580_v34, %v6653_v63  ;;  %v6684_v1 = vmax.f32 %v6668_v36, 0.0 }
 0x98a   :  { %v6685_v20 = vmax.f32 %v6669_v17, 0.0 }
 0x98b   :  { %v6620_v0 = vpop.xlane.xlu0 %6619 }
 0x98c   :  { %v6698_v24 = vpack.c.bf16 %v6685_v20, %v6684_v1  ;;  %v6654_v8 = vmul.f32 0.01, %v6620_v0 }
 0x98d   :  { %v6623_v18 = vpop.xlane.xlu1 %6622 }
 0x98e   :  { %v6670_v37 = vsub.f32 %v12584_v49, %v6654_v8  ;;  %v6655_v61 = vmul.f32 0.01, %v6623_v18  ;;  %7800 = vmatprep.mubr.msk.bf16.mxu0 %vm6599_vm2, %v6698_v24 }
 0x990   :  { %v6671_v11 = vsub.f32 %v12594_v14, %v6655_v61  ;;  %v6686_v56 = vmax.f32 %v6670_v37, 0.0 }
 0x992   :  { %v6687_v10 = vmax.f32 %v6671_v11, 0.0 }
 0x993   :  { %v6626_v15 = vpop.xlane.xlu0 %6625 }
 0x994   :  { %v6699_v39 = vpack.c.bf16 %v6687_v10, %v6686_v56  ;;  %v6656_v6 = vmul.f32 0.01, %v6626_v15 }
 0x995   :  { %v6629_v55 = vpop.xlane.xlu1 %6628 }
 0x996   :  { %v6672_v34 = vsub.f32 %v12598_v44, %v6656_v6  ;;  %v6657_v22 = vmul.f32 0.01, %v6629_v55  ;;  %7801 = vmatmul.mubr.msk.bf16.gmra.mrb[176].mxu0 %vm6599_vm2, %v6699_v39 }
 0x998   :  { %v6673_v52 = vsub.f32 %v12608_v41, %v6657_v22  ;;  %v6688_v23 = vmax.f32 %v6672_v34, 0.0 }
 0x99a   :  { %v6689_v49 = vmax.f32 %v6673_v52, 0.0 }
 0x99b   :  { %v6632_v43 = vpop.xlane.xlu0 %6631 }
 0x99c   :  { %v6700_v33 = vpack.c.bf16 %v6689_v49, %v6688_v23  ;;  %v6658_v50 = vmul.f32 0.01, %v6632_v43 }
 0x99d   :  { %v6635_v25 = vpop.xlane.xlu1 %6634 }
 0x99e   :  { %v6674_v14 = vsub.f32 %v12612_v5, %v6658_v50  ;;  %v6659_v40 = vmul.f32 0.01, %v6635_v25  ;;  %7804 = vmatprep.mubr.msk.bf16.mxu0 %vm6599_vm2, %v6700_v33 }
 0x9a0   :  { %v6675_v35 = vsub.f32 %v12616_v30, %v6659_v40  ;;  %v6690_v9 = vmax.f32 %v6674_v14, 0.0 }
 0x9a2   :  { %v6691_v44 = vmax.f32 %v6675_v35, 0.0 }
 0x9a3   :  { %v6638_v26 = vpop.xlane.xlu0 %6637 }
 0x9a4   :  { %v6701_v48 = vpack.c.bf16 %v6691_v44, %v6690_v9  ;;  %v6660_v57 = vmul.f32 0.01, %v6638_v26 }
 0x9a5   :  { %v6641_v58 = vpop.xlane.xlu1 %6640 }
 0x9a6   :  { %v6676_v41 = vsub.f32 %v12620_v19, %v6660_v57  ;;  %v6661_v16 = vmul.f32 0.01, %v6641_v58  ;;  %7805 = vmatmul.mubr.msk.bf16.gmra.mrb[180].mxu0 %vm6599_vm2, %v6701_v48 }
 0x9a8   :  { %v6677_v62 = vsub.f32 %v12624_v32, %v6661_v16  ;;  %v6692_v27 = vmax.f32 %v6676_v41, 0.0 }
 0x9aa   :  { %v6693_v5 = vmax.f32 %v6677_v62, 0.0 }
 0x9ab   :  { %v6644_v51 = vpop.xlane.xlu0 %6643 }
 0x9ac   :  { %v6702_v42 = vpack.c.bf16 %v6693_v5, %v6692_v27  ;;  %v6662_v59 = vmul.f32 0.01, %v6644_v51 }
 0x9ad   :  { %v6647_v38 = vpop.xlane.xlu1 %6646 }
 0x9ae   :  { %v6678_v30 = vsub.f32 %v12628_v4, %v6662_v59  ;;  %v6663_v2 = vmul.f32 0.01, %v6647_v38  ;;  %7808 = vmatprep.mubr.msk.bf16.mxu1 %vm6599_vm2, %v6702_v42 }
 0x9b0   :  { %v6679_v13 = vsub.f32 %v12632_v60, %v6663_v2  ;;  %v6694_v21 = vmax.f32 %v6678_v30, 0.0 }
 0x9b2   :  { %v6695_v19 = vmax.f32 %v6679_v13, 0.0 }
 0x9b4   :  { %v6703_v31 = vpack.c.bf16 %v6695_v19, %v6694_v21 }
 0x9b6   :  { %7809 = vmatmul.mubr.msk.bf16.vlgmr.msra.gmra.mrb[196].mxu1 %vm6599_vm2, %v6703_v31 }
 0xa59   :  { %v7798_v3 = vpop.f32.mrb[172].mxu0 }
 0xa5a   :  { %v12660_v32 = vpop.f32.mrb[173].mxu0  ;;  %v6887_v7 = vsel %vm6599_vm2, %v7798_v3, 0.0 }
 0xa5b   :  { %6888 = vadd.xlane.f32.xlu0 %v6887_v7  ;;  %v7799_v47 = vpop.f32.mrb[174].mxu0  ;;  %v6881_v29 = vsel %vm6599_vm2, %v12660_v32, 0.0 }
 0xa5c   :  { %v6821_v46 = vpop.f32.mrb[175].mxu0  ;;  %v6890_v4 = vsel %vm6599_vm2, %v7799_v47, 0.0 }
 0xa5d   :  { %6891 = vadd.xlane.f32.xlu1 %v6890_v4  ;;  %v6884_v60 = vsel %vm6599_vm2, %v6821_v46, 0.0 }
 0xa5f   :  { %6882 = vadd.xlane.f32.xlu0 %v6881_v29 }
 0xa61   :  { %6885 = vadd.xlane.f32.xlu1 %v6884_v60 }
 0xa69   :  { %v12667_v28 = vpop.f32.mrb[176].mxu0 }
 0xa6a   :  { %v12669_v54 = vpop.f32.mrb[177].mxu0  ;;  %v6899_v12 = vsel %vm6599_vm2, %v12667_v28, 0.0 }
 0xa6b   :  { %6900 = vadd.xlane.f32.xlu0 %v6899_v12  ;;  %v12673_v53 = vpop.f32.mrb[178].mxu0  ;;  %v6893_v63 = vsel %vm6599_vm2, %v12669_v54, 0.0 }
 0xa6c   :  { %v12675_v45 = vpop.f32.mrb[179].mxu0  ;;  %v6902_v36 = vsel %vm6599_vm2, %v12673_v53, 0.0 }
 0xa6d   :  { %6903 = vadd.xlane.f32.xlu1 %v6902_v36  ;;  %v6896_v17 = vsel %vm6599_vm2, %v12675_v45, 0.0 }
 0xa6f   :  { %6894 = vadd.xlane.f32.xlu0 %v6893_v63 }
 0xa71   :  { %6897 = vadd.xlane.f32.xlu1 %v6896_v17 }
 0xa79   :  { %v12683_v1 = vpop.f32.mrb[180].mxu0 }
 0xa7a   :  { %v12685_v20 = vpop.f32.mrb[181].mxu0  ;;  %v6911_v0 = vsel %vm6599_vm2, %v12683_v1, 0.0 }
 0xa7b   :  { %6912 = vadd.xlane.f32.xlu0 %v6911_v0  ;;  %v12689_v24 = vpop.f32.mrb[182].mxu0  ;;  %v6905_v37 = vsel %vm6599_vm2, %v12685_v20, 0.0 }
 0xa7c   :  { %v12691_v8 = vpop.f32.mrb[183].mxu0  ;;  %v6914_v18 = vsel %vm6599_vm2, %v12689_v24, 0.0 }
 0xa7d   :  { %6915 = vadd.xlane.f32.xlu1 %v6914_v18  ;;  %v6908_v61 = vsel %vm6599_vm2, %v12691_v8, 0.0 }
 0xa7f   :  { %6906 = vadd.xlane.f32.xlu0 %v6905_v37 }
 0xa81   :  { %6909 = vadd.xlane.f32.xlu1 %v6908_v61 }
 0xa89   :  { %v12699_v11 = vpop.f32.mrb[196].mxu1 }
 0xa8a   :  { %v12701_v56 = vpop.f32.mrb[197].mxu1  ;;  %v6923_v55 = vsel %vm6599_vm2, %v12699_v11, 0.0 }
 0xa8b   :  { %v12703_v10 = vpop.f32.mrb[198].mxu1  ;;  %v6917_v15 = vsel %vm6599_vm2, %v12701_v56, 0.0 }
 0xa8c   :  { %6918 = vadd.xlane.f32.xlu0 %v6917_v15  ;;  %v12707_v39 = vpop.f32.mrb[199].mxu1  ;;  %v6926_v34 = vsel %vm6599_vm2, %v12703_v10, 0.0 }
 0xa8d   :  { %v6920_v6 = vsel %vm6599_vm2, %v12707_v39, 0.0 }
 0xa8e   :  { %6921 = vadd.xlane.f32.xlu1 %v6920_v6 }
 0xa90   :  { %6924 = vadd.xlane.f32.xlu0 %v6923_v55 }
 0xa92   :  { %6927 = vadd.xlane.f32.xlu1 %v6926_v34 }
 0xae8   :  { %v6889_v22 = vpop.xlane.xlu0 %6888 }
 0xae9   :  { %v6931_v52 = vmul.f32 0.01, %v6889_v22 }
 0xaea   :  { %v6892_v23 = vpop.xlane.xlu1 %6891 }
 0xaeb   :  { %v6947_v49 = vsub.f32 %v7798_v3, %v6931_v52  ;;  %v6932_v43 = vmul.f32 0.01, %v6892_v23 }
 0xaec   :  { %v6883_v33 = vpop.xlane.xlu0 %6882 }
 0xaed   :  { %v6963_v50 = vmax.f32 %v6947_v49, 0.0  ;;  %v6948_v25 = vsub.f32 %v7799_v47, %v6932_v43  ;;  %v6929_v14 = vmul.f32 0.01, %v6883_v33 }
 0xaee   :  { %v6886_v40 = vpop.xlane.xlu1 %6885 }
 0xaef   :  { %6979 = vst.msk [vmem:[%s12799_s7 + $0x10] sm:$0xff] %vm6599_vm2, %v6963_v50  ;;  %v6964_v35 = vmax.f32 %v6948_v25, 0.0  ;;  %v6945_v9 = vsub.f32 %v12660_v32, %v6929_v14  ;;  %v6930_v44 = vmul.f32 0.01, %v6886_v40 }
 0xaf1   :  { %6980 = vst.msk [vmem:[%s12799_s7 + $0x18] sm:$0xff] %vm6599_vm2, %v6964_v35  ;;  %v6961_v26 = vmax.f32 %v6945_v9, 0.0  ;;  %v6946_v48 = vsub.f32 %v6821_v46, %v6930_v44 }
 0xaf3   :  { %6977 = vst.msk [vmem:[%s12799_s7] sm:$0xff] %vm6599_vm2, %v6961_v26  ;;  %v6962_v57 = vmax.f32 %v6946_v48, 0.0 }
 0xaf5   :  { %6978 = vst.msk [vmem:[%s12799_s7 + $0x8] sm:$0xff] %vm6599_vm2, %v6962_v57 }
 0xaf8   :  { %v6901_v58 = vpop.xlane.xlu0 %6900 }
 0xaf9   :  { %v6935_v41 = vmul.f32 0.01, %v6901_v58 }
 0xafa   :  { %v6904_v16 = vpop.xlane.xlu1 %6903 }
 0xafb   :  { %v6951_v62 = vsub.f32 %v12667_v28, %v6935_v41  ;;  %v6936_v27 = vmul.f32 0.01, %v6904_v16 }
 0xafc   :  { %v6895_v5 = vpop.xlane.xlu0 %6894 }
 0xafd   :  { %v6967_v51 = vmax.f32 %v6951_v62, 0.0  ;;  %v6952_v42 = vsub.f32 %v12673_v53, %v6936_v27  ;;  %v6933_v59 = vmul.f32 0.01, %v6895_v5 }
 0xafe   :  { %v6898_v38 = vpop.xlane.xlu1 %6897 }
 0xaff   :  { %6983 = vst.msk [vmem:[%s12799_s7 + $0x30] sm:$0xff] %vm6599_vm2, %v6967_v51  ;;  %v6968_v30 = vmax.f32 %v6952_v42, 0.0  ;;  %v6949_v2 = vsub.f32 %v12669_v54, %v6933_v59  ;;  %v6934_v13 = vmul.f32 0.01, %v6898_v38 }
 0xb01   :  { %6984 = vst.msk [vmem:[%s12799_s7 + $0x38] sm:$0xff] %vm6599_vm2, %v6968_v30  ;;  %v6965_v21 = vmax.f32 %v6949_v2, 0.0  ;;  %v6950_v19 = vsub.f32 %v12675_v45, %v6934_v13 }
 0xb03   :  { %6981 = vst.msk [vmem:[%s12799_s7 + $0x20] sm:$0xff] %vm6599_vm2, %v6965_v21  ;;  %v6966_v31 = vmax.f32 %v6950_v19, 0.0 }
 0xb05   :  { %6982 = vst.msk [vmem:[%s12799_s7 + $0x28] sm:$0xff] %vm6599_vm2, %v6966_v31 }
 0xb08   :  { %v6913_v3 = vpop.xlane.xlu0 %6912 }
 0xb09   :  { %v6939_v32 = vmul.f32 0.01, %v6913_v3 }
 0xb0a   :  { %v6916_v7 = vpop.xlane.xlu1 %6915 }
 0xb0b   :  { %v6955_v47 = vsub.f32 %v12683_v1, %v6939_v32  ;;  %v6940_v46 = vmul.f32 0.01, %v6916_v7 }
 0xb0c   :  { %v6907_v4 = vpop.xlane.xlu0 %6906 }
 0xb0d   :  { %v6971_v29 = vmax.f32 %v6955_v47, 0.0  ;;  %v6956_v60 = vsub.f32 %v12689_v24, %v6940_v46  ;;  %v6937_v28 = vmul.f32 0.01, %v6907_v4 }
 0xb0e   :  { %v6910_v54 = vpop.xlane.xlu1 %6909 }
 0xb0f   :  { %6987 = vst.msk [vmem:[%s12799_s7 + $0x50] sm:$0xff] %vm6599_vm2, %v6971_v29  ;;  %v6972_v12 = vmax.f32 %v6956_v60, 0.0  ;;  %v6953_v53 = vsub.f32 %v12685_v20, %v6937_v28  ;;  %v6938_v45 = vmul.f32 0.01, %v6910_v54 }
 0xb11   :  { %6988 = vst.msk [vmem:[%s12799_s7 + $0x58] sm:$0xff] %vm6599_vm2, %v6972_v12  ;;  %v6969_v36 = vmax.f32 %v6953_v53, 0.0  ;;  %v6954_v63 = vsub.f32 %v12691_v8, %v6938_v45 }
 0xb13   :  { %6985 = vst.msk [vmem:[%s12799_s7 + $0x40] sm:$0xff] %vm6599_vm2, %v6969_v36  ;;  %v6970_v17 = vmax.f32 %v6954_v63, 0.0 }
 0xb15   :  { %6986 = vst.msk [vmem:[%s12799_s7 + $0x48] sm:$0xff] %vm6599_vm2, %v6970_v17 }
 0xb19   :  { %v6919_v1 = vpop.xlane.xlu0 %6918 }
 0xb1a   :  { %v6941_v20 = vmul.f32 0.01, %v6919_v1 }
 0xb1b   :  { %v6922_v0 = vpop.xlane.xlu1 %6921 }
 0xb1c   :  { %v6957_v24 = vsub.f32 %v12701_v56, %v6941_v20  ;;  %v6942_v18 = vmul.f32 0.01, %v6922_v0 }
 0xb1d   :  { %v6925_v37 = vpop.xlane.xlu0 %6924 }
 0xb1e   :  { %v6973_v61 = vmax.f32 %v6957_v24, 0.0  ;;  %v6958_v8 = vsub.f32 %v12707_v39, %v6942_v18  ;;  %v6943_v15 = vmul.f32 0.01, %v6925_v37 }
 0xb1f   :  { %v6928_v6 = vpop.xlane.xlu1 %6927 }
 0xb20   :  { %6989 = vst.msk [vmem:[%s12799_s7 + $0x60] sm:$0xff] %vm6599_vm2, %v6973_v61  ;;  %v6974_v55 = vmax.f32 %v6958_v8, 0.0  ;;  %v6959_v34 = vsub.f32 %v12699_v11, %v6943_v15  ;;  %v6944_v22 = vmul.f32 0.01, %v6928_v6 }
 0xb22   :  { %6990 = vst.msk [vmem:[%s12799_s7 + $0x68] sm:$0xff] %vm6599_vm2, %v6974_v55  ;;  %v6975_v56 = vmax.f32 %v6959_v34, 0.0  ;;  %v6960_v52 = vsub.f32 %v12703_v10, %v6944_v22 }
 0xb24   :  { %6991 = vst.msk [vmem:[%s12799_s7 + $0x70] sm:$0xff] %vm6599_vm2, %v6975_v56  ;;  %v6976_v39 = vmax.f32 %v6960_v52, 0.0 }
 0xb26   :  { %6992 = vst.msk [vmem:[%s12799_s7 + $0x78] sm:$0xff] %vm6599_vm2, %v6976_v39 }

</bundles_post_ra>
